<compile_context>
chip_gen: v7x
topology: tpu7x:2x2x1
jax: 0.10.0
libtpu: 0.0.40
codegen_flags: <defaults>
</compile_context>

<pallas_src>
import functools
import math

import jax
import jax.numpy as jnp
from jax.experimental import pallas as pl
from jax.experimental.pallas import tpu as pltpu

_F32 = jnp.float32
_LANE = 128


# ----------------------------------------------------------------------------
# Host-side helpers
# ----------------------------------------------------------------------------
def _round_up(x, m):
    return ((x + m - 1) // m) * m


def _const_spec(a):
    """Constant-index BlockSpec: the full array is one block whose index never
    changes with the batch grid step -> fetched once, stays VMEM resident."""
    nd = a.ndim
    return pl.BlockSpec(a.shape, lambda b, _nd=nd: (0,) * _nd)


def _physical_vmem_bytes():
    try:
        return int(pltpu.get_tpu_info().vmem_capacity_bytes)
    except Exception:
        return 64 * 1024 * 1024          # v7x per-TensorCore minimum


def _pack_params(params, out_pad):
    """Concatenate / pad the reference-shaped parameter tree into the flat,
    packed argument list the fused kernel expects (tiny wrapper-side ops)."""
    flat = []
    for p in params['attention']:
        m0, m1 = p['mab0'], p['mab1']
        wx = jnp.concatenate([m0['wk'], m0['wv'], m1['wq']], axis=1)   # (din, 3*dv)
        bx = jnp.concatenate([m0['bk'], m0['bv'], m1['bq']], axis=1)
        wh = jnp.concatenate([m1['wk'], m1['wv']], axis=1)             # (dv, 2*dv)
        bh = jnp.concatenate([m1['bk'], m1['bv']], axis=1)
        flat += [p['I'][0], m0['wq'], m0['bq'], wx, bx, m0['wo'], m0['bo'],
                 wh, bh, m1['wo'], m1['bo']]
    pm = params['pool']['mab']
    wkv = jnp.concatenate([pm['wk'], pm['wv']], axis=1)
    bkv = jnp.concatenate([pm['bk'], pm['bv']], axis=1)
    flat += [params['pool']['S'][0], pm['wq'], pm['bq'], wkv, bkv,
             pm['wo'], pm['bo']]
    mlp = params['mlp']
    for i, (w, b) in enumerate(mlp):
        if i == len(mlp) - 1:            # lane-dense final store: pad to 128 lanes
            pad = out_pad - w.shape[1]
            w = jnp.pad(w, ((0, 0), (0, pad)))
            b = jnp.pad(b, ((0, 0), (0, pad)))
        flat += [w, b]
    return flat


def _estimate_vmem(bt, N, in_dim, dv, n_ind, out_pad, weight_bytes, in_itemsize):
    """Per-grid-step VMEM working set (bytes): double-buffered I/O blocks,
    double-buffered constant weights, and the widest layer's f32 temporaries."""
    io = 2 * (bt * N * in_dim + bt * out_pad) * in_itemsize
    weights = 2 * weight_bytes
    act = 4 * (bt * N * (max(in_dim, dv) + 8 * dv + 2 * n_ind)
               + bt * n_ind * 8 * dv)
    return io + weights + int(1.5 * act)


# ----------------------------------------------------------------------------
# In-kernel building blocks (traced into the fused kernel)
# ----------------------------------------------------------------------------
def _linear(x, w_ref, b_ref):
    """x: (M, d_in) f32 -> x @ W + b in f32 (weights may be stored bf16)."""
    return (jnp.dot(x, w_ref[...].astype(_F32), preferred_element_type=_F32)
            + b_ref[...].astype(_F32))


def _mha(q3, k3, v3, n_head, scale):
    """SetTransformer MAB attention core: per head O_h = Q_h + softmax(Q_h K_h^T * scale) V_h.
    Heads are a small static unroll of single-batch-dim einsums (the proven
    Mosaic lowering form); softmax math is exact f32 (parity with PyTorch)."""
    Bt, Nq, dv = q3.shape
    ds = dv // n_head
    outs = []
    for h in range(n_head):
        sl = slice(h * ds, (h + 1) * ds)
        qh, kh, vh = q3[:, :, sl], k3[:, :, sl], v3[:, :, sl]
        s = jnp.einsum('bqd,bkd->bqk', qh, kh,
                       preferred_element_type=_F32) * scale
        s = s - jnp.max(s, axis=-1, keepdims=True)
        p = jnp.exp(s)
        p = p / jnp.sum(p, axis=-1, keepdims=True)
        outs.append(qh + jnp.einsum('bqk,bkd->bqd', p, vh,
                                    preferred_element_type=_F32))
    return jnp.concatenate(outs, axis=-1)


def _set_transformer_kernel(x_ref, *refs, n_isab, n_mlp, n_head):
    o_ref = refs[-1]
    prm = refs[:-1]

    Bt, N, d_in = x_ref.shape
    x_flat = x_ref[...].astype(_F32).reshape(Bt * N, d_in)

    pos = 0
    # -------- ISAB stack:  H = MAB(I, X) ;  X <- MAB(X, H)   (ln = False) ----
    for _ in range(n_isab):
        (i_ref, wq0, bq0, wx, bx, wo0, bo0, wh, bh, wo1, bo1) = prm[pos:pos + 11]
        pos += 11
        dv = wq0.shape[1]
        n_ind = i_ref.shape[0]
        scale = 1.0 / math.sqrt(dv)       # reference divides by sqrt(dim_V)

        # One packed projection of X -> [K0 | V0 | Q1].
        kvq = _linear(x_flat, wx, bx)                                # (Bt*N, 3*dv)
        k0 = kvq[:, 0 * dv:1 * dv].reshape(Bt, N, dv)
        v0 = kvq[:, 1 * dv:2 * dv].reshape(Bt, N, dv)
        q1 = kvq[:, 2 * dv:3 * dv].reshape(Bt, N, dv)

        # mab0: inducing-point queries are batch independent -> project once.
        q0 = _linear(i_ref[...].astype(_F32), wq0, bq0)              # (n_ind, dv)
        h = _mha(jnp.broadcast_to(q0[None], (Bt, n_ind, dv)), k0, v0,
                 n_head, scale)                                       # (Bt, n_ind, dv)
        h_flat = h.reshape(Bt * n_ind, dv)
        h_flat = h_flat + jnp.maximum(_linear(h_flat, wo0, bo0), 0.0)

        # One packed projection of H -> [K1 | V1].
        kv1 = _linear(h_flat, wh, bh)                                # (Bt*n_ind, 2*dv)
        k1 = kv1[:, 0 * dv:1 * dv].reshape(Bt, n_ind, dv)
        v1 = kv1[:, 1 * dv:2 * dv].reshape(Bt, n_ind, dv)

        # mab1: out = MAB(X, H).
        o = _mha(q1, k1, v1, n_head, scale)                           # (Bt, N, dv)
        o_flat = o.reshape(Bt * N, dv)
        x_flat = o_flat + jnp.maximum(_linear(o_flat, wo1, bo1), 0.0)

    # -------- PMA pool (single seed) + squeeze(1) ----------------------------
    (s_ref, wqp, bqp, wkv, bkv, wop, bop) = prm[pos:pos + 7]
    pos += 7
    dv = wqp.shape[1]
    scale = 1.0 / math.sqrt(dv)
    kv = _linear(x_flat, wkv, bkv)                                    # (Bt*N, 2*dv)
    k = kv[:, :dv].reshape(Bt, N, dv)
    v = kv[:, dv:].reshape(Bt, N, dv)
    qs = _linear(s_ref[...].astype(_F32), wqp, bqp)                   # (1, dv)
    o = _mha(jnp.broadcast_to(qs[None], (Bt, 1, dv)), k, v, n_head, scale)
    pooled = jnp.sum(o, axis=1)                                       # (Bt, dv)
    pooled = pooled + jnp.maximum(_linear(pooled, wop, bop), 0.0)

    # -------- MLP head --------------------------------------------------------
    y = pooled
    for i in range(n_mlp):
        y = _linear(y, prm[pos + 2 * i], prm[pos + 2 * i + 1])
        if i < n_mlp - 1:
            y = jnp.maximum(y, 0.0)

    # Lane-dense (128-multiple) store; wrapper slices the zero padding off.
    o_ref[...] = y.reshape(Bt, 1, y.shape[-1]).astype(o_ref.dtype)


# ----------------------------------------------------------------------------
# Wrapper: one fused pallas_call for the whole forward pass
# ----------------------------------------------------------------------------
def set_transformer(x, params, n_head, *, batch_block=128, param_dtype=None):
    """Fused SetTransformer forward.  x: (B, N, in_dim) -> (B, out_dim)."""
    B, N, in_dim = x.shape
    dv = params['pool']['S'].shape[-1]
    n_ind = params['attention'][0]['I'].shape[1]
    out_dim = params['mlp'][-1][0].shape[1]
    out_pad = _round_up(out_dim, _LANE)
    n_isab = len(params['attention'])
    n_mlp = len(params['mlp'])

    if param_dtype is not None:           # optional bf16 storage (v6e / v7x)
        x = x.astype(param_dtype)
        params = jax.tree_util.tree_map(lambda a: a.astype(param_dtype), params)

    flat_w = _pack_params(params, out_pad)
    weight_bytes = sum(int(a.size) * jnp.dtype(a.dtype).itemsize for a in flat_w)
    in_itemsize = jnp.dtype(x.dtype).itemsize

    phys_vmem = _physical_vmem_bytes()
    budget = min(phys_vmem, 128 * 1024 * 1024) * 3 // 8   # ~24 MiB v7x, ~48 MiB v5e/v6e
    if 2 * weight_bytes > budget:
        raise ValueError("Stacked parameters do not fit the fused-kernel VMEM "
                         "budget; split the forward into per-layer pallas_calls.")

    # Batch tile: largest divisor of B that leaves >= 2 grid steps (both v7x
    # TensorCores get work) and fits the VMEM working-set budget.
    cap = min(batch_block, max(1, B // 2)) if B >= 2 else 1
    cands = [d for d in range(1, B + 1) if B % d == 0 and d <= cap] or [1]
    bt = cands[0]
    for d in reversed(cands):
        if _estimate_vmem(d, N, in_dim, dv, n_ind, out_pad,
                          weight_bytes, in_itemsize) <= budget:
            bt = d
            break
    est = _estimate_vmem(bt, N, in_dim, dv, n_ind, out_pad,
                         weight_bytes, in_itemsize)
    vmem_limit = int(min(max(est * 5 // 4, 32 * 1024 * 1024), phys_vmem * 3 // 4))

    kernel = functools.partial(_set_transformer_kernel,
                               n_isab=n_isab, n_mlp=n_mlp, n_head=n_head)
    y_pad = pl.pallas_call(
        kernel,
        out_shape=jax.ShapeDtypeStruct((B, 1, out_pad), _F32),
        grid=(B // bt,),
        in_specs=[pl.BlockSpec((bt, N, in_dim), lambda b: (b, 0, 0))]
                 + [_const_spec(a) for a in flat_w],
        out_specs=pl.BlockSpec((bt, 1, out_pad), lambda b: (b, 0, 0)),
        compiler_params=pltpu.CompilerParams(
            dimension_semantics=("parallel",),
            vmem_limit_bytes=vmem_limit),
    )(x, *flat_w)
    return y_pad[:, 0, :out_dim]


# ----------------------------------------------------------------------------
# Deterministic parameter construction (shapes follow the PyTorch module).
# ----------------------------------------------------------------------------
def init_params(key, in_dim, out_dim, hidden_dim, n_attention, n_mlp_layer,
                n_ind, n_head):
    keys = iter(jax.random.split(key, 256))

    def lin(din, dout):
        s = 1.0 / math.sqrt(din)
        w = jax.random.uniform(next(keys), (din, dout), jnp.float32, -s, s)
        b = jax.random.uniform(next(keys), (1, dout), jnp.float32, -s, s)
        return w, b

    def mab_params(dq, dk, dv):
        wq, bq = lin(dq, dv)
        wk, bk = lin(dk, dv)
        wv, bv = lin(dk, dv)
        wo, bo = lin(dv, dv)
        return dict(wq=wq, bq=bq, wk=wk, bk=bk, wv=wv, bv=bv, wo=wo, bo=bo)

    def isab_params(din, dout):
        bound = math.sqrt(6.0 / (n_ind + dout))                  # xavier uniform
        I = jax.random.uniform(next(keys), (1, n_ind, dout),
                               jnp.float32, -bound, bound)
        return dict(I=I,
                    mab0=mab_params(dout, din, dout),
                    mab1=mab_params(din, dout, dout))

    attention = [isab_params(in_dim, hidden_dim)]
    attention += [isab_params(hidden_dim, hidden_dim)
                  for _ in range(n_attention - 1)]

    bound = math.sqrt(6.0 / (1 + hidden_dim))
    S = jax.random.uniform(next(keys), (1, 1, hidden_dim),
                           jnp.float32, -bound, bound)
    pool = dict(S=S, mab=mab_params(hidden_dim, hidden_dim, hidden_dim))

    dims = [hidden_dim] * n_mlp_layer + [out_dim]
    mlp = [lin(dims[i], dims[i + 1]) for i in range(len(dims) - 1)]

    return dict(attention=attention, pool=pool, mlp=mlp)


# ----------------------------------------------------------------------------
# Pure-JAX reference (mirrors the PyTorch module; used for a parity check)
# ----------------------------------------------------------------------------
def _mab_ref(q_in, k_in, m, n_head):
    dv = m['wq'].shape[1]
    ds = dv // n_head
    Q = q_in @ m['wq'] + m['bq']
    K = k_in @ m['wk'] + m['bk']
    V = k_in @ m['wv'] + m['bv']

    def fold(a):                      # torch.cat(a.split(ds, 2), 0)
        b, l, _ = a.shape
        return (a.reshape(b, l, n_head, ds).transpose(2, 0, 1, 3)
                 .reshape(n_head * b, l, ds))

    Q_, K_, V_ = fold(Q), fold(K), fold(V)
    A = jax.nn.softmax(jnp.einsum('bqd,bkd->bqk', Q_, K_) / math.sqrt(dv),
                       axis=-1)
    O_ = Q_ + jnp.einsum('bqk,bkd->bqd', A, V_)
    b, l = q_in.shape[0], q_in.shape[1]
    O = O_.reshape(n_head, b, l, ds).transpose(1, 2, 0, 3).reshape(b, l, dv)
    return O + jax.nn.relu(O @ m['wo'] + m['bo'])


def set_transformer_ref(x, params, n_head):
    B = x.shape[0]
    h = x
    for p in params['attention']:
        I = jnp.broadcast_to(p['I'], (B,) + p['I'].shape[1:])
        hh = _mab_ref(I, h, p['mab0'], n_head)
        h = _mab_ref(h, hh, p['mab1'], n_head)
    S = jnp.broadcast_to(params['pool']['S'],
                         (B,) + params['pool']['S'].shape[1:])
    y = _mab_ref(S, h, params['pool']['mab'], n_head)[:, 0, :]
    mlp = params['mlp']
    for i, (w, b) in enumerate(mlp):
        y = y @ w + b
        if i < len(mlp) - 1:
            y = jax.nn.relu(y)
    return y


if __name__ == "__main__":
    key = jax.random.PRNGKey(0)
    pkey, xkey = jax.random.split(key)

    # Small config consistent with the module's constructor.
    B, seq, in_dim = 2, 16, 4
    out_dim, hidden_dim = 8, 32
    n_attention, n_mlp_layer = 2, 2
    n_ind, n_head = 8, 4

    params = init_params(pkey, in_dim, out_dim, hidden_dim,
                         n_attention, n_mlp_layer, n_ind, n_head)
    x = jax.random.normal(xkey, (B, seq, in_dim), jnp.float32)

    fwd = jax.jit(functools.partial(set_transformer, n_head=n_head))
    y = jax.block_until_ready(fwd(x, params))
    assert y.shape == (B, out_dim), y.shape
    assert bool(jnp.all(jnp.isfinite(y)))

    # Parity check against the pure-JAX reference of the PyTorch module.
    y_ref = set_transformer_ref(x, params, n_head)
    err = float(jnp.max(jnp.abs(y - y_ref)))
    assert err < 1e-2, f"kernel/reference mismatch: max abs err = {err}"

    print("KERNEL_OK")
</pallas_src>

<mosaic_0001>
module attributes {stable_mosaic.version = 11 : i64} {
  func.func @_set_transformer_kernel(%arg0: i32, %arg1: memref<1x16x4xf32, #tpu.memory_space<vmem>>, %arg2: memref<8x32xf32, #tpu.memory_space<vmem>>, %arg3: memref<32x32xf32, #tpu.memory_space<vmem>>, %arg4: memref<1x32xf32, #tpu.memory_space<vmem>>, %arg5: memref<4x96xf32, #tpu.memory_space<vmem>>, %arg6: memref<1x96xf32, #tpu.memory_space<vmem>>, %arg7: memref<32x32xf32, #tpu.memory_space<vmem>>, %arg8: memref<1x32xf32, #tpu.memory_space<vmem>>, %arg9: memref<32x64xf32, #tpu.memory_space<vmem>>, %arg10: memref<1x64xf32, #tpu.memory_space<vmem>>, %arg11: memref<32x32xf32, #tpu.memory_space<vmem>>, %arg12: memref<1x32xf32, #tpu.memory_space<vmem>>, %arg13: memref<8x32xf32, #tpu.memory_space<vmem>>, %arg14: memref<32x32xf32, #tpu.memory_space<vmem>>, %arg15: memref<1x32xf32, #tpu.memory_space<vmem>>, %arg16: memref<32x96xf32, #tpu.memory_space<vmem>>, %arg17: memref<1x96xf32, #tpu.memory_space<vmem>>, %arg18: memref<32x32xf32, #tpu.memory_space<vmem>>, %arg19: memref<1x32xf32, #tpu.memory_space<vmem>>, %arg20: memref<32x64xf32, #tpu.memory_space<vmem>>, %arg21: memref<1x64xf32, #tpu.memory_space<vmem>>, %arg22: memref<32x32xf32, #tpu.memory_space<vmem>>, %arg23: memref<1x32xf32, #tpu.memory_space<vmem>>, %arg24: memref<1x32xf32, #tpu.memory_space<vmem>>, %arg25: memref<32x32xf32, #tpu.memory_space<vmem>>, %arg26: memref<1x32xf32, #tpu.memory_space<vmem>>, %arg27: memref<32x64xf32, #tpu.memory_space<vmem>>, %arg28: memref<1x64xf32, #tpu.memory_space<vmem>>, %arg29: memref<32x32xf32, #tpu.memory_space<vmem>>, %arg30: memref<1x32xf32, #tpu.memory_space<vmem>>, %arg31: memref<32x32xf32, #tpu.memory_space<vmem>>, %arg32: memref<1x32xf32, #tpu.memory_space<vmem>>, %arg33: memref<32x128xf32, #tpu.memory_space<vmem>>, %arg34: memref<1x128xf32, #tpu.memory_space<vmem>>, %arg35: memref<1x1x128xf32, #tpu.memory_space<vmem>>) attributes {dimension_semantics = [#tpu.dimension_semantics<parallel>], iteration_bounds = array<i64: 2>, scalar_prefetch = 0 : i64, scratch_operands = 0 : i64, tpu.core_type = #tpu.core_type<tc>, window_params = [{transform_indices = @transform_0, window_bounds = array<i64: 1, 16, 4>}, {pipeline_mode = #tpu.pipeline_mode<synchronous>, transform_indices = @transform_1, window_bounds = array<i64: 8, 32>}, {pipeline_mode = #tpu.pipeline_mode<synchronous>, transform_indices = @transform_2, window_bounds = array<i64: 32, 32>}, {pipeline_mode = #tpu.pipeline_mode<synchronous>, transform_indices = @transform_3, window_bounds = array<i64: 1, 32>}, {pipeline_mode = #tpu.pipeline_mode<synchronous>, transform_indices = @transform_4, window_bounds = array<i64: 4, 96>}, {pipeline_mode = #tpu.pipeline_mode<synchronous>, transform_indices = @transform_5, window_bounds = array<i64: 1, 96>}, {pipeline_mode = #tpu.pipeline_mode<synchronous>, transform_indices = @transform_6, window_bounds = array<i64: 32, 32>}, {pipeline_mode = #tpu.pipeline_mode<synchronous>, transform_indices = @transform_7, window_bounds = array<i64: 1, 32>}, {pipeline_mode = #tpu.pipeline_mode<synchronous>, transform_indices = @transform_8, window_bounds = array<i64: 32, 64>}, {pipeline_mode = #tpu.pipeline_mode<synchronous>, transform_indices = @transform_9, window_bounds = array<i64: 1, 64>}, {pipeline_mode = #tpu.pipeline_mode<synchronous>, transform_indices = @transform_10, window_bounds = array<i64: 32, 32>}, {pipeline_mode = #tpu.pipeline_mode<synchronous>, transform_indices = @transform_11, window_bounds = array<i64: 1, 32>}, {pipeline_mode = #tpu.pipeline_mode<synchronous>, transform_indices = @transform_12, window_bounds = array<i64: 8, 32>}, {pipeline_mode = #tpu.pipeline_mode<synchronous>, transform_indices = @transform_13, window_bounds = array<i64: 32, 32>}, {pipeline_mode = #tpu.pipeline_mode<synchronous>, transform_indices = @transform_14, window_bounds = array<i64: 1, 32>}, {pipeline_mode = #tpu.pipeline_mode<synchronous>, transform_indices = @transform_15, window_bounds = array<i64: 32, 96>}, {pipeline_mode = #tpu.pipeline_mode<synchronous>, transform_indices = @transform_16, window_bounds = array<i64: 1, 96>}, {pipeline_mode = #tpu.pipeline_mode<synchronous>, transform_indices = @transform_17, window_bounds = array<i64: 32, 32>}, {pipeline_mode = #tpu.pipeline_mode<synchronous>, transform_indices = @transform_18, window_bounds = array<i64: 1, 32>}, {pipeline_mode = #tpu.pipeline_mode<synchronous>, transform_indices = @transform_19, window_bounds = array<i64: 32, 64>}, {pipeline_mode = #tpu.pipeline_mode<synchronous>, transform_indices = @transform_20, window_bounds = array<i64: 1, 64>}, {pipeline_mode = #tpu.pipeline_mode<synchronous>, transform_indices = @transform_21, window_bounds = array<i64: 32, 32>}, {pipeline_mode = #tpu.pipeline_mode<synchronous>, transform_indices = @transform_22, window_bounds = array<i64: 1, 32>}, {pipeline_mode = #tpu.pipeline_mode<synchronous>, transform_indices = @transform_23, window_bounds = array<i64: 1, 32>}, {pipeline_mode = #tpu.pipeline_mode<synchronous>, transform_indices = @transform_24, window_bounds = array<i64: 32, 32>}, {pipeline_mode = #tpu.pipeline_mode<synchronous>, transform_indices = @transform_25, window_bounds = array<i64: 1, 32>}, {pipeline_mode = #tpu.pipeline_mode<synchronous>, transform_indices = @transform_26, window_bounds = array<i64: 32, 64>}, {pipeline_mode = #tpu.pipeline_mode<synchronous>, transform_indices = @transform_27, window_bounds = array<i64: 1, 64>}, {pipeline_mode = #tpu.pipeline_mode<synchronous>, transform_indices = @transform_28, window_bounds = array<i64: 32, 32>}, {pipeline_mode = #tpu.pipeline_mode<synchronous>, transform_indices = @transform_29, window_bounds = array<i64: 1, 32>}, {pipeline_mode = #tpu.pipeline_mode<synchronous>, transform_indices = @transform_30, window_bounds = array<i64: 32, 32>}, {pipeline_mode = #tpu.pipeline_mode<synchronous>, transform_indices = @transform_31, window_bounds = array<i64: 1, 32>}, {pipeline_mode = #tpu.pipeline_mode<synchronous>, transform_indices = @transform_32, window_bounds = array<i64: 32, 128>}, {pipeline_mode = #tpu.pipeline_mode<synchronous>, transform_indices = @transform_33, window_bounds = array<i64: 1, 128>}, {transform_indices = @transform_34, window_bounds = array<i64: 1, 1, 128>}]} {
    %c0 = arith.constant 0 : index
    %c0_0 = arith.constant 0 : index
    %c0_1 = arith.constant 0 : index
    %0 = vector.load %arg1[%c0, %c0_0, %c0_1] : memref<1x16x4xf32, #tpu.memory_space<vmem>>, vector<1x16x4xf32>
    %1 = vector.shape_cast %0 : vector<1x16x4xf32> to vector<16x4xf32>
    %c0_2 = arith.constant 0 : index
    %c0_3 = arith.constant 0 : index
    %2 = vector.load %arg5[%c0_2, %c0_3] : memref<4x96xf32, #tpu.memory_space<vmem>>, vector<4x96xf32>
    %cst = arith.constant dense<0.000000e+00> : vector<16x96xf32>
    %3 = tpu.matmul %1, %2, %cst {dimension_numbers = #tpu.dot_dimension_numbers<[1], [0], [0], [1], [0, 0, 1, 1], [], []>} : vector<16x4xf32>, vector<4x96xf32>, vector<16x96xf32> -> vector<16x96xf32>
    %c0_4 = arith.constant 0 : index
    %c0_5 = arith.constant 0 : index
    %4 = vector.load %arg6[%c0_4, %c0_5] : memref<1x96xf32, #tpu.memory_space<vmem>>, vector<1x96xf32>
    %5 = vector.broadcast %4 : vector<1x96xf32> to vector<16x96xf32>
    %6 = arith.addf %3, %5 : vector<16x96xf32>
    %7 = vector.extract_strided_slice %6 {offsets = [0, 0], sizes = [16, 32], strides = [1, 1]} : vector<16x96xf32> to vector<16x32xf32>
    %8 = vector.shape_cast %7 : vector<16x32xf32> to vector<1x16x32xf32>
    %9 = vector.extract_strided_slice %6 {offsets = [0, 32], sizes = [16, 32], strides = [1, 1]} : vector<16x96xf32> to vector<16x32xf32>
    %10 = vector.shape_cast %9 : vector<16x32xf32> to vector<1x16x32xf32>
    %11 = vector.extract_strided_slice %6 {offsets = [0, 64], sizes = [16, 32], strides = [1, 1]} : vector<16x96xf32> to vector<16x32xf32>
    %12 = vector.shape_cast %11 : vector<16x32xf32> to vector<1x16x32xf32>
    %c0_6 = arith.constant 0 : index
    %c0_7 = arith.constant 0 : index
    %13 = vector.load %arg2[%c0_6, %c0_7] : memref<8x32xf32, #tpu.memory_space<vmem>>, vector<8x32xf32>
    %c0_8 = arith.constant 0 : index
    %c0_9 = arith.constant 0 : index
    %14 = vector.load %arg3[%c0_8, %c0_9] : memref<32x32xf32, #tpu.memory_space<vmem>>, vector<32x32xf32>
    %cst_10 = arith.constant dense<0.000000e+00> : vector<8x32xf32>
    %15 = tpu.matmul %13, %14, %cst_10 {dimension_numbers = #tpu.dot_dimension_numbers<[1], [0], [0], [1], [0, 0, 1, 1], [], []>} : vector<8x32xf32>, vector<32x32xf32>, vector<8x32xf32> -> vector<8x32xf32>
    %c0_11 = arith.constant 0 : index
    %c0_12 = arith.constant 0 : index
    %16 = vector.load %arg4[%c0_11, %c0_12] : memref<1x32xf32, #tpu.memory_space<vmem>>, vector<1x32xf32>
    %17 = vector.broadcast %16 : vector<1x32xf32> to vector<8x32xf32>
    %18 = arith.addf %15, %17 : vector<8x32xf32>
    %19 = vector.shape_cast %18 : vector<8x32xf32> to vector<1x8x32xf32>
    %20 = vector.extract_strided_slice %19 {offsets = [0, 0, 0], sizes = [1, 8, 8], strides = [1, 1, 1]} : vector<1x8x32xf32> to vector<1x8x8xf32>
    %21 = vector.extract_strided_slice %8 {offsets = [0, 0, 0], sizes = [1, 16, 8], strides = [1, 1, 1]} : vector<1x16x32xf32> to vector<1x16x8xf32>
    %22 = vector.extract_strided_slice %10 {offsets = [0, 0, 0], sizes = [1, 16, 8], strides = [1, 1, 1]} : vector<1x16x32xf32> to vector<1x16x8xf32>
    "tpu.trace_start"() <{level = 10 : i32, message = "bqd,bkd->bqk"}> : () -> ()
    %cst_13 = arith.constant dense<0.000000e+00> : vector<1x8x16xf32>
    %23 = tpu.matmul %20, %21, %cst_13 {dimension_numbers = #tpu.dot_dimension_numbers<[2], [2], [1], [1], [0, 0, 0, 1, 1, 1], [0], [0]>} : vector<1x8x8xf32>, vector<1x16x8xf32>, vector<1x8x16xf32> -> vector<1x8x16xf32>
    "tpu.trace_stop"() : () -> ()
    %cst_14 = arith.constant 0.176776692 : f32
    %24 = vector.broadcast %cst_14 : f32 to vector<1x8x16xf32>
    %25 = arith.mulf %23, %24 : vector<1x8x16xf32>
    %cst_15 = arith.constant dense<0xFF800000> : vector<1x8xf32>
    %26 = vector.multi_reduction <maximumf>, %25, %cst_15 [2] : vector<1x8x16xf32> to vector<1x8xf32>
    %27 = vector.shape_cast %26 : vector<1x8xf32> to vector<1x8x1xf32>
    %28 = vector.broadcast %27 : vector<1x8x1xf32> to vector<1x8x16xf32>
    %29 = arith.subf %25, %28 : vector<1x8x16xf32>
    %30 = math.exp %29 : vector<1x8x16xf32>
    %cst_16 = arith.constant dense<0.000000e+00> : vector<1x8xf32>
    %31 = vector.multi_reduction <add>, %30, %cst_16 [2] : vector<1x8x16xf32> to vector<1x8xf32>
    %32 = vector.shape_cast %31 : vector<1x8xf32> to vector<1x8x1xf32>
    %33 = vector.broadcast %32 : vector<1x8x1xf32> to vector<1x8x16xf32>
    %34 = arith.divf %30, %33 : vector<1x8x16xf32>
    "tpu.trace_start"() <{level = 10 : i32, message = "bqk,bkd->bqd"}> : () -> ()
    %cst_17 = arith.constant dense<0.000000e+00> : vector<1x8x8xf32>
    %35 = tpu.matmul %34, %22, %cst_17 {dimension_numbers = #tpu.dot_dimension_numbers<[2], [1], [1], [2], [0, 0, 0, 1, 1, 2], [0], [0]>} : vector<1x8x16xf32>, vector<1x16x8xf32>, vector<1x8x8xf32> -> vector<1x8x8xf32>
    "tpu.trace_stop"() : () -> ()
    %36 = arith.addf %20, %35 : vector<1x8x8xf32>
    %37 = vector.extract_strided_slice %19 {offsets = [0, 0, 8], sizes = [1, 8, 8], strides = [1, 1, 1]} : vector<1x8x32xf32> to vector<1x8x8xf32>
    %38 = vector.extract_strided_slice %8 {offsets = [0, 0, 8], sizes = [1, 16, 8], strides = [1, 1, 1]} : vector<1x16x32xf32> to vector<1x16x8xf32>
    %39 = vector.extract_strided_slice %10 {offsets = [0, 0, 8], sizes = [1, 16, 8], strides = [1, 1, 1]} : vector<1x16x32xf32> to vector<1x16x8xf32>
    "tpu.trace_start"() <{level = 10 : i32, message = "bqd,bkd->bqk"}> : () -> ()
    %cst_18 = arith.constant dense<0.000000e+00> : vector<1x8x16xf32>
    %40 = tpu.matmul %37, %38, %cst_18 {dimension_numbers = #tpu.dot_dimension_numbers<[2], [2], [1], [1], [0, 0, 0, 1, 1, 1], [0], [0]>} : vector<1x8x8xf32>, vector<1x16x8xf32>, vector<1x8x16xf32> -> vector<1x8x16xf32>
    "tpu.trace_stop"() : () -> ()
    %cst_19 = arith.constant 0.176776692 : f32
    %41 = vector.broadcast %cst_19 : f32 to vector<1x8x16xf32>
    %42 = arith.mulf %40, %41 : vector<1x8x16xf32>
    %cst_20 = arith.constant dense<0xFF800000> : vector<1x8xf32>
    %43 = vector.multi_reduction <maximumf>, %42, %cst_20 [2] : vector<1x8x16xf32> to vector<1x8xf32>
    %44 = vector.shape_cast %43 : vector<1x8xf32> to vector<1x8x1xf32>
    %45 = vector.broadcast %44 : vector<1x8x1xf32> to vector<1x8x16xf32>
    %46 = arith.subf %42, %45 : vector<1x8x16xf32>
    %47 = math.exp %46 : vector<1x8x16xf32>
    %cst_21 = arith.constant dense<0.000000e+00> : vector<1x8xf32>
    %48 = vector.multi_reduction <add>, %47, %cst_21 [2] : vector<1x8x16xf32> to vector<1x8xf32>
    %49 = vector.shape_cast %48 : vector<1x8xf32> to vector<1x8x1xf32>
    %50 = vector.broadcast %49 : vector<1x8x1xf32> to vector<1x8x16xf32>
    %51 = arith.divf %47, %50 : vector<1x8x16xf32>
    "tpu.trace_start"() <{level = 10 : i32, message = "bqk,bkd->bqd"}> : () -> ()
    %cst_22 = arith.constant dense<0.000000e+00> : vector<1x8x8xf32>
    %52 = tpu.matmul %51, %39, %cst_22 {dimension_numbers = #tpu.dot_dimension_numbers<[2], [1], [1], [2], [0, 0, 0, 1, 1, 2], [0], [0]>} : vector<1x8x16xf32>, vector<1x16x8xf32>, vector<1x8x8xf32> -> vector<1x8x8xf32>
    "tpu.trace_stop"() : () -> ()
    %53 = arith.addf %37, %52 : vector<1x8x8xf32>
    %54 = vector.extract_strided_slice %19 {offsets = [0, 0, 16], sizes = [1, 8, 8], strides = [1, 1, 1]} : vector<1x8x32xf32> to vector<1x8x8xf32>
    %55 = vector.extract_strided_slice %8 {offsets = [0, 0, 16], sizes = [1, 16, 8], strides = [1, 1, 1]} : vector<1x16x32xf32> to vector<1x16x8xf32>
    %56 = vector.extract_strided_slice %10 {offsets = [0, 0, 16], sizes = [1, 16, 8], strides = [1, 1, 1]} : vector<1x16x32xf32> to vector<1x16x8xf32>
    "tpu.trace_start"() <{level = 10 : i32, message = "bqd,bkd->bqk"}> : () -> ()
    %cst_23 = arith.constant dense<0.000000e+00> : vector<1x8x16xf32>
    %57 = tpu.matmul %54, %55, %cst_23 {dimension_numbers = #tpu.dot_dimension_numbers<[2], [2], [1], [1], [0, 0, 0, 1, 1, 1], [0], [0]>} : vector<1x8x8xf32>, vector<1x16x8xf32>, vector<1x8x16xf32> -> vector<1x8x16xf32>
    "tpu.trace_stop"() : () -> ()
    %cst_24 = arith.constant 0.176776692 : f32
    %58 = vector.broadcast %cst_24 : f32 to vector<1x8x16xf32>
    %59 = arith.mulf %57, %58 : vector<1x8x16xf32>
    %cst_25 = arith.constant dense<0xFF800000> : vector<1x8xf32>
    %60 = vector.multi_reduction <maximumf>, %59, %cst_25 [2] : vector<1x8x16xf32> to vector<1x8xf32>
    %61 = vector.shape_cast %60 : vector<1x8xf32> to vector<1x8x1xf32>
    %62 = vector.broadcast %61 : vector<1x8x1xf32> to vector<1x8x16xf32>
    %63 = arith.subf %59, %62 : vector<1x8x16xf32>
    %64 = math.exp %63 : vector<1x8x16xf32>
    %cst_26 = arith.constant dense<0.000000e+00> : vector<1x8xf32>
    %65 = vector.multi_reduction <add>, %64, %cst_26 [2] : vector<1x8x16xf32> to vector<1x8xf32>
    %66 = vector.shape_cast %65 : vector<1x8xf32> to vector<1x8x1xf32>
    %67 = vector.broadcast %66 : vector<1x8x1xf32> to vector<1x8x16xf32>
    %68 = arith.divf %64, %67 : vector<1x8x16xf32>
    "tpu.trace_start"() <{level = 10 : i32, message = "bqk,bkd->bqd"}> : () -> ()
    %cst_27 = arith.constant dense<0.000000e+00> : vector<1x8x8xf32>
    %69 = tpu.matmul %68, %56, %cst_27 {dimension_numbers = #tpu.dot_dimension_numbers<[2], [1], [1], [2], [0, 0, 0, 1, 1, 2], [0], [0]>} : vector<1x8x16xf32>, vector<1x16x8xf32>, vector<1x8x8xf32> -> vector<1x8x8xf32>
    "tpu.trace_stop"() : () -> ()
    %70 = arith.addf %54, %69 : vector<1x8x8xf32>
    %71 = vector.extract_strided_slice %19 {offsets = [0, 0, 24], sizes = [1, 8, 8], strides = [1, 1, 1]} : vector<1x8x32xf32> to vector<1x8x8xf32>
    %72 = vector.extract_strided_slice %8 {offsets = [0, 0, 24], sizes = [1, 16, 8], strides = [1, 1, 1]} : vector<1x16x32xf32> to vector<1x16x8xf32>
    %73 = vector.extract_strided_slice %10 {offsets = [0, 0, 24], sizes = [1, 16, 8], strides = [1, 1, 1]} : vector<1x16x32xf32> to vector<1x16x8xf32>
    "tpu.trace_start"() <{level = 10 : i32, message = "bqd,bkd->bqk"}> : () -> ()
    %cst_28 = arith.constant dense<0.000000e+00> : vector<1x8x16xf32>
    %74 = tpu.matmul %71, %72, %cst_28 {dimension_numbers = #tpu.dot_dimension_numbers<[2], [2], [1], [1], [0, 0, 0, 1, 1, 1], [0], [0]>} : vector<1x8x8xf32>, vector<1x16x8xf32>, vector<1x8x16xf32> -> vector<1x8x16xf32>
    "tpu.trace_stop"() : () -> ()
    %cst_29 = arith.constant 0.176776692 : f32
    %75 = vector.broadcast %cst_29 : f32 to vector<1x8x16xf32>
    %76 = arith.mulf %74, %75 : vector<1x8x16xf32>
    %cst_30 = arith.constant dense<0xFF800000> : vector<1x8xf32>
    %77 = vector.multi_reduction <maximumf>, %76, %cst_30 [2] : vector<1x8x16xf32> to vector<1x8xf32>
    %78 = vector.shape_cast %77 : vector<1x8xf32> to vector<1x8x1xf32>
    %79 = vector.broadcast %78 : vector<1x8x1xf32> to vector<1x8x16xf32>
    %80 = arith.subf %76, %79 : vector<1x8x16xf32>
    %81 = math.exp %80 : vector<1x8x16xf32>
    %cst_31 = arith.constant dense<0.000000e+00> : vector<1x8xf32>
    %82 = vector.multi_reduction <add>, %81, %cst_31 [2] : vector<1x8x16xf32> to vector<1x8xf32>
    %83 = vector.shape_cast %82 : vector<1x8xf32> to vector<1x8x1xf32>
    %84 = vector.broadcast %83 : vector<1x8x1xf32> to vector<1x8x16xf32>
    %85 = arith.divf %81, %84 : vector<1x8x16xf32>
    "tpu.trace_start"() <{level = 10 : i32, message = "bqk,bkd->bqd"}> : () -> ()
    %cst_32 = arith.constant dense<0.000000e+00> : vector<1x8x8xf32>
    %86 = tpu.matmul %85, %73, %cst_32 {dimension_numbers = #tpu.dot_dimension_numbers<[2], [1], [1], [2], [0, 0, 0, 1, 1, 2], [0], [0]>} : vector<1x8x16xf32>, vector<1x16x8xf32>, vector<1x8x8xf32> -> vector<1x8x8xf32>
    "tpu.trace_stop"() : () -> ()
    %87 = arith.addf %71, %86 : vector<1x8x8xf32>
    %88 = tpu.concatenate %36, %53, %70, %87 in 2 : vector<1x8x8xf32>, vector<1x8x8xf32>, vector<1x8x8xf32>, vector<1x8x8xf32> -> vector<1x8x32xf32>
    %89 = vector.shape_cast %88 : vector<1x8x32xf32> to vector<8x32xf32>
    %c0_33 = arith.constant 0 : index
    %c0_34 = arith.constant 0 : index
    %90 = vector.load %arg7[%c0_33, %c0_34] : memref<32x32xf32, #tpu.memory_space<vmem>>, vector<32x32xf32>
    %cst_35 = arith.constant dense<0.000000e+00> : vector<8x32xf32>
    %91 = tpu.matmul %89, %90, %cst_35 {dimension_numbers = #tpu.dot_dimension_numbers<[1], [0], [0], [1], [0, 0, 1, 1], [], []>} : vector<8x32xf32>, vector<32x32xf32>, vector<8x32xf32> -> vector<8x32xf32>
    %c0_36 = arith.constant 0 : index
    %c0_37 = arith.constant 0 : index
    %92 = vector.load %arg8[%c0_36, %c0_37] : memref<1x32xf32, #tpu.memory_space<vmem>>, vector<1x32xf32>
    %93 = vector.broadcast %92 : vector<1x32xf32> to vector<8x32xf32>
    %94 = arith.addf %91, %93 : vector<8x32xf32>
    %cst_38 = arith.constant 0.000000e+00 : f32
    %95 = vector.broadcast %cst_38 : f32 to vector<8x32xf32>
    %96 = arith.maximumf %94, %95 : vector<8x32xf32>
    %97 = arith.addf %89, %96 : vector<8x32xf32>
    %c0_39 = arith.constant 0 : index
    %c0_40 = arith.constant 0 : index
    %98 = vector.load %arg9[%c0_39, %c0_40] : memref<32x64xf32, #tpu.memory_space<vmem>>, vector<32x64xf32>
    %cst_41 = arith.constant dense<0.000000e+00> : vector<8x64xf32>
    %99 = tpu.matmul %97, %98, %cst_41 {dimension_numbers = #tpu.dot_dimension_numbers<[1], [0], [0], [1], [0, 0, 1, 1], [], []>} : vector<8x32xf32>, vector<32x64xf32>, vector<8x64xf32> -> vector<8x64xf32>
    %c0_42 = arith.constant 0 : index
    %c0_43 = arith.constant 0 : index
    %100 = vector.load %arg10[%c0_42, %c0_43] : memref<1x64xf32, #tpu.memory_space<vmem>>, vector<1x64xf32>
    %101 = vector.broadcast %100 : vector<1x64xf32> to vector<8x64xf32>
    %102 = arith.addf %99, %101 : vector<8x64xf32>
    %103 = vector.extract_strided_slice %102 {offsets = [0, 0], sizes = [8, 32], strides = [1, 1]} : vector<8x64xf32> to vector<8x32xf32>
    %104 = vector.shape_cast %103 : vector<8x32xf32> to vector<1x8x32xf32>
    %105 = vector.extract_strided_slice %102 {offsets = [0, 32], sizes = [8, 32], strides = [1, 1]} : vector<8x64xf32> to vector<8x32xf32>
    %106 = vector.shape_cast %105 : vector<8x32xf32> to vector<1x8x32xf32>
    %107 = vector.extract_strided_slice %12 {offsets = [0, 0, 0], sizes = [1, 16, 8], strides = [1, 1, 1]} : vector<1x16x32xf32> to vector<1x16x8xf32>
    %108 = vector.extract_strided_slice %104 {offsets = [0, 0, 0], sizes = [1, 8, 8], strides = [1, 1, 1]} : vector<1x8x32xf32> to vector<1x8x8xf32>
    %109 = vector.extract_strided_slice %106 {offsets = [0, 0, 0], sizes = [1, 8, 8], strides = [1, 1, 1]} : vector<1x8x32xf32> to vector<1x8x8xf32>
    "tpu.trace_start"() <{level = 10 : i32, message = "bqd,bkd->bqk"}> : () -> ()
    %cst_44 = arith.constant dense<0.000000e+00> : vector<1x16x8xf32>
    %110 = tpu.matmul %107, %108, %cst_44 {dimension_numbers = #tpu.dot_dimension_numbers<[2], [2], [1], [1], [0, 0, 0, 1, 1, 1], [0], [0]>} : vector<1x16x8xf32>, vector<1x8x8xf32>, vector<1x16x8xf32> -> vector<1x16x8xf32>
    "tpu.trace_stop"() : () -> ()
    %cst_45 = arith.constant 0.176776692 : f32
    %111 = vector.broadcast %cst_45 : f32 to vector<1x16x8xf32>
    %112 = arith.mulf %110, %111 : vector<1x16x8xf32>
    %cst_46 = arith.constant dense<0xFF800000> : vector<1x16xf32>
    %113 = vector.multi_reduction <maximumf>, %112, %cst_46 [2] : vector<1x16x8xf32> to vector<1x16xf32>
    %114 = vector.shape_cast %113 : vector<1x16xf32> to vector<1x16x1xf32>
    %115 = vector.broadcast %114 : vector<1x16x1xf32> to vector<1x16x8xf32>
    %116 = arith.subf %112, %115 : vector<1x16x8xf32>
    %117 = math.exp %116 : vector<1x16x8xf32>
    %cst_47 = arith.constant dense<0.000000e+00> : vector<1x16xf32>
    %118 = vector.multi_reduction <add>, %117, %cst_47 [2] : vector<1x16x8xf32> to vector<1x16xf32>
    %119 = vector.shape_cast %118 : vector<1x16xf32> to vector<1x16x1xf32>
    %120 = vector.broadcast %119 : vector<1x16x1xf32> to vector<1x16x8xf32>
    %121 = arith.divf %117, %120 : vector<1x16x8xf32>
    "tpu.trace_start"() <{level = 10 : i32, message = "bqk,bkd->bqd"}> : () -> ()
    %cst_48 = arith.constant dense<0.000000e+00> : vector<1x16x8xf32>
    %122 = tpu.matmul %121, %109, %cst_48 {dimension_numbers = #tpu.dot_dimension_numbers<[2], [1], [1], [2], [0, 0, 0, 1, 1, 2], [0], [0]>} : vector<1x16x8xf32>, vector<1x8x8xf32>, vector<1x16x8xf32> -> vector<1x16x8xf32>
    "tpu.trace_stop"() : () -> ()
    %123 = arith.addf %107, %122 : vector<1x16x8xf32>
    %124 = vector.extract_strided_slice %12 {offsets = [0, 0, 8], sizes = [1, 16, 8], strides = [1, 1, 1]} : vector<1x16x32xf32> to vector<1x16x8xf32>
    %125 = vector.extract_strided_slice %104 {offsets = [0, 0, 8], sizes = [1, 8, 8], strides = [1, 1, 1]} : vector<1x8x32xf32> to vector<1x8x8xf32>
    %126 = vector.extract_strided_slice %106 {offsets = [0, 0, 8], sizes = [1, 8, 8], strides = [1, 1, 1]} : vector<1x8x32xf32> to vector<1x8x8xf32>
    "tpu.trace_start"() <{level = 10 : i32, message = "bqd,bkd->bqk"}> : () -> ()
    %cst_49 = arith.constant dense<0.000000e+00> : vector<1x16x8xf32>
    %127 = tpu.matmul %124, %125, %cst_49 {dimension_numbers = #tpu.dot_dimension_numbers<[2], [2], [1], [1], [0, 0, 0, 1, 1, 1], [0], [0]>} : vector<1x16x8xf32>, vector<1x8x8xf32>, vector<1x16x8xf32> -> vector<1x16x8xf32>
    "tpu.trace_stop"() : () -> ()
    %cst_50 = arith.constant 0.176776692 : f32
    %128 = vector.broadcast %cst_50 : f32 to vector<1x16x8xf32>
    %129 = arith.mulf %127, %128 : vector<1x16x8xf32>
    %cst_51 = arith.constant dense<0xFF800000> : vector<1x16xf32>
    %130 = vector.multi_reduction <maximumf>, %129, %cst_51 [2] : vector<1x16x8xf32> to vector<1x16xf32>
    %131 = vector.shape_cast %130 : vector<1x16xf32> to vector<1x16x1xf32>
    %132 = vector.broadcast %131 : vector<1x16x1xf32> to vector<1x16x8xf32>
    %133 = arith.subf %129, %132 : vector<1x16x8xf32>
    %134 = math.exp %133 : vector<1x16x8xf32>
    %cst_52 = arith.constant dense<0.000000e+00> : vector<1x16xf32>
    %135 = vector.multi_reduction <add>, %134, %cst_52 [2] : vector<1x16x8xf32> to vector<1x16xf32>
    %136 = vector.shape_cast %135 : vector<1x16xf32> to vector<1x16x1xf32>
    %137 = vector.broadcast %136 : vector<1x16x1xf32> to vector<1x16x8xf32>
    %138 = arith.divf %134, %137 : vector<1x16x8xf32>
    "tpu.trace_start"() <{level = 10 : i32, message = "bqk,bkd->bqd"}> : () -> ()
    %cst_53 = arith.constant dense<0.000000e+00> : vector<1x16x8xf32>
    %139 = tpu.matmul %138, %126, %cst_53 {dimension_numbers = #tpu.dot_dimension_numbers<[2], [1], [1], [2], [0, 0, 0, 1, 1, 2], [0], [0]>} : vector<1x16x8xf32>, vector<1x8x8xf32>, vector<1x16x8xf32> -> vector<1x16x8xf32>
    "tpu.trace_stop"() : () -> ()
    %140 = arith.addf %124, %139 : vector<1x16x8xf32>
    %141 = vector.extract_strided_slice %12 {offsets = [0, 0, 16], sizes = [1, 16, 8], strides = [1, 1, 1]} : vector<1x16x32xf32> to vector<1x16x8xf32>
    %142 = vector.extract_strided_slice %104 {offsets = [0, 0, 16], sizes = [1, 8, 8], strides = [1, 1, 1]} : vector<1x8x32xf32> to vector<1x8x8xf32>
    %143 = vector.extract_strided_slice %106 {offsets = [0, 0, 16], sizes = [1, 8, 8], strides = [1, 1, 1]} : vector<1x8x32xf32> to vector<1x8x8xf32>
    "tpu.trace_start"() <{level = 10 : i32, message = "bqd,bkd->bqk"}> : () -> ()
    %cst_54 = arith.constant dense<0.000000e+00> : vector<1x16x8xf32>
    %144 = tpu.matmul %141, %142, %cst_54 {dimension_numbers = #tpu.dot_dimension_numbers<[2], [2], [1], [1], [0, 0, 0, 1, 1, 1], [0], [0]>} : vector<1x16x8xf32>, vector<1x8x8xf32>, vector<1x16x8xf32> -> vector<1x16x8xf32>
    "tpu.trace_stop"() : () -> ()
    %cst_55 = arith.constant 0.176776692 : f32
    %145 = vector.broadcast %cst_55 : f32 to vector<1x16x8xf32>
    %146 = arith.mulf %144, %145 : vector<1x16x8xf32>
    %cst_56 = arith.constant dense<0xFF800000> : vector<1x16xf32>
    %147 = vector.multi_reduction <maximumf>, %146, %cst_56 [2] : vector<1x16x8xf32> to vector<1x16xf32>
    %148 = vector.shape_cast %147 : vector<1x16xf32> to vector<1x16x1xf32>
    %149 = vector.broadcast %148 : vector<1x16x1xf32> to vector<1x16x8xf32>
    %150 = arith.subf %146, %149 : vector<1x16x8xf32>
    %151 = math.exp %150 : vector<1x16x8xf32>
    %cst_57 = arith.constant dense<0.000000e+00> : vector<1x16xf32>
    %152 = vector.multi_reduction <add>, %151, %cst_57 [2] : vector<1x16x8xf32> to vector<1x16xf32>
    %153 = vector.shape_cast %152 : vector<1x16xf32> to vector<1x16x1xf32>
    %154 = vector.broadcast %153 : vector<1x16x1xf32> to vector<1x16x8xf32>
    %155 = arith.divf %151, %154 : vector<1x16x8xf32>
    "tpu.trace_start"() <{level = 10 : i32, message = "bqk,bkd->bqd"}> : () -> ()
    %cst_58 = arith.constant dense<0.000000e+00> : vector<1x16x8xf32>
    %156 = tpu.matmul %155, %143, %cst_58 {dimension_numbers = #tpu.dot_dimension_numbers<[2], [1], [1], [2], [0, 0, 0, 1, 1, 2], [0], [0]>} : vector<1x16x8xf32>, vector<1x8x8xf32>, vector<1x16x8xf32> -> vector<1x16x8xf32>
    "tpu.trace_stop"() : () -> ()
    %157 = arith.addf %141, %156 : vector<1x16x8xf32>
    %158 = vector.extract_strided_slice %12 {offsets = [0, 0, 24], sizes = [1, 16, 8], strides = [1, 1, 1]} : vector<1x16x32xf32> to vector<1x16x8xf32>
    %159 = vector.extract_strided_slice %104 {offsets = [0, 0, 24], sizes = [1, 8, 8], strides = [1, 1, 1]} : vector<1x8x32xf32> to vector<1x8x8xf32>
    %160 = vector.extract_strided_slice %106 {offsets = [0, 0, 24], sizes = [1, 8, 8], strides = [1, 1, 1]} : vector<1x8x32xf32> to vector<1x8x8xf32>
    "tpu.trace_start"() <{level = 10 : i32, message = "bqd,bkd->bqk"}> : () -> ()
    %cst_59 = arith.constant dense<0.000000e+00> : vector<1x16x8xf32>
    %161 = tpu.matmul %158, %159, %cst_59 {dimension_numbers = #tpu.dot_dimension_numbers<[2], [2], [1], [1], [0, 0, 0, 1, 1, 1], [0], [0]>} : vector<1x16x8xf32>, vector<1x8x8xf32>, vector<1x16x8xf32> -> vector<1x16x8xf32>
    "tpu.trace_stop"() : () -> ()
    %cst_60 = arith.constant 0.176776692 : f32
    %162 = vector.broadcast %cst_60 : f32 to vector<1x16x8xf32>
    %163 = arith.mulf %161, %162 : vector<1x16x8xf32>
    %cst_61 = arith.constant dense<0xFF800000> : vector<1x16xf32>
    %164 = vector.multi_reduction <maximumf>, %163, %cst_61 [2] : vector<1x16x8xf32> to vector<1x16xf32>
    %165 = vector.shape_cast %164 : vector<1x16xf32> to vector<1x16x1xf32>
    %166 = vector.broadcast %165 : vector<1x16x1xf32> to vector<1x16x8xf32>
    %167 = arith.subf %163, %166 : vector<1x16x8xf32>
    %168 = math.exp %167 : vector<1x16x8xf32>
    %cst_62 = arith.constant dense<0.000000e+00> : vector<1x16xf32>
    %169 = vector.multi_reduction <add>, %168, %cst_62 [2] : vector<1x16x8xf32> to vector<1x16xf32>
    %170 = vector.shape_cast %169 : vector<1x16xf32> to vector<1x16x1xf32>
    %171 = vector.broadcast %170 : vector<1x16x1xf32> to vector<1x16x8xf32>
    %172 = arith.divf %168, %171 : vector<1x16x8xf32>
    "tpu.trace_start"() <{level = 10 : i32, message = "bqk,bkd->bqd"}> : () -> ()
    %cst_63 = arith.constant dense<0.000000e+00> : vector<1x16x8xf32>
    %173 = tpu.matmul %172, %160, %cst_63 {dimension_numbers = #tpu.dot_dimension_numbers<[2], [1], [1], [2], [0, 0, 0, 1, 1, 2], [0], [0]>} : vector<1x16x8xf32>, vector<1x8x8xf32>, vector<1x16x8xf32> -> vector<1x16x8xf32>
    "tpu.trace_stop"() : () -> ()
    %174 = arith.addf %158, %173 : vector<1x16x8xf32>
    %175 = tpu.concatenate %123, %140, %157, %174 in 2 : vector<1x16x8xf32>, vector<1x16x8xf32>, vector<1x16x8xf32>, vector<1x16x8xf32> -> vector<1x16x32xf32>
    %176 = vector.shape_cast %175 : vector<1x16x32xf32> to vector<16x32xf32>
    %c0_64 = arith.constant 0 : index
    %c0_65 = arith.constant 0 : index
    %177 = vector.load %arg11[%c0_64, %c0_65] : memref<32x32xf32, #tpu.memory_space<vmem>>, vector<32x32xf32>
    %cst_66 = arith.constant dense<0.000000e+00> : vector<16x32xf32>
    %178 = tpu.matmul %176, %177, %cst_66 {dimension_numbers = #tpu.dot_dimension_numbers<[1], [0], [0], [1], [0, 0, 1, 1], [], []>} : vector<16x32xf32>, vector<32x32xf32>, vector<16x32xf32> -> vector<16x32xf32>
    %c0_67 = arith.constant 0 : index
    %c0_68 = arith.constant 0 : index
    %179 = vector.load %arg12[%c0_67, %c0_68] : memref<1x32xf32, #tpu.memory_space<vmem>>, vector<1x32xf32>
    %180 = vector.broadcast %179 : vector<1x32xf32> to vector<16x32xf32>
    %181 = arith.addf %178, %180 : vector<16x32xf32>
    %cst_69 = arith.constant 0.000000e+00 : f32
    %182 = vector.broadcast %cst_69 : f32 to vector<16x32xf32>
    %183 = arith.maximumf %181, %182 : vector<16x32xf32>
    %184 = arith.addf %176, %183 : vector<16x32xf32>
    %c0_70 = arith.constant 0 : index
    %c0_71 = arith.constant 0 : index
    %185 = vector.load %arg16[%c0_70, %c0_71] : memref<32x96xf32, #tpu.memory_space<vmem>>, vector<32x96xf32>
    %cst_72 = arith.constant dense<0.000000e+00> : vector<16x96xf32>
    %186 = tpu.matmul %184, %185, %cst_72 {dimension_numbers = #tpu.dot_dimension_numbers<[1], [0], [0], [1], [0, 0, 1, 1], [], []>} : vector<16x32xf32>, vector<32x96xf32>, vector<16x96xf32> -> vector<16x96xf32>
    %c0_73 = arith.constant 0 : index
    %c0_74 = arith.constant 0 : index
    %187 = vector.load %arg17[%c0_73, %c0_74] : memref<1x96xf32, #tpu.memory_space<vmem>>, vector<1x96xf32>
    %188 = vector.broadcast %187 : vector<1x96xf32> to vector<16x96xf32>
    %189 = arith.addf %186, %188 : vector<16x96xf32>
    %190 = vector.extract_strided_slice %189 {offsets = [0, 0], sizes = [16, 32], strides = [1, 1]} : vector<16x96xf32> to vector<16x32xf32>
    %191 = vector.shape_cast %190 : vector<16x32xf32> to vector<1x16x32xf32>
    %192 = vector.extract_strided_slice %189 {offsets = [0, 32], sizes = [16, 32], strides = [1, 1]} : vector<16x96xf32> to vector<16x32xf32>
    %193 = vector.shape_cast %192 : vector<16x32xf32> to vector<1x16x32xf32>
    %194 = vector.extract_strided_slice %189 {offsets = [0, 64], sizes = [16, 32], strides = [1, 1]} : vector<16x96xf32> to vector<16x32xf32>
    %195 = vector.shape_cast %194 : vector<16x32xf32> to vector<1x16x32xf32>
    %c0_75 = arith.constant 0 : index
    %c0_76 = arith.constant 0 : index
    %196 = vector.load %arg13[%c0_75, %c0_76] : memref<8x32xf32, #tpu.memory_space<vmem>>, vector<8x32xf32>
    %c0_77 = arith.constant 0 : index
    %c0_78 = arith.constant 0 : index
    %197 = vector.load %arg14[%c0_77, %c0_78] : memref<32x32xf32, #tpu.memory_space<vmem>>, vector<32x32xf32>
    %cst_79 = arith.constant dense<0.000000e+00> : vector<8x32xf32>
    %198 = tpu.matmul %196, %197, %cst_79 {dimension_numbers = #tpu.dot_dimension_numbers<[1], [0], [0], [1], [0, 0, 1, 1], [], []>} : vector<8x32xf32>, vector<32x32xf32>, vector<8x32xf32> -> vector<8x32xf32>
    %c0_80 = arith.constant 0 : index
    %c0_81 = arith.constant 0 : index
    %199 = vector.load %arg15[%c0_80, %c0_81] : memref<1x32xf32, #tpu.memory_space<vmem>>, vector<1x32xf32>
    %200 = vector.broadcast %199 : vector<1x32xf32> to vector<8x32xf32>
    %201 = arith.addf %198, %200 : vector<8x32xf32>
    %202 = vector.shape_cast %201 : vector<8x32xf32> to vector<1x8x32xf32>
    %203 = vector.extract_strided_slice %202 {offsets = [0, 0, 0], sizes = [1, 8, 8], strides = [1, 1, 1]} : vector<1x8x32xf32> to vector<1x8x8xf32>
    %204 = vector.extract_strided_slice %191 {offsets = [0, 0, 0], sizes = [1, 16, 8], strides = [1, 1, 1]} : vector<1x16x32xf32> to vector<1x16x8xf32>
    %205 = vector.extract_strided_slice %193 {offsets = [0, 0, 0], sizes = [1, 16, 8], strides = [1, 1, 1]} : vector<1x16x32xf32> to vector<1x16x8xf32>
    "tpu.trace_start"() <{level = 10 : i32, message = "bqd,bkd->bqk"}> : () -> ()
    %cst_82 = arith.constant dense<0.000000e+00> : vector<1x8x16xf32>
    %206 = tpu.matmul %203, %204, %cst_82 {dimension_numbers = #tpu.dot_dimension_numbers<[2], [2], [1], [1], [0, 0, 0, 1, 1, 1], [0], [0]>} : vector<1x8x8xf32>, vector<1x16x8xf32>, vector<1x8x16xf32> -> vector<1x8x16xf32>
    "tpu.trace_stop"() : () -> ()
    %cst_83 = arith.constant 0.176776692 : f32
    %207 = vector.broadcast %cst_83 : f32 to vector<1x8x16xf32>
    %208 = arith.mulf %206, %207 : vector<1x8x16xf32>
    %cst_84 = arith.constant dense<0xFF800000> : vector<1x8xf32>
    %209 = vector.multi_reduction <maximumf>, %208, %cst_84 [2] : vector<1x8x16xf32> to vector<1x8xf32>
    %210 = vector.shape_cast %209 : vector<1x8xf32> to vector<1x8x1xf32>
    %211 = vector.broadcast %210 : vector<1x8x1xf32> to vector<1x8x16xf32>
    %212 = arith.subf %208, %211 : vector<1x8x16xf32>
    %213 = math.exp %212 : vector<1x8x16xf32>
    %cst_85 = arith.constant dense<0.000000e+00> : vector<1x8xf32>
    %214 = vector.multi_reduction <add>, %213, %cst_85 [2] : vector<1x8x16xf32> to vector<1x8xf32>
    %215 = vector.shape_cast %214 : vector<1x8xf32> to vector<1x8x1xf32>
    %216 = vector.broadcast %215 : vector<1x8x1xf32> to vector<1x8x16xf32>
    %217 = arith.divf %213, %216 : vector<1x8x16xf32>
    "tpu.trace_start"() <{level = 10 : i32, message = "bqk,bkd->bqd"}> : () -> ()
    %cst_86 = arith.constant dense<0.000000e+00> : vector<1x8x8xf32>
    %218 = tpu.matmul %217, %205, %cst_86 {dimension_numbers = #tpu.dot_dimension_numbers<[2], [1], [1], [2], [0, 0, 0, 1, 1, 2], [0], [0]>} : vector<1x8x16xf32>, vector<1x16x8xf32>, vector<1x8x8xf32> -> vector<1x8x8xf32>
    "tpu.trace_stop"() : () -> ()
    %219 = arith.addf %203, %218 : vector<1x8x8xf32>
    %220 = vector.extract_strided_slice %202 {offsets = [0, 0, 8], sizes = [1, 8, 8], strides = [1, 1, 1]} : vector<1x8x32xf32> to vector<1x8x8xf32>
    %221 = vector.extract_strided_slice %191 {offsets = [0, 0, 8], sizes = [1, 16, 8], strides = [1, 1, 1]} : vector<1x16x32xf32> to vector<1x16x8xf32>
    %222 = vector.extract_strided_slice %193 {offsets = [0, 0, 8], sizes = [1, 16, 8], strides = [1, 1, 1]} : vector<1x16x32xf32> to vector<1x16x8xf32>
    "tpu.trace_start"() <{level = 10 : i32, message = "bqd,bkd->bqk"}> : () -> ()
    %cst_87 = arith.constant dense<0.000000e+00> : vector<1x8x16xf32>
    %223 = tpu.matmul %220, %221, %cst_87 {dimension_numbers = #tpu.dot_dimension_numbers<[2], [2], [1], [1], [0, 0, 0, 1, 1, 1], [0], [0]>} : vector<1x8x8xf32>, vector<1x16x8xf32>, vector<1x8x16xf32> -> vector<1x8x16xf32>
    "tpu.trace_stop"() : () -> ()
    %cst_88 = arith.constant 0.176776692 : f32
    %224 = vector.broadcast %cst_88 : f32 to vector<1x8x16xf32>
    %225 = arith.mulf %223, %224 : vector<1x8x16xf32>
    %cst_89 = arith.constant dense<0xFF800000> : vector<1x8xf32>
    %226 = vector.multi_reduction <maximumf>, %225, %cst_89 [2] : vector<1x8x16xf32> to vector<1x8xf32>
    %227 = vector.shape_cast %226 : vector<1x8xf32> to vector<1x8x1xf32>
    %228 = vector.broadcast %227 : vector<1x8x1xf32> to vector<1x8x16xf32>
    %229 = arith.subf %225, %228 : vector<1x8x16xf32>
    %230 = math.exp %229 : vector<1x8x16xf32>
    %cst_90 = arith.constant dense<0.000000e+00> : vector<1x8xf32>
    %231 = vector.multi_reduction <add>, %230, %cst_90 [2] : vector<1x8x16xf32> to vector<1x8xf32>
    %232 = vector.shape_cast %231 : vector<1x8xf32> to vector<1x8x1xf32>
    %233 = vector.broadcast %232 : vector<1x8x1xf32> to vector<1x8x16xf32>
    %234 = arith.divf %230, %233 : vector<1x8x16xf32>
    "tpu.trace_start"() <{level = 10 : i32, message = "bqk,bkd->bqd"}> : () -> ()
    %cst_91 = arith.constant dense<0.000000e+00> : vector<1x8x8xf32>
    %235 = tpu.matmul %234, %222, %cst_91 {dimension_numbers = #tpu.dot_dimension_numbers<[2], [1], [1], [2], [0, 0, 0, 1, 1, 2], [0], [0]>} : vector<1x8x16xf32>, vector<1x16x8xf32>, vector<1x8x8xf32> -> vector<1x8x8xf32>
    "tpu.trace_stop"() : () -> ()
    %236 = arith.addf %220, %235 : vector<1x8x8xf32>
    %237 = vector.extract_strided_slice %202 {offsets = [0, 0, 16], sizes = [1, 8, 8], strides = [1, 1, 1]} : vector<1x8x32xf32> to vector<1x8x8xf32>
    %238 = vector.extract_strided_slice %191 {offsets = [0, 0, 16], sizes = [1, 16, 8], strides = [1, 1, 1]} : vector<1x16x32xf32> to vector<1x16x8xf32>
    %239 = vector.extract_strided_slice %193 {offsets = [0, 0, 16], sizes = [1, 16, 8], strides = [1, 1, 1]} : vector<1x16x32xf32> to vector<1x16x8xf32>
    "tpu.trace_start"() <{level = 10 : i32, message = "bqd,bkd->bqk"}> : () -> ()
    %cst_92 = arith.constant dense<0.000000e+00> : vector<1x8x16xf32>
    %240 = tpu.matmul %237, %238, %cst_92 {dimension_numbers = #tpu.dot_dimension_numbers<[2], [2], [1], [1], [0, 0, 0, 1, 1, 1], [0], [0]>} : vector<1x8x8xf32>, vector<1x16x8xf32>, vector<1x8x16xf32> -> vector<1x8x16xf32>
    "tpu.trace_stop"() : () -> ()
    %cst_93 = arith.constant 0.176776692 : f32
    %241 = vector.broadcast %cst_93 : f32 to vector<1x8x16xf32>
    %242 = arith.mulf %240, %241 : vector<1x8x16xf32>
    %cst_94 = arith.constant dense<0xFF800000> : vector<1x8xf32>
    %243 = vector.multi_reduction <maximumf>, %242, %cst_94 [2] : vector<1x8x16xf32> to vector<1x8xf32>
    %244 = vector.shape_cast %243 : vector<1x8xf32> to vector<1x8x1xf32>
    %245 = vector.broadcast %244 : vector<1x8x1xf32> to vector<1x8x16xf32>
    %246 = arith.subf %242, %245 : vector<1x8x16xf32>
    %247 = math.exp %246 : vector<1x8x16xf32>
    %cst_95 = arith.constant dense<0.000000e+00> : vector<1x8xf32>
    %248 = vector.multi_reduction <add>, %247, %cst_95 [2] : vector<1x8x16xf32> to vector<1x8xf32>
    %249 = vector.shape_cast %248 : vector<1x8xf32> to vector<1x8x1xf32>
    %250 = vector.broadcast %249 : vector<1x8x1xf32> to vector<1x8x16xf32>
    %251 = arith.divf %247, %250 : vector<1x8x16xf32>
    "tpu.trace_start"() <{level = 10 : i32, message = "bqk,bkd->bqd"}> : () -> ()
    %cst_96 = arith.constant dense<0.000000e+00> : vector<1x8x8xf32>
    %252 = tpu.matmul %251, %239, %cst_96 {dimension_numbers = #tpu.dot_dimension_numbers<[2], [1], [1], [2], [0, 0, 0, 1, 1, 2], [0], [0]>} : vector<1x8x16xf32>, vector<1x16x8xf32>, vector<1x8x8xf32> -> vector<1x8x8xf32>
    "tpu.trace_stop"() : () -> ()
    %253 = arith.addf %237, %252 : vector<1x8x8xf32>
    %254 = vector.extract_strided_slice %202 {offsets = [0, 0, 24], sizes = [1, 8, 8], strides = [1, 1, 1]} : vector<1x8x32xf32> to vector<1x8x8xf32>
    %255 = vector.extract_strided_slice %191 {offsets = [0, 0, 24], sizes = [1, 16, 8], strides = [1, 1, 1]} : vector<1x16x32xf32> to vector<1x16x8xf32>
    %256 = vector.extract_strided_slice %193 {offsets = [0, 0, 24], sizes = [1, 16, 8], strides = [1, 1, 1]} : vector<1x16x32xf32> to vector<1x16x8xf32>
    "tpu.trace_start"() <{level = 10 : i32, message = "bqd,bkd->bqk"}> : () -> ()
    %cst_97 = arith.constant dense<0.000000e+00> : vector<1x8x16xf32>
    %257 = tpu.matmul %254, %255, %cst_97 {dimension_numbers = #tpu.dot_dimension_numbers<[2], [2], [1], [1], [0, 0, 0, 1, 1, 1], [0], [0]>} : vector<1x8x8xf32>, vector<1x16x8xf32>, vector<1x8x16xf32> -> vector<1x8x16xf32>
    "tpu.trace_stop"() : () -> ()
    %cst_98 = arith.constant 0.176776692 : f32
    %258 = vector.broadcast %cst_98 : f32 to vector<1x8x16xf32>
    %259 = arith.mulf %257, %258 : vector<1x8x16xf32>
    %cst_99 = arith.constant dense<0xFF800000> : vector<1x8xf32>
    %260 = vector.multi_reduction <maximumf>, %259, %cst_99 [2] : vector<1x8x16xf32> to vector<1x8xf32>
    %261 = vector.shape_cast %260 : vector<1x8xf32> to vector<1x8x1xf32>
    %262 = vector.broadcast %261 : vector<1x8x1xf32> to vector<1x8x16xf32>
    %263 = arith.subf %259, %262 : vector<1x8x16xf32>
    %264 = math.exp %263 : vector<1x8x16xf32>
    %cst_100 = arith.constant dense<0.000000e+00> : vector<1x8xf32>
    %265 = vector.multi_reduction <add>, %264, %cst_100 [2] : vector<1x8x16xf32> to vector<1x8xf32>
    %266 = vector.shape_cast %265 : vector<1x8xf32> to vector<1x8x1xf32>
    %267 = vector.broadcast %266 : vector<1x8x1xf32> to vector<1x8x16xf32>
    %268 = arith.divf %264, %267 : vector<1x8x16xf32>
    "tpu.trace_start"() <{level = 10 : i32, message = "bqk,bkd->bqd"}> : () -> ()
    %cst_101 = arith.constant dense<0.000000e+00> : vector<1x8x8xf32>
    %269 = tpu.matmul %268, %256, %cst_101 {dimension_numbers = #tpu.dot_dimension_numbers<[2], [1], [1], [2], [0, 0, 0, 1, 1, 2], [0], [0]>} : vector<1x8x16xf32>, vector<1x16x8xf32>, vector<1x8x8xf32> -> vector<1x8x8xf32>
    "tpu.trace_stop"() : () -> ()
    %270 = arith.addf %254, %269 : vector<1x8x8xf32>
    %271 = tpu.concatenate %219, %236, %253, %270 in 2 : vector<1x8x8xf32>, vector<1x8x8xf32>, vector<1x8x8xf32>, vector<1x8x8xf32> -> vector<1x8x32xf32>
    %272 = vector.shape_cast %271 : vector<1x8x32xf32> to vector<8x32xf32>
    %c0_102 = arith.constant 0 : index
    %c0_103 = arith.constant 0 : index
    %273 = vector.load %arg18[%c0_102, %c0_103] : memref<32x32xf32, #tpu.memory_space<vmem>>, vector<32x32xf32>
    %cst_104 = arith.constant dense<0.000000e+00> : vector<8x32xf32>
    %274 = tpu.matmul %272, %273, %cst_104 {dimension_numbers = #tpu.dot_dimension_numbers<[1], [0], [0], [1], [0, 0, 1, 1], [], []>} : vector<8x32xf32>, vector<32x32xf32>, vector<8x32xf32> -> vector<8x32xf32>
    %c0_105 = arith.constant 0 : index
    %c0_106 = arith.constant 0 : index
    %275 = vector.load %arg19[%c0_105, %c0_106] : memref<1x32xf32, #tpu.memory_space<vmem>>, vector<1x32xf32>
    %276 = vector.broadcast %275 : vector<1x32xf32> to vector<8x32xf32>
    %277 = arith.addf %274, %276 : vector<8x32xf32>
    %cst_107 = arith.constant 0.000000e+00 : f32
    %278 = vector.broadcast %cst_107 : f32 to vector<8x32xf32>
    %279 = arith.maximumf %277, %278 : vector<8x32xf32>
    %280 = arith.addf %272, %279 : vector<8x32xf32>
    %c0_108 = arith.constant 0 : index
    %c0_109 = arith.constant 0 : index
    %281 = vector.load %arg20[%c0_108, %c0_109] : memref<32x64xf32, #tpu.memory_space<vmem>>, vector<32x64xf32>
    %cst_110 = arith.constant dense<0.000000e+00> : vector<8x64xf32>
    %282 = tpu.matmul %280, %281, %cst_110 {dimension_numbers = #tpu.dot_dimension_numbers<[1], [0], [0], [1], [0, 0, 1, 1], [], []>} : vector<8x32xf32>, vector<32x64xf32>, vector<8x64xf32> -> vector<8x64xf32>
    %c0_111 = arith.constant 0 : index
    %c0_112 = arith.constant 0 : index
    %283 = vector.load %arg21[%c0_111, %c0_112] : memref<1x64xf32, #tpu.memory_space<vmem>>, vector<1x64xf32>
    %284 = vector.broadcast %283 : vector<1x64xf32> to vector<8x64xf32>
    %285 = arith.addf %282, %284 : vector<8x64xf32>
    %286 = vector.extract_strided_slice %285 {offsets = [0, 0], sizes = [8, 32], strides = [1, 1]} : vector<8x64xf32> to vector<8x32xf32>
    %287 = vector.shape_cast %286 : vector<8x32xf32> to vector<1x8x32xf32>
    %288 = vector.extract_strided_slice %285 {offsets = [0, 32], sizes = [8, 32], strides = [1, 1]} : vector<8x64xf32> to vector<8x32xf32>
    %289 = vector.shape_cast %288 : vector<8x32xf32> to vector<1x8x32xf32>
    %290 = vector.extract_strided_slice %195 {offsets = [0, 0, 0], sizes = [1, 16, 8], strides = [1, 1, 1]} : vector<1x16x32xf32> to vector<1x16x8xf32>
    %291 = vector.extract_strided_slice %287 {offsets = [0, 0, 0], sizes = [1, 8, 8], strides = [1, 1, 1]} : vector<1x8x32xf32> to vector<1x8x8xf32>
    %292 = vector.extract_strided_slice %289 {offsets = [0, 0, 0], sizes = [1, 8, 8], strides = [1, 1, 1]} : vector<1x8x32xf32> to vector<1x8x8xf32>
    "tpu.trace_start"() <{level = 10 : i32, message = "bqd,bkd->bqk"}> : () -> ()
    %cst_113 = arith.constant dense<0.000000e+00> : vector<1x16x8xf32>
    %293 = tpu.matmul %290, %291, %cst_113 {dimension_numbers = #tpu.dot_dimension_numbers<[2], [2], [1], [1], [0, 0, 0, 1, 1, 1], [0], [0]>} : vector<1x16x8xf32>, vector<1x8x8xf32>, vector<1x16x8xf32> -> vector<1x16x8xf32>
    "tpu.trace_stop"() : () -> ()
    %cst_114 = arith.constant 0.176776692 : f32
    %294 = vector.broadcast %cst_114 : f32 to vector<1x16x8xf32>
    %295 = arith.mulf %293, %294 : vector<1x16x8xf32>
    %cst_115 = arith.constant dense<0xFF800000> : vector<1x16xf32>
    %296 = vector.multi_reduction <maximumf>, %295, %cst_115 [2] : vector<1x16x8xf32> to vector<1x16xf32>
    %297 = vector.shape_cast %296 : vector<1x16xf32> to vector<1x16x1xf32>
    %298 = vector.broadcast %297 : vector<1x16x1xf32> to vector<1x16x8xf32>
    %299 = arith.subf %295, %298 : vector<1x16x8xf32>
    %300 = math.exp %299 : vector<1x16x8xf32>
    %cst_116 = arith.constant dense<0.000000e+00> : vector<1x16xf32>
    %301 = vector.multi_reduction <add>, %300, %cst_116 [2] : vector<1x16x8xf32> to vector<1x16xf32>
    %302 = vector.shape_cast %301 : vector<1x16xf32> to vector<1x16x1xf32>
    %303 = vector.broadcast %302 : vector<1x16x1xf32> to vector<1x16x8xf32>
    %304 = arith.divf %300, %303 : vector<1x16x8xf32>
    "tpu.trace_start"() <{level = 10 : i32, message = "bqk,bkd->bqd"}> : () -> ()
    %cst_117 = arith.constant dense<0.000000e+00> : vector<1x16x8xf32>
    %305 = tpu.matmul %304, %292, %cst_117 {dimension_numbers = #tpu.dot_dimension_numbers<[2], [1], [1], [2], [0, 0, 0, 1, 1, 2], [0], [0]>} : vector<1x16x8xf32>, vector<1x8x8xf32>, vector<1x16x8xf32> -> vector<1x16x8xf32>
    "tpu.trace_stop"() : () -> ()
    %306 = arith.addf %290, %305 : vector<1x16x8xf32>
    %307 = vector.extract_strided_slice %195 {offsets = [0, 0, 8], sizes = [1, 16, 8], strides = [1, 1, 1]} : vector<1x16x32xf32> to vector<1x16x8xf32>
    %308 = vector.extract_strided_slice %287 {offsets = [0, 0, 8], sizes = [1, 8, 8], strides = [1, 1, 1]} : vector<1x8x32xf32> to vector<1x8x8xf32>
    %309 = vector.extract_strided_slice %289 {offsets = [0, 0, 8], sizes = [1, 8, 8], strides = [1, 1, 1]} : vector<1x8x32xf32> to vector<1x8x8xf32>
    "tpu.trace_start"() <{level = 10 : i32, message = "bqd,bkd->bqk"}> : () -> ()
    %cst_118 = arith.constant dense<0.000000e+00> : vector<1x16x8xf32>
    %310 = tpu.matmul %307, %308, %cst_118 {dimension_numbers = #tpu.dot_dimension_numbers<[2], [2], [1], [1], [0, 0, 0, 1, 1, 1], [0], [0]>} : vector<1x16x8xf32>, vector<1x8x8xf32>, vector<1x16x8xf32> -> vector<1x16x8xf32>
    "tpu.trace_stop"() : () -> ()
    %cst_119 = arith.constant 0.176776692 : f32
    %311 = vector.broadcast %cst_119 : f32 to vector<1x16x8xf32>
    %312 = arith.mulf %310, %311 : vector<1x16x8xf32>
    %cst_120 = arith.constant dense<0xFF800000> : vector<1x16xf32>
    %313 = vector.multi_reduction <maximumf>, %312, %cst_120 [2] : vector<1x16x8xf32> to vector<1x16xf32>
    %314 = vector.shape_cast %313 : vector<1x16xf32> to vector<1x16x1xf32>
    %315 = vector.broadcast %314 : vector<1x16x1xf32> to vector<1x16x8xf32>
    %316 = arith.subf %312, %315 : vector<1x16x8xf32>
    %317 = math.exp %316 : vector<1x16x8xf32>
    %cst_121 = arith.constant dense<0.000000e+00> : vector<1x16xf32>
    %318 = vector.multi_reduction <add>, %317, %cst_121 [2] : vector<1x16x8xf32> to vector<1x16xf32>
    %319 = vector.shape_cast %318 : vector<1x16xf32> to vector<1x16x1xf32>
    %320 = vector.broadcast %319 : vector<1x16x1xf32> to vector<1x16x8xf32>
    %321 = arith.divf %317, %320 : vector<1x16x8xf32>
    "tpu.trace_start"() <{level = 10 : i32, message = "bqk,bkd->bqd"}> : () -> ()
    %cst_122 = arith.constant dense<0.000000e+00> : vector<1x16x8xf32>
    %322 = tpu.matmul %321, %309, %cst_122 {dimension_numbers = #tpu.dot_dimension_numbers<[2], [1], [1], [2], [0, 0, 0, 1, 1, 2], [0], [0]>} : vector<1x16x8xf32>, vector<1x8x8xf32>, vector<1x16x8xf32> -> vector<1x16x8xf32>
    "tpu.trace_stop"() : () -> ()
    %323 = arith.addf %307, %322 : vector<1x16x8xf32>
    %324 = vector.extract_strided_slice %195 {offsets = [0, 0, 16], sizes = [1, 16, 8], strides = [1, 1, 1]} : vector<1x16x32xf32> to vector<1x16x8xf32>
    %325 = vector.extract_strided_slice %287 {offsets = [0, 0, 16], sizes = [1, 8, 8], strides = [1, 1, 1]} : vector<1x8x32xf32> to vector<1x8x8xf32>
    %326 = vector.extract_strided_slice %289 {offsets = [0, 0, 16], sizes = [1, 8, 8], strides = [1, 1, 1]} : vector<1x8x32xf32> to vector<1x8x8xf32>
    "tpu.trace_start"() <{level = 10 : i32, message = "bqd,bkd->bqk"}> : () -> ()
    %cst_123 = arith.constant dense<0.000000e+00> : vector<1x16x8xf32>
    %327 = tpu.matmul %324, %325, %cst_123 {dimension_numbers = #tpu.dot_dimension_numbers<[2], [2], [1], [1], [0, 0, 0, 1, 1, 1], [0], [0]>} : vector<1x16x8xf32>, vector<1x8x8xf32>, vector<1x16x8xf32> -> vector<1x16x8xf32>
    "tpu.trace_stop"() : () -> ()
    %cst_124 = arith.constant 0.176776692 : f32
    %328 = vector.broadcast %cst_124 : f32 to vector<1x16x8xf32>
    %329 = arith.mulf %327, %328 : vector<1x16x8xf32>
    %cst_125 = arith.constant dense<0xFF800000> : vector<1x16xf32>
    %330 = vector.multi_reduction <maximumf>, %329, %cst_125 [2] : vector<1x16x8xf32> to vector<1x16xf32>
    %331 = vector.shape_cast %330 : vector<1x16xf32> to vector<1x16x1xf32>
    %332 = vector.broadcast %331 : vector<1x16x1xf32> to vector<1x16x8xf32>
    %333 = arith.subf %329, %332 : vector<1x16x8xf32>
    %334 = math.exp %333 : vector<1x16x8xf32>
    %cst_126 = arith.constant dense<0.000000e+00> : vector<1x16xf32>
    %335 = vector.multi_reduction <add>, %334, %cst_126 [2] : vector<1x16x8xf32> to vector<1x16xf32>
    %336 = vector.shape_cast %335 : vector<1x16xf32> to vector<1x16x1xf32>
    %337 = vector.broadcast %336 : vector<1x16x1xf32> to vector<1x16x8xf32>
    %338 = arith.divf %334, %337 : vector<1x16x8xf32>
    "tpu.trace_start"() <{level = 10 : i32, message = "bqk,bkd->bqd"}> : () -> ()
    %cst_127 = arith.constant dense<0.000000e+00> : vector<1x16x8xf32>
    %339 = tpu.matmul %338, %326, %cst_127 {dimension_numbers = #tpu.dot_dimension_numbers<[2], [1], [1], [2], [0, 0, 0, 1, 1, 2], [0], [0]>} : vector<1x16x8xf32>, vector<1x8x8xf32>, vector<1x16x8xf32> -> vector<1x16x8xf32>
    "tpu.trace_stop"() : () -> ()
    %340 = arith.addf %324, %339 : vector<1x16x8xf32>
    %341 = vector.extract_strided_slice %195 {offsets = [0, 0, 24], sizes = [1, 16, 8], strides = [1, 1, 1]} : vector<1x16x32xf32> to vector<1x16x8xf32>
    %342 = vector.extract_strided_slice %287 {offsets = [0, 0, 24], sizes = [1, 8, 8], strides = [1, 1, 1]} : vector<1x8x32xf32> to vector<1x8x8xf32>
    %343 = vector.extract_strided_slice %289 {offsets = [0, 0, 24], sizes = [1, 8, 8], strides = [1, 1, 1]} : vector<1x8x32xf32> to vector<1x8x8xf32>
    "tpu.trace_start"() <{level = 10 : i32, message = "bqd,bkd->bqk"}> : () -> ()
    %cst_128 = arith.constant dense<0.000000e+00> : vector<1x16x8xf32>
    %344 = tpu.matmul %341, %342, %cst_128 {dimension_numbers = #tpu.dot_dimension_numbers<[2], [2], [1], [1], [0, 0, 0, 1, 1, 1], [0], [0]>} : vector<1x16x8xf32>, vector<1x8x8xf32>, vector<1x16x8xf32> -> vector<1x16x8xf32>
    "tpu.trace_stop"() : () -> ()
    %cst_129 = arith.constant 0.176776692 : f32
    %345 = vector.broadcast %cst_129 : f32 to vector<1x16x8xf32>
    %346 = arith.mulf %344, %345 : vector<1x16x8xf32>
    %cst_130 = arith.constant dense<0xFF800000> : vector<1x16xf32>
    %347 = vector.multi_reduction <maximumf>, %346, %cst_130 [2] : vector<1x16x8xf32> to vector<1x16xf32>
    %348 = vector.shape_cast %347 : vector<1x16xf32> to vector<1x16x1xf32>
    %349 = vector.broadcast %348 : vector<1x16x1xf32> to vector<1x16x8xf32>
    %350 = arith.subf %346, %349 : vector<1x16x8xf32>
    %351 = math.exp %350 : vector<1x16x8xf32>
    %cst_131 = arith.constant dense<0.000000e+00> : vector<1x16xf32>
    %352 = vector.multi_reduction <add>, %351, %cst_131 [2] : vector<1x16x8xf32> to vector<1x16xf32>
    %353 = vector.shape_cast %352 : vector<1x16xf32> to vector<1x16x1xf32>
    %354 = vector.broadcast %353 : vector<1x16x1xf32> to vector<1x16x8xf32>
    %355 = arith.divf %351, %354 : vector<1x16x8xf32>
    "tpu.trace_start"() <{level = 10 : i32, message = "bqk,bkd->bqd"}> : () -> ()
    %cst_132 = arith.constant dense<0.000000e+00> : vector<1x16x8xf32>
    %356 = tpu.matmul %355, %343, %cst_132 {dimension_numbers = #tpu.dot_dimension_numbers<[2], [1], [1], [2], [0, 0, 0, 1, 1, 2], [0], [0]>} : vector<1x16x8xf32>, vector<1x8x8xf32>, vector<1x16x8xf32> -> vector<1x16x8xf32>
    "tpu.trace_stop"() : () -> ()
    %357 = arith.addf %341, %356 : vector<1x16x8xf32>
    %358 = tpu.concatenate %306, %323, %340, %357 in 2 : vector<1x16x8xf32>, vector<1x16x8xf32>, vector<1x16x8xf32>, vector<1x16x8xf32> -> vector<1x16x32xf32>
    %359 = vector.shape_cast %358 : vector<1x16x32xf32> to vector<16x32xf32>
    %c0_133 = arith.constant 0 : index
    %c0_134 = arith.constant 0 : index
    %360 = vector.load %arg22[%c0_133, %c0_134] : memref<32x32xf32, #tpu.memory_space<vmem>>, vector<32x32xf32>
    %cst_135 = arith.constant dense<0.000000e+00> : vector<16x32xf32>
    %361 = tpu.matmul %359, %360, %cst_135 {dimension_numbers = #tpu.dot_dimension_numbers<[1], [0], [0], [1], [0, 0, 1, 1], [], []>} : vector<16x32xf32>, vector<32x32xf32>, vector<16x32xf32> -> vector<16x32xf32>
    %c0_136 = arith.constant 0 : index
    %c0_137 = arith.constant 0 : index
    %362 = vector.load %arg23[%c0_136, %c0_137] : memref<1x32xf32, #tpu.memory_space<vmem>>, vector<1x32xf32>
    %363 = vector.broadcast %362 : vector<1x32xf32> to vector<16x32xf32>
    %364 = arith.addf %361, %363 : vector<16x32xf32>
    %cst_138 = arith.constant 0.000000e+00 : f32
    %365 = vector.broadcast %cst_138 : f32 to vector<16x32xf32>
    %366 = arith.maximumf %364, %365 : vector<16x32xf32>
    %367 = arith.addf %359, %366 : vector<16x32xf32>
    %c0_139 = arith.constant 0 : index
    %c0_140 = arith.constant 0 : index
    %368 = vector.load %arg27[%c0_139, %c0_140] : memref<32x64xf32, #tpu.memory_space<vmem>>, vector<32x64xf32>
    %cst_141 = arith.constant dense<0.000000e+00> : vector<16x64xf32>
    %369 = tpu.matmul %367, %368, %cst_141 {dimension_numbers = #tpu.dot_dimension_numbers<[1], [0], [0], [1], [0, 0, 1, 1], [], []>} : vector<16x32xf32>, vector<32x64xf32>, vector<16x64xf32> -> vector<16x64xf32>
    %c0_142 = arith.constant 0 : index
    %c0_143 = arith.constant 0 : index
    %370 = vector.load %arg28[%c0_142, %c0_143] : memref<1x64xf32, #tpu.memory_space<vmem>>, vector<1x64xf32>
    %371 = vector.broadcast %370 : vector<1x64xf32> to vector<16x64xf32>
    %372 = arith.addf %369, %371 : vector<16x64xf32>
    %373 = vector.extract_strided_slice %372 {offsets = [0, 0], sizes = [16, 32], strides = [1, 1]} : vector<16x64xf32> to vector<16x32xf32>
    %374 = vector.shape_cast %373 : vector<16x32xf32> to vector<1x16x32xf32>
    %375 = vector.extract_strided_slice %372 {offsets = [0, 32], sizes = [16, 32], strides = [1, 1]} : vector<16x64xf32> to vector<16x32xf32>
    %376 = vector.shape_cast %375 : vector<16x32xf32> to vector<1x16x32xf32>
    %c0_144 = arith.constant 0 : index
    %c0_145 = arith.constant 0 : index
    %377 = vector.load %arg24[%c0_144, %c0_145] : memref<1x32xf32, #tpu.memory_space<vmem>>, vector<1x32xf32>
    %c0_146 = arith.constant 0 : index
    %c0_147 = arith.constant 0 : index
    %378 = vector.load %arg25[%c0_146, %c0_147] : memref<32x32xf32, #tpu.memory_space<vmem>>, vector<32x32xf32>
    %cst_148 = arith.constant dense<0.000000e+00> : vector<1x32xf32>
    %379 = tpu.matmul %377, %378, %cst_148 {dimension_numbers = #tpu.dot_dimension_numbers<[1], [0], [0], [1], [0, 0, 1, 1], [], []>} : vector<1x32xf32>, vector<32x32xf32>, vector<1x32xf32> -> vector<1x32xf32>
    %c0_149 = arith.constant 0 : index
    %c0_150 = arith.constant 0 : index
    %380 = vector.load %arg26[%c0_149, %c0_150] : memref<1x32xf32, #tpu.memory_space<vmem>>, vector<1x32xf32>
    %381 = arith.addf %379, %380 : vector<1x32xf32>
    %382 = vector.shape_cast %381 : vector<1x32xf32> to vector<1x1x32xf32>
    %383 = vector.extract_strided_slice %382 {offsets = [0, 0, 0], sizes = [1, 1, 8], strides = [1, 1, 1]} : vector<1x1x32xf32> to vector<1x1x8xf32>
    %384 = vector.extract_strided_slice %374 {offsets = [0, 0, 0], sizes = [1, 16, 8], strides = [1, 1, 1]} : vector<1x16x32xf32> to vector<1x16x8xf32>
    %385 = vector.extract_strided_slice %376 {offsets = [0, 0, 0], sizes = [1, 16, 8], strides = [1, 1, 1]} : vector<1x16x32xf32> to vector<1x16x8xf32>
    "tpu.trace_start"() <{level = 10 : i32, message = "bqd,bkd->bqk"}> : () -> ()
    %cst_151 = arith.constant dense<0.000000e+00> : vector<1x1x16xf32>
    %386 = tpu.matmul %383, %384, %cst_151 {dimension_numbers = #tpu.dot_dimension_numbers<[2], [2], [1], [1], [0, 0, 0, 1, 1, 1], [0], [0]>} : vector<1x1x8xf32>, vector<1x16x8xf32>, vector<1x1x16xf32> -> vector<1x1x16xf32>
    "tpu.trace_stop"() : () -> ()
    %cst_152 = arith.constant 0.176776692 : f32
    %387 = vector.broadcast %cst_152 : f32 to vector<1x1x16xf32>
    %388 = arith.mulf %386, %387 : vector<1x1x16xf32>
    %cst_153 = arith.constant dense<0xFF800000> : vector<1x1xf32>
    %389 = vector.multi_reduction <maximumf>, %388, %cst_153 [2] : vector<1x1x16xf32> to vector<1x1xf32>
    %390 = vector.shape_cast %389 : vector<1x1xf32> to vector<1x1x1xf32>
    %391 = vector.broadcast %390 : vector<1x1x1xf32> to vector<1x1x16xf32>
    %392 = arith.subf %388, %391 : vector<1x1x16xf32>
    %393 = math.exp %392 : vector<1x1x16xf32>
    %cst_154 = arith.constant dense<0.000000e+00> : vector<1x1xf32>
    %394 = vector.multi_reduction <add>, %393, %cst_154 [2] : vector<1x1x16xf32> to vector<1x1xf32>
    %395 = vector.shape_cast %394 : vector<1x1xf32> to vector<1x1x1xf32>
    %396 = vector.broadcast %395 : vector<1x1x1xf32> to vector<1x1x16xf32>
    %397 = arith.divf %393, %396 : vector<1x1x16xf32>
    "tpu.trace_start"() <{level = 10 : i32, message = "bqk,bkd->bqd"}> : () -> ()
    %cst_155 = arith.constant dense<0.000000e+00> : vector<1x1x8xf32>
    %398 = tpu.matmul %397, %385, %cst_155 {dimension_numbers = #tpu.dot_dimension_numbers<[2], [1], [1], [2], [0, 0, 0, 1, 1, 2], [0], [0]>} : vector<1x1x16xf32>, vector<1x16x8xf32>, vector<1x1x8xf32> -> vector<1x1x8xf32>
    "tpu.trace_stop"() : () -> ()
    %399 = arith.addf %383, %398 : vector<1x1x8xf32>
    %400 = vector.extract_strided_slice %382 {offsets = [0, 0, 8], sizes = [1, 1, 8], strides = [1, 1, 1]} : vector<1x1x32xf32> to vector<1x1x8xf32>
    %401 = vector.extract_strided_slice %374 {offsets = [0, 0, 8], sizes = [1, 16, 8], strides = [1, 1, 1]} : vector<1x16x32xf32> to vector<1x16x8xf32>
    %402 = vector.extract_strided_slice %376 {offsets = [0, 0, 8], sizes = [1, 16, 8], strides = [1, 1, 1]} : vector<1x16x32xf32> to vector<1x16x8xf32>
    "tpu.trace_start"() <{level = 10 : i32, message = "bqd,bkd->bqk"}> : () -> ()
    %cst_156 = arith.constant dense<0.000000e+00> : vector<1x1x16xf32>
    %403 = tpu.matmul %400, %401, %cst_156 {dimension_numbers = #tpu.dot_dimension_numbers<[2], [2], [1], [1], [0, 0, 0, 1, 1, 1], [0], [0]>} : vector<1x1x8xf32>, vector<1x16x8xf32>, vector<1x1x16xf32> -> vector<1x1x16xf32>
    "tpu.trace_stop"() : () -> ()
    %cst_157 = arith.constant 0.176776692 : f32
    %404 = vector.broadcast %cst_157 : f32 to vector<1x1x16xf32>
    %405 = arith.mulf %403, %404 : vector<1x1x16xf32>
    %cst_158 = arith.constant dense<0xFF800000> : vector<1x1xf32>
    %406 = vector.multi_reduction <maximumf>, %405, %cst_158 [2] : vector<1x1x16xf32> to vector<1x1xf32>
    %407 = vector.shape_cast %406 : vector<1x1xf32> to vector<1x1x1xf32>
    %408 = vector.broadcast %407 : vector<1x1x1xf32> to vector<1x1x16xf32>
    %409 = arith.subf %405, %408 : vector<1x1x16xf32>
    %410 = math.exp %409 : vector<1x1x16xf32>
    %cst_159 = arith.constant dense<0.000000e+00> : vector<1x1xf32>
    %411 = vector.multi_reduction <add>, %410, %cst_159 [2] : vector<1x1x16xf32> to vector<1x1xf32>
    %412 = vector.shape_cast %411 : vector<1x1xf32> to vector<1x1x1xf32>
    %413 = vector.broadcast %412 : vector<1x1x1xf32> to vector<1x1x16xf32>
    %414 = arith.divf %410, %413 : vector<1x1x16xf32>
    "tpu.trace_start"() <{level = 10 : i32, message = "bqk,bkd->bqd"}> : () -> ()
    %cst_160 = arith.constant dense<0.000000e+00> : vector<1x1x8xf32>
    %415 = tpu.matmul %414, %402, %cst_160 {dimension_numbers = #tpu.dot_dimension_numbers<[2], [1], [1], [2], [0, 0, 0, 1, 1, 2], [0], [0]>} : vector<1x1x16xf32>, vector<1x16x8xf32>, vector<1x1x8xf32> -> vector<1x1x8xf32>
    "tpu.trace_stop"() : () -> ()
    %416 = arith.addf %400, %415 : vector<1x1x8xf32>
    %417 = vector.extract_strided_slice %382 {offsets = [0, 0, 16], sizes = [1, 1, 8], strides = [1, 1, 1]} : vector<1x1x32xf32> to vector<1x1x8xf32>
    %418 = vector.extract_strided_slice %374 {offsets = [0, 0, 16], sizes = [1, 16, 8], strides = [1, 1, 1]} : vector<1x16x32xf32> to vector<1x16x8xf32>
    %419 = vector.extract_strided_slice %376 {offsets = [0, 0, 16], sizes = [1, 16, 8], strides = [1, 1, 1]} : vector<1x16x32xf32> to vector<1x16x8xf32>
    "tpu.trace_start"() <{level = 10 : i32, message = "bqd,bkd->bqk"}> : () -> ()
    %cst_161 = arith.constant dense<0.000000e+00> : vector<1x1x16xf32>
    %420 = tpu.matmul %417, %418, %cst_161 {dimension_numbers = #tpu.dot_dimension_numbers<[2], [2], [1], [1], [0, 0, 0, 1, 1, 1], [0], [0]>} : vector<1x1x8xf32>, vector<1x16x8xf32>, vector<1x1x16xf32> -> vector<1x1x16xf32>
    "tpu.trace_stop"() : () -> ()
    %cst_162 = arith.constant 0.176776692 : f32
    %421 = vector.broadcast %cst_162 : f32 to vector<1x1x16xf32>
    %422 = arith.mulf %420, %421 : vector<1x1x16xf32>
    %cst_163 = arith.constant dense<0xFF800000> : vector<1x1xf32>
    %423 = vector.multi_reduction <maximumf>, %422, %cst_163 [2] : vector<1x1x16xf32> to vector<1x1xf32>
    %424 = vector.shape_cast %423 : vector<1x1xf32> to vector<1x1x1xf32>
    %425 = vector.broadcast %424 : vector<1x1x1xf32> to vector<1x1x16xf32>
    %426 = arith.subf %422, %425 : vector<1x1x16xf32>
    %427 = math.exp %426 : vector<1x1x16xf32>
    %cst_164 = arith.constant dense<0.000000e+00> : vector<1x1xf32>
    %428 = vector.multi_reduction <add>, %427, %cst_164 [2] : vector<1x1x16xf32> to vector<1x1xf32>
    %429 = vector.shape_cast %428 : vector<1x1xf32> to vector<1x1x1xf32>
    %430 = vector.broadcast %429 : vector<1x1x1xf32> to vector<1x1x16xf32>
    %431 = arith.divf %427, %430 : vector<1x1x16xf32>
    "tpu.trace_start"() <{level = 10 : i32, message = "bqk,bkd->bqd"}> : () -> ()
    %cst_165 = arith.constant dense<0.000000e+00> : vector<1x1x8xf32>
    %432 = tpu.matmul %431, %419, %cst_165 {dimension_numbers = #tpu.dot_dimension_numbers<[2], [1], [1], [2], [0, 0, 0, 1, 1, 2], [0], [0]>} : vector<1x1x16xf32>, vector<1x16x8xf32>, vector<1x1x8xf32> -> vector<1x1x8xf32>
    "tpu.trace_stop"() : () -> ()
    %433 = arith.addf %417, %432 : vector<1x1x8xf32>
    %434 = vector.extract_strided_slice %382 {offsets = [0, 0, 24], sizes = [1, 1, 8], strides = [1, 1, 1]} : vector<1x1x32xf32> to vector<1x1x8xf32>
    %435 = vector.extract_strided_slice %374 {offsets = [0, 0, 24], sizes = [1, 16, 8], strides = [1, 1, 1]} : vector<1x16x32xf32> to vector<1x16x8xf32>
    %436 = vector.extract_strided_slice %376 {offsets = [0, 0, 24], sizes = [1, 16, 8], strides = [1, 1, 1]} : vector<1x16x32xf32> to vector<1x16x8xf32>
    "tpu.trace_start"() <{level = 10 : i32, message = "bqd,bkd->bqk"}> : () -> ()
    %cst_166 = arith.constant dense<0.000000e+00> : vector<1x1x16xf32>
    %437 = tpu.matmul %434, %435, %cst_166 {dimension_numbers = #tpu.dot_dimension_numbers<[2], [2], [1], [1], [0, 0, 0, 1, 1, 1], [0], [0]>} : vector<1x1x8xf32>, vector<1x16x8xf32>, vector<1x1x16xf32> -> vector<1x1x16xf32>
    "tpu.trace_stop"() : () -> ()
    %cst_167 = arith.constant 0.176776692 : f32
    %438 = vector.broadcast %cst_167 : f32 to vector<1x1x16xf32>
    %439 = arith.mulf %437, %438 : vector<1x1x16xf32>
    %cst_168 = arith.constant dense<0xFF800000> : vector<1x1xf32>
    %440 = vector.multi_reduction <maximumf>, %439, %cst_168 [2] : vector<1x1x16xf32> to vector<1x1xf32>
    %441 = vector.shape_cast %440 : vector<1x1xf32> to vector<1x1x1xf32>
    %442 = vector.broadcast %441 : vector<1x1x1xf32> to vector<1x1x16xf32>
    %443 = arith.subf %439, %442 : vector<1x1x16xf32>
    %444 = math.exp %443 : vector<1x1x16xf32>
    %cst_169 = arith.constant dense<0.000000e+00> : vector<1x1xf32>
    %445 = vector.multi_reduction <add>, %444, %cst_169 [2] : vector<1x1x16xf32> to vector<1x1xf32>
    %446 = vector.shape_cast %445 : vector<1x1xf32> to vector<1x1x1xf32>
    %447 = vector.broadcast %446 : vector<1x1x1xf32> to vector<1x1x16xf32>
    %448 = arith.divf %444, %447 : vector<1x1x16xf32>
    "tpu.trace_start"() <{level = 10 : i32, message = "bqk,bkd->bqd"}> : () -> ()
    %cst_170 = arith.constant dense<0.000000e+00> : vector<1x1x8xf32>
    %449 = tpu.matmul %448, %436, %cst_170 {dimension_numbers = #tpu.dot_dimension_numbers<[2], [1], [1], [2], [0, 0, 0, 1, 1, 2], [0], [0]>} : vector<1x1x16xf32>, vector<1x16x8xf32>, vector<1x1x8xf32> -> vector<1x1x8xf32>
    "tpu.trace_stop"() : () -> ()
    %450 = arith.addf %434, %449 : vector<1x1x8xf32>
    %451 = tpu.concatenate %399, %416, %433, %450 in 2 : vector<1x1x8xf32>, vector<1x1x8xf32>, vector<1x1x8xf32>, vector<1x1x8xf32> -> vector<1x1x32xf32>
    %cst_171 = arith.constant dense<0.000000e+00> : vector<1x32xf32>
    %452 = vector.multi_reduction <add>, %451, %cst_171 [1] : vector<1x1x32xf32> to vector<1x32xf32>
    %c0_172 = arith.constant 0 : index
    %c0_173 = arith.constant 0 : index
    %453 = vector.load %arg29[%c0_172, %c0_173] : memref<32x32xf32, #tpu.memory_space<vmem>>, vector<32x32xf32>
    %cst_174 = arith.constant dense<0.000000e+00> : vector<1x32xf32>
    %454 = tpu.matmul %452, %453, %cst_174 {dimension_numbers = #tpu.dot_dimension_numbers<[1], [0], [0], [1], [0, 0, 1, 1], [], []>} : vector<1x32xf32>, vector<32x32xf32>, vector<1x32xf32> -> vector<1x32xf32>
    %c0_175 = arith.constant 0 : index
    %c0_176 = arith.constant 0 : index
    %455 = vector.load %arg30[%c0_175, %c0_176] : memref<1x32xf32, #tpu.memory_space<vmem>>, vector<1x32xf32>
    %456 = arith.addf %454, %455 : vector<1x32xf32>
    %cst_177 = arith.constant 0.000000e+00 : f32
    %457 = vector.broadcast %cst_177 : f32 to vector<1x32xf32>
    %458 = arith.maximumf %456, %457 : vector<1x32xf32>
    %459 = arith.addf %452, %458 : vector<1x32xf32>
    %c0_178 = arith.constant 0 : index
    %c0_179 = arith.constant 0 : index
    %460 = vector.load %arg31[%c0_178, %c0_179] : memref<32x32xf32, #tpu.memory_space<vmem>>, vector<32x32xf32>
    %cst_180 = arith.constant dense<0.000000e+00> : vector<1x32xf32>
    %461 = tpu.matmul %459, %460, %cst_180 {dimension_numbers = #tpu.dot_dimension_numbers<[1], [0], [0], [1], [0, 0, 1, 1], [], []>} : vector<1x32xf32>, vector<32x32xf32>, vector<1x32xf32> -> vector<1x32xf32>
    %c0_181 = arith.constant 0 : index
    %c0_182 = arith.constant 0 : index
    %462 = vector.load %arg32[%c0_181, %c0_182] : memref<1x32xf32, #tpu.memory_space<vmem>>, vector<1x32xf32>
    %463 = arith.addf %461, %462 : vector<1x32xf32>
    %cst_183 = arith.constant 0.000000e+00 : f32
    %464 = vector.broadcast %cst_183 : f32 to vector<1x32xf32>
    %465 = arith.maximumf %463, %464 : vector<1x32xf32>
    %c0_184 = arith.constant 0 : index
    %c0_185 = arith.constant 0 : index
    %466 = vector.load %arg33[%c0_184, %c0_185] : memref<32x128xf32, #tpu.memory_space<vmem>>, vector<32x128xf32>
    %cst_186 = arith.constant dense<0.000000e+00> : vector<1x128xf32>
    %467 = tpu.matmul %465, %466, %cst_186 {dimension_numbers = #tpu.dot_dimension_numbers<[1], [0], [0], [1], [0, 0, 1, 1], [], []>} : vector<1x32xf32>, vector<32x128xf32>, vector<1x128xf32> -> vector<1x128xf32>
    %c0_187 = arith.constant 0 : index
    %c0_188 = arith.constant 0 : index
    %468 = vector.load %arg34[%c0_187, %c0_188] : memref<1x128xf32, #tpu.memory_space<vmem>>, vector<1x128xf32>
    %469 = arith.addf %467, %468 : vector<1x128xf32>
    %470 = vector.shape_cast %469 : vector<1x128xf32> to vector<1x1x128xf32>
    %c0_189 = arith.constant 0 : index
    %c0_190 = arith.constant 0 : index
    %c0_191 = arith.constant 0 : index
    %471 = vector.load %arg35[%c0_189, %c0_190, %c0_191] : memref<1x1x128xf32, #tpu.memory_space<vmem>>, vector<1x1x128xf32>
    tpu.vector_store %arg35[%c0_189, %c0_190, %c0_191], %470 {strides = array<i32>} : memref<1x1x128xf32, #tpu.memory_space<vmem>>, vector<1x1x128xf32>,
    return
  }
  func.func @transform_0(%arg0: i32) -> (i32, i32, i32) {
    %c0_i32 = arith.constant 0 : i32
    %c0_i32_0 = arith.constant 0 : i32
    %c0_i32_1 = arith.constant 0 : i32
    return %arg0, %c0_i32, %c0_i32_0 : i32, i32, i32
  }
  func.func @transform_1(%arg0: i32) -> (i32, i32) {
    %c0_i32 = arith.constant 0 : i32
    %c0_i32_0 = arith.constant 0 : i32
    %c0_i32_1 = arith.constant 0 : i32
    return %c0_i32, %c0_i32_0 : i32, i32
  }
  func.func @transform_2(%arg0: i32) -> (i32, i32) {
    %c0_i32 = arith.constant 0 : i32
    %c0_i32_0 = arith.constant 0 : i32
    %c0_i32_1 = arith.constant 0 : i32
    return %c0_i32, %c0_i32_0 : i32, i32
  }
  func.func @transform_3(%arg0: i32) -> (i32, i32) {
    %c0_i32 = arith.constant 0 : i32
    %c0_i32_0 = arith.constant 0 : i32
    %c0_i32_1 = arith.constant 0 : i32
    return %c0_i32, %c0_i32_0 : i32, i32
  }
  func.func @transform_4(%arg0: i32) -> (i32, i32) {
    %c0_i32 = arith.constant 0 : i32
    %c0_i32_0 = arith.constant 0 : i32
    %c0_i32_1 = arith.constant 0 : i32
    return %c0_i32, %c0_i32_0 : i32, i32
  }
  func.func @transform_5(%arg0: i32) -> (i32, i32) {
    %c0_i32 = arith.constant 0 : i32
    %c0_i32_0 = arith.constant 0 : i32
    %c0_i32_1 = arith.constant 0 : i32
    return %c0_i32, %c0_i32_0 : i32, i32
  }
  func.func @transform_6(%arg0: i32) -> (i32, i32) {
    %c0_i32 = arith.constant 0 : i32
    %c0_i32_0 = arith.constant 0 : i32
    %c0_i32_1 = arith.constant 0 : i32
    return %c0_i32, %c0_i32_0 : i32, i32
  }
  func.func @transform_7(%arg0: i32) -> (i32, i32) {
    %c0_i32 = arith.constant 0 : i32
    %c0_i32_0 = arith.constant 0 : i32
    %c0_i32_1 = arith.constant 0 : i32
    return %c0_i32, %c0_i32_0 : i32, i32
  }
  func.func @transform_8(%arg0: i32) -> (i32, i32) {
    %c0_i32 = arith.constant 0 : i32
    %c0_i32_0 = arith.constant 0 : i32
    %c0_i32_1 = arith.constant 0 : i32
    return %c0_i32, %c0_i32_0 : i32, i32
  }
  func.func @transform_9(%arg0: i32) -> (i32, i32) {
    %c0_i32 = arith.constant 0 : i32
    %c0_i32_0 = arith.constant 0 : i32
    %c0_i32_1 = arith.constant 0 : i32
    return %c0_i32, %c0_i32_0 : i32, i32
  }
  func.func @transform_10(%arg0: i32) -> (i32, i32) {
    %c0_i32 = arith.constant 0 : i32
    %c0_i32_0 = arith.constant 0 : i32
    %c0_i32_1 = arith.constant 0 : i32
    return %c0_i32, %c0_i32_0 : i32, i32
  }
  func.func @transform_11(%arg0: i32) -> (i32, i32) {
    %c0_i32 = arith.constant 0 : i32
    %c0_i32_0 = arith.constant 0 : i32
    %c0_i32_1 = arith.constant 0 : i32
    return %c0_i32, %c0_i32_0 : i32, i32
  }
  func.func @transform_12(%arg0: i32) -> (i32, i32) {
    %c0_i32 = arith.constant 0 : i32
    %c0_i32_0 = arith.constant 0 : i32
    %c0_i32_1 = arith.constant 0 : i32
    return %c0_i32, %c0_i32_0 : i32, i32
  }
  func.func @transform_13(%arg0: i32) -> (i32, i32) {
    %c0_i32 = arith.constant 0 : i32
    %c0_i32_0 = arith.constant 0 : i32
    %c0_i32_1 = arith.constant 0 : i32
    return %c0_i32, %c0_i32_0 : i32, i32
  }
  func.func @transform_14(%arg0: i32) -> (i32, i32) {
    %c0_i32 = arith.constant 0 : i32
    %c0_i32_0 = arith.constant 0 : i32
    %c0_i32_1 = arith.constant 0 : i32
    return %c0_i32, %c0_i32_0 : i32, i32
  }
  func.func @transform_15(%arg0: i32) -> (i32, i32) {
    %c0_i32 = arith.constant 0 : i32
    %c0_i32_0 = arith.constant 0 : i32
    %c0_i32_1 = arith.constant 0 : i32
    return %c0_i32, %c0_i32_0 : i32, i32
  }
  func.func @transform_16(%arg0: i32) -> (i32, i32) {
    %c0_i32 = arith.constant 0 : i32
    %c0_i32_0 = arith.constant 0 : i32
    %c0_i32_1 = arith.constant 0 : i32
    return %c0_i32, %c0_i32_0 : i32, i32
  }
  func.func @transform_17(%arg0: i32) -> (i32, i32) {
    %c0_i32 = arith.constant 0 : i32
    %c0_i32_0 = arith.constant 0 : i32
    %c0_i32_1 = arith.constant 0 : i32
    return %c0_i32, %c0_i32_0 : i32, i32
  }
  func.func @transform_18(%arg0: i32) -> (i32, i32) {
    %c0_i32 = arith.constant 0 : i32
    %c0_i32_0 = arith.constant 0 : i32
    %c0_i32_1 = arith.constant 0 : i32
    return %c0_i32, %c0_i32_0 : i32, i32
  }
  func.func @transform_19(%arg0: i32) -> (i32, i32) {
    %c0_i32 = arith.constant 0 : i32
    %c0_i32_0 = arith.constant 0 : i32
    %c0_i32_1 = arith.constant 0 : i32
    return %c0_i32, %c0_i32_0 : i32, i32
  }
  func.func @transform_20(%arg0: i32) -> (i32, i32) {
    %c0_i32 = arith.constant 0 : i32
    %c0_i32_0 = arith.constant 0 : i32
    %c0_i32_1 = arith.constant 0 : i32
    return %c0_i32, %c0_i32_0 : i32, i32
  }
  func.func @transform_21(%arg0: i32) -> (i32, i32) {
    %c0_i32 = arith.constant 0 : i32
    %c0_i32_0 = arith.constant 0 : i32
    %c0_i32_1 = arith.constant 0 : i32
    return %c0_i32, %c0_i32_0 : i32, i32
  }
  func.func @transform_22(%arg0: i32) -> (i32, i32) {
    %c0_i32 = arith.constant 0 : i32
    %c0_i32_0 = arith.constant 0 : i32
    %c0_i32_1 = arith.constant 0 : i32
    return %c0_i32, %c0_i32_0 : i32, i32
  }
  func.func @transform_23(%arg0: i32) -> (i32, i32) {
    %c0_i32 = arith.constant 0 : i32
    %c0_i32_0 = arith.constant 0 : i32
    %c0_i32_1 = arith.constant 0 : i32
    return %c0_i32, %c0_i32_0 : i32, i32
  }
  func.func @transform_24(%arg0: i32) -> (i32, i32) {
    %c0_i32 = arith.constant 0 : i32
    %c0_i32_0 = arith.constant 0 : i32
    %c0_i32_1 = arith.constant 0 : i32
    return %c0_i32, %c0_i32_0 : i32, i32
  }
  func.func @transform_25(%arg0: i32) -> (i32, i32) {
    %c0_i32 = arith.constant 0 : i32
    %c0_i32_0 = arith.constant 0 : i32
    %c0_i32_1 = arith.constant 0 : i32
    return %c0_i32, %c0_i32_0 : i32, i32
  }
  func.func @transform_26(%arg0: i32) -> (i32, i32) {
    %c0_i32 = arith.constant 0 : i32
    %c0_i32_0 = arith.constant 0 : i32
    %c0_i32_1 = arith.constant 0 : i32
    return %c0_i32, %c0_i32_0 : i32, i32
  }
  func.func @transform_27(%arg0: i32) -> (i32, i32) {
    %c0_i32 = arith.constant 0 : i32
    %c0_i32_0 = arith.constant 0 : i32
    %c0_i32_1 = arith.constant 0 : i32
    return %c0_i32, %c0_i32_0 : i32, i32
  }
  func.func @transform_28(%arg0: i32) -> (i32, i32) {
    %c0_i32 = arith.constant 0 : i32
    %c0_i32_0 = arith.constant 0 : i32
    %c0_i32_1 = arith.constant 0 : i32
    return %c0_i32, %c0_i32_0 : i32, i32
  }
  func.func @transform_29(%arg0: i32) -> (i32, i32) {
    %c0_i32 = arith.constant 0 : i32
    %c0_i32_0 = arith.constant 0 : i32
    %c0_i32_1 = arith.constant 0 : i32
    return %c0_i32, %c0_i32_0 : i32, i32
  }
  func.func @transform_30(%arg0: i32) -> (i32, i32) {
    %c0_i32 = arith.constant 0 : i32
    %c0_i32_0 = arith.constant 0 : i32
    %c0_i32_1 = arith.constant 0 : i32
    return %c0_i32, %c0_i32_0 : i32, i32
  }
  func.func @transform_31(%arg0: i32) -> (i32, i32) {
    %c0_i32 = arith.constant 0 : i32
    %c0_i32_0 = arith.constant 0 : i32
    %c0_i32_1 = arith.constant 0 : i32
    return %c0_i32, %c0_i32_0 : i32, i32
  }
  func.func @transform_32(%arg0: i32) -> (i32, i32) {
    %c0_i32 = arith.constant 0 : i32
    %c0_i32_0 = arith.constant 0 : i32
    %c0_i32_1 = arith.constant 0 : i32
    return %c0_i32, %c0_i32_0 : i32, i32
  }
  func.func @transform_33(%arg0: i32) -> (i32, i32) {
    %c0_i32 = arith.constant 0 : i32
    %c0_i32_0 = arith.constant 0 : i32
    %c0_i32_1 = arith.constant 0 : i32
    return %c0_i32, %c0_i32_0 : i32, i32
  }
  func.func @transform_34(%arg0: i32) -> (i32, i32, i32) {
    %c0_i32 = arith.constant 0 : i32
    %c0_i32_0 = arith.constant 0 : i32
    %c0_i32_1 = arith.constant 0 : i32
    return %arg0, %c0_i32, %c0_i32_0 : i32, i32, i32
  }
}

</mosaic_0001>

<bundles_post_ra>
// kernel: set_transformer.1
= control target key start
LH: loop header
LB: loop body
LE: loop exit
PB: predicated region body
PF: predicated region fallthrough
CT: control target
= control target key end

     0   :  { %s7566_s6 = smov 1   ;;  %s7567_s10 = smov 2   ;;  %s8514_s0 = inlined_call_operand.smem [shape: u32[35], index: -1, kind: input, shape index: {}] }
   0x1   :  { %s7626_s5 = sld [smem:[%s8514_s0]]   ;;  %s7568_s14 = smov 3  }
   0x2   :  { %s7631_s9 = sld [smem:[%s8514_s0 + %s7566_s6]]   ;;  %s7569_s18 = smov 4  }
   0x3   :  { %s7636_s13 = sld [smem:[%s8514_s0 + %s7567_s10]]   ;;  %s7570_s22 = smov 5  }
   0x4   :  { %s7641_s17 = sld [smem:[%s8514_s0 + %s7568_s14]]   ;;  %s7571_s26 = smov 6  }
   0x5   :  { %s7646_s21 = sld [smem:[%s8514_s0 + %s7569_s18]]   ;;  %s7572_s30 = smov 7  }
   0x6   :  { %s7651_s25 = sld [smem:[%s8514_s0 + %s7570_s22]]   ;;  %s7573_s4 = smov 8  }
   0x7   :  { %8559 = sst [smem:[#allocation5_spill]] %s7626_s5  ;;  %s7574_s10 = smov 9  }
   0x8   :  { %8560 = sst [smem:[#allocation6_spill]] %s7631_s9  ;;  %s7575_s15 = smov 10  }
   0x9   :  { %8561 = sst [smem:[#allocation7_spill]] %s7636_s13  ;;  %s7576_s20 = smov 11  }
   0xa   :  { %8562 = sst [smem:[#allocation8_spill]] %s7641_s17  ;;  %s7578_s1 = smov 13  }
   0xb   :  { %8563 = sst [smem:[#allocation9_spill]] %s7646_s21  ;;  %s7579_s7 = smov 14  }
   0xc   :  { %s7656_s29 = sld [smem:[%s8514_s0 + %s7571_s26]]   ;;  %s7577_s26 = smov 12  }
   0xd   :  { %s7661_s3 = sld [smem:[%s8514_s0 + %s7572_s30]]   ;;  %s7581_s22 = smov 16  }
   0xe   :  { %s7666_s8 = sld [smem:[%s8514_s0 + %s7573_s4]]   ;;  %s7582_s28 = smov 17  }
   0xf   :  { %s7671_s14 = sld [smem:[%s8514_s0 + %s7574_s10]]  }
  0x10   :  { %s7676_s19 = sld [smem:[%s8514_s0 + %s7575_s15]]   ;;  %s7580_s15 = smov 15  }
  0x11   :  { %s7681_s24 = sld [smem:[%s8514_s0 + %s7576_s20]]  }
  0x12   :  { %s7686_s30 = sld [smem:[%s8514_s0 + %s7577_s26]]  }
  0x13   :  { %8564 = sst [smem:[#allocation10_spill]] %s7661_s3 }
  0x14   :  { %8565 = sst [smem:[#allocation11_spill]] %s7666_s8 }
  0x15   :  { %8566 = sst [smem:[#allocation12_spill]] %s7671_s14 }
  0x16   :  { %8567 = sst [smem:[#allocation13_spill]] %s7676_s19 }
  0x17   :  { %8568 = sst [smem:[#allocation14_spill]] %s7681_s24 }
  0x18   :  { %s7691_s6 = sld [smem:[%s8514_s0 + %s7578_s1]]  }
  0x19   :  { %s7696_s12 = sld [smem:[%s8514_s0 + %s7579_s7]]   ;;  %s7583_s7 = smov 18  }
  0x1a   :  { %s7701_s20 = sld [smem:[%s8514_s0 + %s7580_s15]]   ;;  %s7584_s15 = smov 19  }
  0x1b   :  { %s7706_s27 = sld [smem:[%s8514_s0 + %s7581_s22]]   ;;  %s7585_s22 = smov 20  }
  0x1c   :  { %s7711_s4 = sld [smem:[%s8514_s0 + %s7582_s28]]   ;;  %s7586_s28 = smov 21  }
  0x1d   :  { %s7721_s24 = sld [smem:[%s8514_s0 + %s7584_s15]]   ;;  %s7588_s15 = smov 23  }
  0x1e   :  { %8569 = sst [smem:[#allocation15_spill]] %s7691_s6 }
  0x1f   :  { %8570 = sst [smem:[#allocation16_spill]] %s7696_s12 }
  0x20   :  { %8571 = sst [smem:[#allocation17_spill]] %s7701_s20 }
  0x21   :  { %8572 = sst [smem:[#allocation18_spill]] %s7706_s27 }
  0x22   :  { %8573 = sst [smem:[#allocation19_spill]] %s7711_s4 }
  0x23   :  { %s7716_s12 = sld [smem:[%s8514_s0 + %s7583_s7]]   ;;  %s7587_s7 = smov 22  }
  0x24   :  { %8575 = sst [smem:[#allocation21_spill]] %s7721_s24 }
  0x25   :  { %s7726_s27 = sld [smem:[%s8514_s0 + %s7585_s22]]   ;;  %s7589_s22 = smov 24  }
  0x26   :  { %s7731_s4 = sld [smem:[%s8514_s0 + %s7586_s28]]   ;;  %s7590_s28 = smov 25  }
  0x27   :  { %s7741_s24 = sld [smem:[%s8514_s0 + %s7588_s15]]   ;;  %s7592_s15 = smov 27  }
  0x29   :  { %8574 = sst [smem:[#allocation20_spill]] %s7716_s12 }
  0x2a   :  { %s7736_s12 = sld [smem:[%s8514_s0 + %s7587_s7]]   ;;  %s7591_s7 = smov 26  }
  0x2b   :  { %8576 = sst [smem:[#allocation22_spill]] %s7726_s27 }
  0x2c   :  { %8577 = sst [smem:[#allocation23_spill]] %s7731_s4 }
  0x2d   :  { %8579 = sst [smem:[#allocation25_spill]] %s7741_s24 }
  0x2e   :  { %s7746_s27 = sld [smem:[%s8514_s0 + %s7589_s22]]   ;;  %s7593_s22 = smov 28  }
  0x2f   :  { %s7751_s4 = sld [smem:[%s8514_s0 + %s7590_s28]]   ;;  %s7594_s28 = smov 29  }
  0x30   :  { %8578 = sst [smem:[#allocation24_spill]] %s7736_s12 }
  0x31   :  { %s7756_s12 = sld [smem:[%s8514_s0 + %s7591_s7]]   ;;  %s7595_s7 = smov 30  }
  0x32   :  { %s7761_s24 = sld [smem:[%s8514_s0 + %s7592_s15]]   ;;  %s7596_s15 = smov 31  }
  0x34   :  { %8580 = sst [smem:[#allocation26_spill]] %s7746_s27 }
  0x35   :  { %8581 = sst [smem:[#allocation27_spill]] %s7751_s4 }
  0x36   :  { %s7766_s27 = sld [smem:[%s8514_s0 + %s7593_s22]]   ;;  %s7597_s22 = smov 32  }
  0x37   :  { %8582 = sst [smem:[#allocation28_spill]] %s7756_s12 }
  0x38   :  { %8583 = sst [smem:[#allocation29_spill]] %s7761_s24 }
  0x39   :  { %s7771_s4 = sld [smem:[%s8514_s0 + %s7594_s28]]   ;;  %s7598_s28 = smov 33  }
  0x3a   :  { %s7776_s12 = sld [smem:[%s8514_s0 + %s7595_s7]]   ;;  %s7599_s7 = smov 34  }
  0x3b   :  { %s7781_s24 = sld [smem:[%s8514_s0 + %s7596_s15]]  }
  0x3c   :  { %8584 = sst [smem:[#allocation30_spill]] %s7766_s27 }
  0x3d   :  { %s7786_s27 = sld [smem:[%s8514_s0 + %s7597_s22]]  }
  0x3f   :  { %8585 = sst [smem:[#allocation31_spill]] %s7771_s4 }
  0x40   :  { %8586 = sst [smem:[#allocation32_spill]] %s7776_s12 }
  0x41   :  { %s7791_s4 = sld [smem:[%s8514_s0 + %s7598_s28]]  }
  0x42   :  { %s7796_s12 = sld [smem:[%s8514_s0 + %s7599_s7]]  }
  0x43   :  { %74 = vsyncpa [#allocation3], 0 }
  0x44   :  { %76 = vsyncpa [#allocation3 + $0x1], 0  ;;  %s7798_s15 = smov 0   ;;  %s7800_s16 = smov 0  }
  0x45   :  { %s7802_s18 = smov 0   ;;  %s7804_s22 = smov 0  }
  0x46 LB: > { %s8587_s20 = sld [smem:[#allocation17_spill]]  ;;  %s8588_s19 = sld [smem:[#allocation13_spill]]  ;;  %s7552_s15 = sphi %s7798_s15, %s8633_s15   ;;  %s7564_s22 = sphi %s7804_s22, %s8636_s22   ;;  %s7560_s18 = sphi %s7802_s18, %s8635_s18   ;;  %s7556_s16 = sphi %s7800_s16, %s8634_s16  }
  0x47   : > { %s8589_s6 = sld [smem:[#allocation15_spill]]  ;;  %s8591_s8 = sld [smem:[#allocation11_spill]] }
  0x48   : > { %s8590_s13 = sld [smem:[#allocation7_spill]]  ;;  %s7819_s0 = sadd.s32 4294967295, %s7564_s22  }
  0x49   : > { %s6285_s23 = sadd.s32 4294967294, %s7564_s22   ;;  %s7823_s26 = sadd.s32 1, %s7564_s22  }
  0x4a   : > { %s808_s28 = sadd.s32 1, %s7560_s18  ;;  %s805_s1 = ssub.s32 %s7564_s22, %s7823_s26 }
  0x4b   : > { %p818_p0 = scmp.ne.s32.totalorder %s7560_s18, %s7556_s16  ;;  %p806_p1 = scmp.eq.s32.totalorder %s805_s1, 0 }
  0x4c   : > { %p819_p2 = scmp.eq.s32.totalorder %s7819_s0, 1  ;;  %p824_p3 = scmp.ne.s32.totalorder %s7556_s16, %s7552_s15 }
  0x4d   : > { %p825_p4 = scmp.eq.s32.totalorder %s6285_s23, 1  ;;  %p6288_p7 = scmp.ge.s32.totalorder %s7564_s22, 1 }
  0x4e   : > { %s7834_s2 = scalar_select %p806_p1, %s7560_s18, %s808_s28  }
  0x4f   : > { %p7836_p5 = por %p819_p2, %p818_p0  ;;  %p7840_p6 = por %p825_p4, %p824_p3 }
  0x50   : > { %p950_p8 = scmp.lt.s32.totalorder %s7564_s22, 3 }
  0x52   : > { %p951_p9 = pnand %p6288_p7, %p950_p8 }
  0x53   : > { %s8594_s21 = sld [smem:[#allocation9_spill]] (!%p951_p9)  ;;  %vm1057_vm0 = vcmask (!%p951_p9), 1043456   ;;  %p1035_p10 = scmp.lt.s32.totalorder (!%p951_p9), %s7819_s0, 1  ;;  %v7600_v1 = vmov (!%p951_p9), 0.0|0.0   ;;  %v1137_v2 = vld [vmem:[%s8590_s13] sm:$0xff] (!%p951_p9)  ;;  %v1138_v3 = vld [vmem:[%s8590_s13 + $0x8] sm:$0xff] (!%p951_p9) }
  0x54   : > { %954 = sbr.rel (%p951_p9) target bundleno = 11517 (0x2cfd), region = 156  ;;  %7019 = vmatprep.subr.bf16.mxu1 (!%p951_p9), %v7600_v1  ;;  %s8595_s5 = sld [smem:[#allocation5_spill]] (!%p951_p9)  ;;  %v1139_v4 = vld [vmem:[%s8590_s13 + $0x10] sm:$0xff] (!%p951_p9)  ;;  %v7020_v5 = vpack.c.bf16 (!%p951_p9), %v1138_v3, %v1137_v2  ;;  %v1140_v6 = vld [vmem:[%s8590_s13 + $0x18] sm:$0xff] (!%p951_p9)  ;;  %vm7601_vm1 = vmmov (!%p951_p9), 0   ;;  %v7602_v7 = vmov (!%p951_p9), 0.0  }
  0x55   : > { %s8596_s9 = sld [smem:[#allocation6_spill]] (!%p951_p9)  ;;  %6625 = vmatprep.mubr.msk.f32.mxu1 (!%p951_p9), %vm7601_vm1, %v7602_v7  ;;  %vm1050_vm2 = vcmask (!%p951_p9), 31744   ;;  %v7023_v8 = vpack.c.bf16 (!%p951_p9), %v1140_v6, %v1139_v4  ;;  %vm1148_vm3 = vcmask (!%p951_p9), 261120   ;;  %s8597_s17 = sld [smem:[#allocation8_spill]] (!%p951_p9)  ;;  %v6291_v12 = vld [vmem:[%s7651_s25] ss:$0 sm:$0xff] (!%p951_p9) }
  0x56   : > { %7021 = vmatpush3.bf16.msra.mxu1 (!%p951_p9), %v7020_v5  ;;  %vm1222_vm4 = vcmask (!%p951_p9), 64512   ;;  %s8522_s1 = smov (!%p951_p9), 96   ;;  %vm1303_vm6 = vcmask (!%p951_p9), 130048   ;;  %vm1931_vm7 = vcmask (!%p951_p9), 195584   ;;  %s8600_s3 = sld [smem:[#allocation10_spill]] (!%p951_p9)  ;;  %vm5315_vm8 = vcmask (!%p951_p9), 122880  }
  0x57   : > { %7022 = vmatprep.subr.bf16.mxu1 (!%p951_p9), %v7600_v1  ;;  %vm7873_vm5 = vmpackc.low (!%p951_p9), %vm1222_vm4, %vm1222_vm4  ;;  %s8601_s14 = sld [smem:[#allocation12_spill]] (!%p951_p9)  ;;  %s8610_s13 = sld [smem:[#allocation16_spill]] (!%p951_p9) }
  0x59   : > { %v1042_v0 = vld [vmem:[%s8594_s21] sm:$0xf] (!%p951_p9)  ;;  %s8628_s21 = sld [smem:[#allocation27_spill]] (!%p951_p9) }
  0x5a   : > { %6612 = vmatprep.subr.msk.mxu0 (!%p951_p9), %vm1057_vm0, %v1042_v0  ;;  %7024 = vmatpush3.bf16.msra.mxu1 (!%p951_p9), %v7023_v8 }
  0x5b   : > { %6613 = vmatpush3.msk.msra.mxu0 %vm1057_vm0, %v1042_v0  ;;  %s1036_s11 = scalar_select %p1035_p10, %s7819_s0, 1  ;;  %v1136_v11 = vld [vmem:[%s8596_s9] sm:$0xff]  ;;  %7036 = vmatprep.subr.bf16.mxu1 %v7600_v1 }
  0x5c   : > { %7025 = vmatprep.subr.bf16.mxu0 %v7600_v1  ;;  %v6295_v22 = vld [vmem:[%s8597_s17] ss:$0 sm:$0xff]  ;;  %s8609_s9 = sld [smem:[#allocation14_spill]]  ;;  %s8616_s17 = smov 8  }
  0x5d   : > { %s6414_s23 = sshll.u32 %s1036_s11, 4  ;;  %6626 = vmatmul.mubr.msk.f32.vlgmr.msra.gmra.mrb[0].mxu1 %vm1148_vm3, %v1136_v11  ;;  %s8536_s11 = smov 120  }
  0x5e   : > { %s1039_s28 = scalar_lea.vmem %s8595_s5, %s6414_s23  ;;  %6653 = vmatprep.mubr.msk.f32.mxu1 %vm7601_vm1, %v7602_v7  ;;  %s8524_s23 = smov 88  }
  0x5f   : > { %v1040_v9 = vld [vmem:[%s1039_s28] sm:$0xff]  ;;  %v1041_v10 = vld [vmem:[%s1039_s28 + $0x8] sm:$0xff]  ;;  %s8542_s28 = smov 112   ;;  %s8607_s5 = smov 72  }
  0x60   : > { %6614 = vmatprep.mubr.msk.f32.mxu0 %vm1050_vm2, %v1040_v9 }
  0x61   : > { %6615 = vmatmul.mubr.msk.f32.vlgmr.msra.gmra.mrb[0].mxu0 %vm1050_vm2, %v1041_v10 }
  0x62   : > { %6632 = vmatprep.mubr.msk.f32.mxu0 %vm7601_vm1, %v7602_v7 }
 0x130   : > { %v1218_v18 = vpop.f32.mrb[0].mxu1 }
 0x131   : > { %v6627_v21 = vpop.f32.mrb[1].mxu1  ;;  %v7889_v23 = vadd.f32 %v6295_v22, %v1218_v18 }
 0x134   : > { %v6616_v13 = vpop.f32.mrb[0].mxu0 }
 0x135   : > { %v7867_v14 = vadd.f32 %v6616_v13, %v6291_v12  ;;  %v1127_v15 = vpop.f32.mrb[1].mxu0 }
 0x136   : > { %v7869_v16 = vadd.f32 %v6291_v12, %v1127_v15 }
 0x138   : > { %v7879_v19 = vpack.i.bf16 %v7867_v14, %v7869_v16  ;;  %v7026_v20 = vpack.c.bf16 %v7867_v14, %v7869_v16 }
 0x13a   : > { %7286 = vrot.lane.b32.xlu1 %v7879_v19, %s8522_s1  ;;  %7028 = vmatpush3.bf16.xpose.msk.msra.mxu0 %vm7873_vm5, %v7026_v20  ;;  %s8526_s1 = smov 80  }
 0x13b   : > { %7029 = vmatprep.subr.bf16.mxu0 %v7600_v1 }
 0x13e   : > { %7291 = vrot.lane.b32.xlu1 %v7879_v19, %s8536_s11 }
 0x141   : > { %6633 = vmatmul.mubr.msk.f32.vlgmr.msra.gmra.mrb[2].mxu0 %vm1222_vm4, %v7889_v23 }
 0x142   : > { %6639 = vmatprep.mubr.msk.f32.mxu0 %vm7601_vm1, %v7602_v7 }
 0x1ac   : > { %v7287_v24 = vpop.permute.xlu1 %7286 }
 0x1ad   : > { %v7289_v25 = vunpack.i.h.bf16 %v7287_v24  ;;  %v7288_v26 = vunpack.i.l.bf16 %v7287_v24 }
 0x1af   : > { %v7030_v27 = vpack.c.bf16 %v7289_v25, %v7288_v26 }
 0x1b0   : > { %v7292_v38 = vpop.permute.xlu1 %7291 }
 0x1b1   : > { %7031 = vmatpush3.bf16.msra.mxu0 %v7030_v27  ;;  %v7294_v39 = vunpack.i.h.bf16 %v7292_v38  ;;  %v7293_v40 = vunpack.i.l.bf16 %v7292_v38 }
 0x1b2   : > { %7032 = vmatprep.subr.bf16.mxu0 %v7600_v1 }
 0x1b3   : > { %v7033_v43 = vpack.c.bf16 %v7294_v39, %v7293_v40 }
 0x214   : > { %v1298_v28 = vpop.f32.mrb[2].mxu0 }
 0x215   : > { %v1302_v29 = vmul.f32 0.17677669, %v1298_v28  ;;  %v6634_v30 = vpop.f32.mrb[3].mxu0 }
 0x217   : > { %v1304_v31 = vsel %vm1303_vm6, %v1302_v29, -inf }
 0x218   : > { %1305 = vmax.xlane.f32.xlu0 %v1304_v31 }
 0x2a5   : > { %v1306_v32 = vpop.xlane.xlu0 %1305 }
 0x2a6   : > { %v1307_v33 = vsub.f32 %v1302_v29, %v1306_v32 }
 0x2a8   : > { %v1308_v34 = vmul.f32 1.442695, %v1307_v33 }
 0x2aa   : > { %7390 = vpow2.f32 %v1308_v34 }
 0x2b4   : > { %v7391_v35 = vpop.eup %7390 }
 0x2b5   : > { %v1310_v36 = vsel %vm1303_vm6, %v7391_v35, 0.0 }
 0x2b6   : > { %1311 = vadd.xlane.f32.xlu0 %v1310_v36 }
 0x2cc   : > { %1395 = vrot.lane.b32.xlu0 %v7889_v23, %s8536_s11  ;;  %s8544_s11 = smov 64  }
 0x343   : > { %v1312_v37 = vpop.xlane.xlu0 %1311 }
 0x344   : > { %7392 = vrcp.f32 %v1312_v37 }
 0x347   : > { %v1396_v44 = vpop.permute.xlu0 %1395 }
 0x34e   : > { %v7393_v41 = vpop.eup %7392 }
 0x34f   : > { %v1314_v42 = vmul.f32 %v7393_v41, %v7391_v35 }
 0x351   : > { %6640 = vmatmul.mubr.msk.f32.vlgmr.msra.gmra.mrb[4].mxu0 %vm1303_vm6, %v1314_v42 }
 0x352   : > { %7035 = vmatpush3.bf16.xpose.msk.msra.mxu0 %vm7873_vm5, %v7033_v43  ;;  %6646 = vmatprep.mubr.msk.f32.mxu0 %vm7601_vm1, %v7602_v7 }
 0x353   : > { %7043 = vmatprep.subr.bf16.mxu0 %v7600_v1 }
 0x359   : > { %6647 = vmatmul.mubr.msk.f32.vlgmr.msra.gmra.mrb[6].mxu0 %vm1222_vm4, %v1396_v44 }
 0x35a   : > { %6667 = vmatprep.mubr.msk.f32.mxu0 %vm7601_vm1, %v7602_v7 }
 0x424   : > { %v7911_v45 = vpop.f32.mrb[4].mxu0 }
 0x425   : > { %v6641_v46 = vpop.f32.mrb[5].mxu0 }
 0x42c   : > { %v1473_v47 = vpop.f32.mrb[6].mxu0 }
 0x42d   : > { %v1477_v48 = vmul.f32 0.17677669, %v1473_v47  ;;  %v6648_v49 = vpop.f32.mrb[7].mxu0 }
 0x42f   : > { %v1478_v50 = vsel %vm1303_vm6, %v1477_v48, -inf }
 0x430   : > { %1479 = vmax.xlane.f32.xlu1 %v1478_v50 }
 0x441   : > { %7296 = vrot.lane.b32.xlu1 %v7879_v19, %s8524_s23  ;;  %s8528_s23 = smov 104  }
 0x445   : > { %1573 = vrot.lane.b32.xlu1 %v7889_v23, %s8542_s28 }
 0x4bd   : > { %v1480_v51 = vpop.xlane.xlu1 %1479 }
 0x4be   : > { %v1481_v52 = vsub.f32 %v1477_v48, %v1480_v51 }
 0x4c0   : > { %v1482_v53 = vmul.f32 1.442695, %v1481_v52  ;;  %v1933_v52 = vld [vmem:[%s7656_s29] sm:$0xff] }
 0x4c1   : > { %v7297_v54 = vpop.permute.xlu1 %7296 }
 0x4c2   : > { %7394 = vpow2.f32 %v1482_v53  ;;  %v7299_v55 = vunpack.i.h.bf16 %v7297_v54  ;;  %v7298_v56 = vunpack.i.l.bf16 %v7297_v54  ;;  %v1934_v53 = vld [vmem:[%s7656_s29 + $0x8] sm:$0xff] }
 0x4c3   : > { %v7054_v54 = vpack.c.bf16 %v1934_v53, %v1933_v52 }
 0x4c4   : > { %v7037_v57 = vpack.c.bf16 %v7299_v55, %v7298_v56  ;;  %v1935_v55 = vld [vmem:[%s7656_s29 + $0x10] sm:$0xff]  ;;  %v1936_v56 = vld [vmem:[%s7656_s29 + $0x18] sm:$0xff] }
 0x4c5   : > { %v1574_v4 = vpop.permute.xlu1 %1573 }
 0x4c6   : > { %7038 = vmatpush3.bf16.msra.mxu1 %v7037_v57  ;;  %v7057_v57 = vpack.c.bf16 %v1936_v56, %v1935_v55 }
 0x4c7   : > { %7039 = vmatprep.subr.bf16.mxu1 %v7600_v1 }
 0x4cc   : > { %v7395_v58 = vpop.eup %7394 }
 0x4cd   : > { %v1484_v59 = vsel %vm1303_vm6, %v7395_v58, 0.0 }
 0x4ce   : > { %1485 = vadd.xlane.f32.xlu0 %v1484_v59 }
 0x4e4   : > { %7301 = vrot.lane.b32.xlu0 %v7879_v19, %s8542_s28 }
 0x55b   : > { %v1486_v60 = vpop.xlane.xlu0 %1485 }
 0x55c   : > { %7396 = vrcp.f32 %v1486_v60 }
 0x55f   : > { %v7302_v61 = vpop.permute.xlu0 %7301 }
 0x560   : > { %v7304_v62 = vunpack.i.h.bf16 %v7302_v61  ;;  %v7303_v63 = vunpack.i.l.bf16 %v7302_v61 }
 0x562   : > { %v7040_v3 = vpack.c.bf16 %v7304_v62, %v7303_v63  ;;  %v1394_v63 = vadd.f32 %v7911_v45, %v7889_v23  ;;  %v2019_v45 = vld [vmem:[%s8591_s8] sm:$0xff] }
 0x566   : > { %v7397_v0 = vpop.eup %7396 }
 0x567   : > { %v1488_v2 = vmul.f32 %v7397_v0, %v7395_v58 }
 0x569   : > { %6654 = vmatmul.mubr.msk.f32.vlgmr.msra.gmra.mrb[2].mxu1 %vm1303_vm6, %v1488_v2 }
 0x56a   : > { %7042 = vmatpush3.bf16.xpose.msk.msra.mxu1 %vm7873_vm5, %v7040_v3  ;;  %6660 = vmatprep.mubr.msk.f32.mxu1 %vm7601_vm1, %v7602_v7 }
 0x56b   : > { %7050 = vmatprep.subr.bf16.mxu1 %v7600_v1 }
 0x571   : > { %6661 = vmatmul.mubr.msk.f32.vlgmr.msra.gmra.mrb[4].mxu1 %vm1222_vm4, %v1574_v4 }
 0x572   : > { %6681 = vmatprep.mubr.msk.f32.mxu1 %vm7601_vm1, %v7602_v7 }
 0x63c   : > { %v7931_v5 = vpop.f32.mrb[2].mxu1 }
 0x63d   : > { %v6655_v6 = vpop.f32.mrb[3].mxu1 }
 0x644   : > { %v1651_v8 = vpop.f32.mrb[4].mxu1 }
 0x645   : > { %v1655_v9 = vmul.f32 0.17677669, %v1651_v8  ;;  %v6662_v10 = vpop.f32.mrb[5].mxu1 }
 0x647   : > { %v1656_v11 = vsel %vm1303_vm6, %v1655_v9, -inf }
 0x648   : > { %1657 = vmax.xlane.f32.xlu1 %v1656_v11  ;;  %v2021_v11 = vld [vmem:[%s8591_s8 + $0x10] sm:$0xff] }
 0x659   : > { %7306 = vrot.lane.b32.xlu1 %v7879_v19, %s8526_s1  ;;  %s8530_s1 = smov 72  }
 0x65d   : > { %1751 = vrot.lane.b32.xlu1 %v7889_v23, %s8528_s23 }
 0x6d5   : > { %v1658_v12 = vpop.xlane.xlu1 %1657 }
 0x6d6   : > { %v1659_v13 = vsub.f32 %v1655_v9, %v1658_v12  ;;  %v2020_v9 = vld [vmem:[%s8591_s8 + $0x8] sm:$0xff]  ;;  %v2022_v12 = vld [vmem:[%s8591_s8 + $0x18] sm:$0xff]  ;;  %s8608_s8 = smov 64  }
 0x6d7   : > { %v7060_v10 = vpack.c.bf16 %v2020_v9, %v2019_v45 }
 0x6d8   : > { %v1660_v15 = vmul.f32 1.442695, %v1659_v13  ;;  %v7063_v13 = vpack.c.bf16 %v2022_v12, %v2021_v11 }
 0x6d9   : > { %v7307_v18 = vpop.permute.xlu1 %7306 }
 0x6da   : > { %7398 = vpow2.f32 %v1660_v15  ;;  %v7309_v20 = vunpack.i.h.bf16 %v7307_v18  ;;  %v7308_v21 = vunpack.i.l.bf16 %v7307_v18 }
 0x6dc   : > { %v7044_v22 = vpack.c.bf16 %v7309_v20, %v7308_v21 }
 0x6dd   : > { %v1752_v33 = vpop.permute.xlu1 %1751 }
 0x6de   : > { %7045 = vmatpush3.bf16.msra.mxu0 %v7044_v22 }
 0x6df   : > { %7046 = vmatprep.subr.bf16.mxu0 %v7600_v1 }
 0x6e4   : > { %v7399_v24 = vpop.eup %7398 }
 0x6e5   : > { %v1662_v25 = vsel %vm1303_vm6, %v7399_v24, 0.0 }
 0x6e6   : > { %1663 = vadd.xlane.f32.xlu0 %v1662_v25 }
 0x6fc   : > { %7311 = vrot.lane.b32.xlu0 %v7879_v19, %s8528_s23  ;;  %s8532_s23 = smov 16  }
 0x773   : > { %v1664_v26 = vpop.xlane.xlu0 %1663 }
 0x774   : > { %7400 = vrcp.f32 %v1664_v26 }
 0x777   : > { %v7312_v27 = vpop.permute.xlu0 %7311 }
 0x778   : > { %v7314_v28 = vunpack.i.h.bf16 %v7312_v27  ;;  %v7313_v29 = vunpack.i.l.bf16 %v7312_v27 }
 0x77a   : > { %v7047_v32 = vpack.c.bf16 %v7314_v28, %v7313_v29 }
 0x77e   : > { %v7401_v30 = vpop.eup %7400 }
 0x77f   : > { %v1666_v31 = vmul.f32 %v7401_v30, %v7399_v24  ;;  %v6315_v24 = vld [vmem:[%s8601_s14] ss:$0 sm:$0xff]  ;;  %s8611_s14 = sld [smem:[#allocation18_spill]] }
 0x781   : > { %6668 = vmatmul.mubr.msk.f32.vlgmr.msra.gmra.mrb[8].mxu0 %vm1303_vm6, %v1666_v31 }
 0x782   : > { %7049 = vmatpush3.bf16.xpose.msk.msra.mxu0 %vm7873_vm5, %v7047_v32  ;;  %6674 = vmatprep.mubr.msk.f32.mxu0 %vm7601_vm1, %v7602_v7 }
 0x783   : > { %7059 = vmatprep.subr.bf16.mxu0 %v7600_v1 }
 0x789   : > { %6675 = vmatmul.mubr.msk.f32.vlgmr.msra.gmra.mrb[10].mxu0 %vm1222_vm4, %v1752_v33 }
 0x78a   : > { %6703 = vmatprep.mubr.msk.f32.mxu0 %vm7601_vm1, %v7602_v7  ;;  %7061 = vmatpush3.bf16.msra.mxu0 %v7060_v10 }
 0x78b   : > { %7062 = vmatprep.subr.bf16.mxu0 %v7600_v1 }
 0x78e   : > { %7064 = vmatpush3.bf16.msra.mxu0 %v7063_v13 }
 0x854   : > { %v1742_v34 = vpop.f32.mrb[8].mxu0 }
 0x855   : > { %v6669_v35 = vpop.f32.mrb[9].mxu0 }
 0x85c   : > { %v1829_v36 = vpop.f32.mrb[10].mxu0 }
 0x85d   : > { %v1833_v37 = vmul.f32 0.17677669, %v1829_v36  ;;  %v6676_v38 = vpop.f32.mrb[11].mxu0 }
 0x85f   : > { %v1834_v39 = vsel %vm1303_vm6, %v1833_v37, -inf }
 0x860   : > { %1835 = vmax.xlane.f32.xlu1 %v1834_v39 }
 0x871   : > { %7316 = vrot.lane.b32.xlu1 %v7879_v19, %s8530_s1  ;;  %s8534_s1 = smov 8  }
 0x875   : > { %1747 = vrot.lane.b32.xlu1 %v1742_v34, %s8532_s23  ;;  %s8540_s23 = smov 56  }
 0x8ed   : > { %v1836_v40 = vpop.xlane.xlu1 %1835 }
 0x8ee   : > { %v1837_v41 = vsub.f32 %v1833_v37, %v1836_v40 }
 0x8f0   : > { %v1838_v42 = vmul.f32 1.442695, %v1837_v41 }
 0x8f1   : > { %v7317_v43 = vpop.permute.xlu1 %7316 }
 0x8f2   : > { %7402 = vpow2.f32 %v1838_v42  ;;  %v7319_v44 = vunpack.i.h.bf16 %v7317_v43  ;;  %v7318_v46 = vunpack.i.l.bf16 %v7317_v43 }
 0x8f4   : > { %v7051_v47 = vpack.c.bf16 %v7319_v44, %v7318_v46 }
 0x8f5   : > { %v1748_v62 = vpop.permute.xlu1 %1747 }
 0x8f6   : > { %7052 = vmatpush3.bf16.msra.mxu1 %v7051_v47  ;;  %v1750_v2 = vadd.f32 %v1748_v62, %v7889_v23 }
 0x8f7   : > { %7053 = vmatprep.subr.bf16.mxu1 %v7600_v1 }
 0x8fc   : > { %v7403_v48 = vpop.eup %7402 }
 0x8fd   : > { %v1840_v49 = vsel %vm1303_vm6, %v7403_v48, 0.0 }
 0x8fe   : > { %1841 = vadd.xlane.f32.xlu0 %v1840_v49 }
 0x914   : > { %1569 = vrot.lane.b32.xlu0 %v7931_v5, %s8534_s1  ;;  %s8538_s1 = smov 24  }
 0x918   : > { %2309 = vrot.lane.b32.xlu0 %v7867_v14, %s8540_s23 }
 0x98b   : > { %v1842_v19 = vpop.xlane.xlu0 %1841 }
 0x98c   : > { %7404 = vrcp.f32 %v1842_v19 }
 0x98f   : > { %v1570_v60 = vpop.permute.xlu0 %1569 }
 0x990   : > { %v1572_v61 = vadd.f32 %v1570_v60, %v7889_v23 }
 0x992   : > { %v1929_v0 = vsel %vm1222_vm4, %v1394_v63, %v1572_v61 }
 0x993   : > { %v1930_v5 = vsel %vm1303_vm6, %v1929_v0, %v1750_v2  ;;  %v2310_v30 = vpop.permute.xlu0 %2309 }
 0x996   : > { %v7405_v50 = vpop.eup %7404 }
 0x997   : > { %v1844_v51 = vmul.f32 %v7405_v50, %v7403_v48 }
 0x999   : > { %6682 = vmatmul.mubr.msk.f32.vlgmr.msra.gmra.mrb[6].mxu1 %vm1303_vm6, %v1844_v51 }
 0x99a   : > { %6692 = vmatprep.mubr.msk.f32.mxu1 %vm7601_vm1, %v7602_v7  ;;  %7055 = vmatpush3.bf16.msra.mxu1 %v7054_v54 }
 0x99b   : > { %7056 = vmatprep.subr.bf16.mxu1 %v7600_v1 }
 0x99e   : > { %7058 = vmatpush3.bf16.msra.mxu1 %v7057_v57 }
 0xa6c   : > { %v1920_v58 = vpop.f32.mrb[6].mxu1 }
 0xa6d   : > { %1925 = vrot.lane.b32.xlu1 %v1920_v58, %s8538_s1  ;;  %v6683_v59 = vpop.f32.mrb[7].mxu1  ;;  %s8602_s1 = smov 120  }
 0xa71   : > { %2103 = vrot.lane.b32.xlu1 %v7869_v16, %s8544_s11 }
 0xa75   : > { %2105 = vrot.lane.b32.xlu1 %v7867_v14, %s8544_s11  ;;  %s8603_s11 = smov 104  }
 0xa79   : > { %2307 = vrot.lane.b32.xlu1 %v7869_v16, %s8540_s23  ;;  %s8548_s23 = smov 48  }
 0xadf   : > { %v1926_v3 = vpop.permute.xlu1 %1925 }
 0xae0   : > { %v1928_v4 = vadd.f32 %v1926_v3, %v7889_v23  ;;  %v6313_v23 = vld [vmem:[%s8600_s3] ss:$0 sm:$0xff]  ;;  %s8606_s3 = smov 80  }
 0xae2   : > { %v1932_v6 = vsel %vm1931_vm7, %v1930_v5, %v1928_v4 }
 0xae3   : > { %6693 = vmatmul.mubr.msk.f32.vlgmr.msra.gmra.mrb[8].mxu1 %vm1148_vm3, %v1932_v6  ;;  %v2104_v8 = vpop.permute.xlu1 %2103 }
 0xae4   : > { %6708 = vmatprep.mubr.msk.f32.mxu1 %vm1222_vm4, %v2104_v8 }
 0xae7   : > { %v2106_v28 = vpop.permute.xlu1 %2105 }
 0xaeb   : > { %v2308_v29 = vpop.permute.xlu1 %2307 }
 0xbb6   : > { %v2013_v15 = vpop.f32.mrb[8].mxu1 }
 0xbb7   : > { %v2014_v18 = vadd.f32 %v6313_v23, %v2013_v15  ;;  %v6694_v20 = vpop.f32.mrb[9].mxu1 }
 0xbb9   : > { %v2017_v21 = vmax.f32 %v2014_v18, 0.0 }
 0xbbb   : > { %v2018_v22 = vadd.f32 %v2017_v21, %v1932_v6 }
 0xbbd   : > { %6704 = vmatmul.mubr.msk.f32.vlgmr.msra.gmra.mrb[12].mxu0 %vm1148_vm3, %v2018_v22 }
 0xc90   : > { %v2099_v25 = vpop.f32.mrb[12].mxu0 }
 0xc91   : > { %v7994_v26 = vadd.f32 %v6315_v24, %v2099_v25  ;;  %v6705_v27 = vpop.f32.mrb[13].mxu0 }
 0xc93   : > { %2516 = vrot.lane.b32.xlu1 %v7994_v26, %s8542_s28  ;;  %2311 = vrot.lane.b32.xlu0 %v7994_v26, %s8602_s1  ;;  %s8546_s28 = smov 40  }
 0xc94   : > { %6706 = vmatprep.subr.msk.mxu1 %vm1222_vm4, %v7994_v26 }
 0xc95   : > { %6707 = vmatpush3.xpose.msk.msra.mxu1 %vm1222_vm4, %v7994_v26 }
 0xc97   : > { %2514 = vrot.lane.b32.xlu1 %v7867_v14, %s8548_s23  ;;  %2512 = vrot.lane.b32.xlu0 %v7869_v16, %s8548_s23  ;;  %s8605_s23 = smov 96  }
 0xc98   : > { %6709 = vmatmul.mubr.msk.f32.vlgmr.msra.gmra.mrb[10].mxu1 %vm1222_vm4, %v2106_v28 }
 0xc99   : > { %6718 = vmatprep.mubr.msk.f32.mxu1 %vm1222_vm4, %v2308_v29 }
 0xc9b   : > { %2717 = vrot.lane.b32.xlu1 %v7869_v16, %s8546_s28  ;;  %2721 = vrot.lane.b32.xlu0 %v7994_v26, %s8603_s11 }
 0xc9f   : > { %2719 = vrot.lane.b32.xlu0 %v7867_v14, %s8546_s28  ;;  %s8604_s28 = smov 88  }
 0xd05   : > { %v2517_v31 = vpop.permute.xlu1 %2516  ;;  %v2312_v32 = vpop.permute.xlu0 %2311 }
 0xd06   : > { %6716 = vmatprep.subr.msk.mxu1 %vm1222_vm4, %v2312_v32 }
 0xd07   : > { %6717 = vmatpush3.xpose.msk.msra.mxu1 %vm1222_vm4, %v2312_v32 }
 0xd08   : > { %6726 = vmatprep.subr.msk.mxu1 %vm1222_vm4, %v2517_v31 }
 0xd09   : > { %v2515_v33 = vpop.permute.xlu1 %2514  ;;  %v2513_v34 = vpop.permute.xlu0 %2512 }
 0xd0a   : > { %6719 = vmatmul.mubr.msk.f32.vlgmr.msra.gmra.mrb[12].mxu1 %vm1222_vm4, %v2310_v30 }
 0xd0b   : > { %6727 = vmatpush3.xpose.msk.msra.mxu1 %vm1222_vm4, %v2517_v31  ;;  %6728 = vmatprep.mubr.msk.f32.mxu1 %vm1222_vm4, %v2513_v34 }
 0xd0d   : > { %v2718_v35 = vpop.permute.xlu1 %2717  ;;  %v2722_v36 = vpop.permute.xlu0 %2721 }
 0xd0e   : > { %6729 = vmatmul.mubr.msk.f32.vlgmr.msra.gmra.mrb[14].mxu1 %vm1222_vm4, %v2515_v33  ;;  %6736 = vmatprep.subr.msk.mxu1 %vm1222_vm4, %v2722_v36 }
 0xd0f   : > { %6737 = vmatpush3.xpose.msk.msra.mxu1 %vm1222_vm4, %v2722_v36  ;;  %6738 = vmatprep.mubr.msk.f32.mxu1 %vm1222_vm4, %v2718_v35 }
 0xd11   : > { %v2720_v37 = vpop.permute.xlu0 %2719 }
 0xd12   : > { %6739 = vmatmul.mubr.msk.f32.vlgmr.msra.gmra.mrb[16].mxu1 %vm1222_vm4, %v2720_v37 }
 0xd6b   : > { %v6710_v38 = vpop.f32.mrb[10].mxu1 }
 0xd6c   : > { %v2190_v39 = vmul.f32 0.17677669, %v6710_v38  ;;  %v2180_v40 = vpop.f32.mrb[11].mxu1 }
 0xd6d   : > { %v2189_v41 = vmul.f32 0.17677669, %v2180_v40 }
 0xd6e   : > { %v2194_v42 = vsel %vm1222_vm4, %v2190_v39, -inf }
 0xd6f   : > { %2195 = vmax.xlane.f32.xlu0 %v2194_v42  ;;  %v2191_v43 = vsel %vm1222_vm4, %v2189_v41, -inf }
 0xd70   : > { %2192 = vmax.xlane.f32.xlu1 %v2191_v43 }
 0xddd   : > { %v6720_v44 = vpop.f32.mrb[12].mxu1 }
 0xdde   : > { %v2395_v46 = vmul.f32 0.17677669, %v6720_v44  ;;  %v2385_v47 = vpop.f32.mrb[13].mxu1 }
 0xddf   : > { %v2394_v48 = vmul.f32 0.17677669, %v2385_v47 }
 0xde0   : > { %v2399_v49 = vsel %vm1222_vm4, %v2395_v46, -inf }
 0xde1   : > { %v6730_v19 = vpop.f32.mrb[14].mxu1  ;;  %2400 = vmax.xlane.f32.xlu1 %v2399_v49  ;;  %v2396_v50 = vsel %vm1222_vm4, %v2394_v48, -inf }
 0xde2   : > { %v2600_v51 = vmul.f32 0.17677669, %v6730_v19  ;;  %v2590_v52 = vpop.f32.mrb[15].mxu1  ;;  %2397 = vmax.xlane.f32.xlu0 %v2396_v50 }
 0xde3   : > { %v2599_v53 = vmul.f32 0.17677669, %v2590_v52 }
 0xde4   : > { %v2604_v54 = vsel %vm1222_vm4, %v2600_v51, -inf }
 0xde5   : > { %v6740_v55 = vpop.f32.mrb[16].mxu1  ;;  %2605 = vmax.xlane.f32.xlu1 %v2604_v54  ;;  %v2601_v56 = vsel %vm1222_vm4, %v2599_v53, -inf }
 0xde6   : > { %v2805_v57 = vmul.f32 0.17677669, %v6740_v55  ;;  %v2795_v58 = vpop.f32.mrb[17].mxu1  ;;  %2602 = vmax.xlane.f32.xlu0 %v2601_v56 }
 0xde7   : > { %v2804_v59 = vmul.f32 0.17677669, %v2795_v58 }
 0xde8   : > { %v2809_v60 = vsel %vm1222_vm4, %v2805_v57, -inf }
 0xde9   : > { %2810 = vmax.xlane.f32.xlu1 %v2809_v60  ;;  %v2806_v61 = vsel %vm1222_vm4, %v2804_v59, -inf }
 0xdea   : > { %2807 = vmax.xlane.f32.xlu0 %v2806_v61 }
 0xdfa   : > { %2418 = vrot.lane.b32.xlu1 %v7994_v26, %s8604_s28 }
 0xdfc   : > { %v2196_v62 = vpop.xlane.xlu0 %2195 }
 0xdfd   : > { %v2193_v63 = vpop.xlane.xlu1 %2192  ;;  %v2198_v0 = vsub.f32 %v2190_v39, %v2196_v62 }
 0xdfe   : > { %v2197_v2 = vsub.f32 %v2189_v41, %v2193_v63 }
 0xdff   : > { %v2201_v3 = vmul.f32 1.442695, %v2198_v0 }
 0xe00   : > { %2213 = vrot.lane.b32.xlu0 %v7994_v26, %s8605_s23  ;;  %v2199_v4 = vmul.f32 1.442695, %v2197_v2 }
 0xe01   : > { %7406 = vpow2.f32 %v2201_v3 }
 0xe02   : > { %7408 = vpow2.f32 %v2199_v4 }
 0xe0b   : > { %v7407_v5 = vpop.eup %7406 }
 0xe0c   : > { %v7409_v6 = vpop.eup %7408  ;;  %v2206_v8 = vsel %vm1222_vm4, %v7407_v5, 0.0 }
 0xe0d   : > { %v2203_v45 = vsel %vm1222_vm4, %v7409_v6, 0.0 }
 0xe1e   : > { %2207 = vadd.xlane.f32.xlu1 %v2206_v8 }
 0xe1f   : > { %2204 = vadd.xlane.f32.xlu0 %v2203_v45 }
 0xe6e   : > { %v2401_v9 = vpop.xlane.xlu1 %2400 }
 0xe6f   : > { %v2403_v10 = vsub.f32 %v2395_v46, %v2401_v9  ;;  %v2398_v11 = vpop.xlane.xlu0 %2397 }
 0xe70   : > { %v2402_v12 = vsub.f32 %v2394_v48, %v2398_v11 }
 0xe71   : > { %v2406_v13 = vmul.f32 1.442695, %v2403_v10 }
 0xe72   : > { %v2404_v23 = vmul.f32 1.442695, %v2402_v12  ;;  %v2606_v15 = vpop.xlane.xlu1 %2605 }
 0xe73   : > { %7410 = vpow2.f32 %v2406_v13  ;;  %v2608_v18 = vsub.f32 %v2600_v51, %v2606_v15  ;;  %v2603_v20 = vpop.xlane.xlu0 %2602 }
 0xe74   : > { %7412 = vpow2.f32 %v2404_v23  ;;  %v2607_v21 = vsub.f32 %v2599_v53, %v2603_v20 }
 0xe75   : > { %v2611_v22 = vmul.f32 1.442695, %v2608_v18 }
 0xe76   : > { %v2609_v24 = vmul.f32 1.442695, %v2607_v21  ;;  %v2811_v25 = vpop.xlane.xlu1 %2810 }
 0xe77   : > { %7414 = vpow2.f32 %v2611_v22  ;;  %v2813_v27 = vsub.f32 %v2805_v57, %v2811_v25  ;;  %v2808_v28 = vpop.xlane.xlu0 %2807  ;;  %v2961_v25 = vld [vmem:[%s8588_s19 + $0x8] sm:$0xff] }
 0xe78   : > { %7416 = vpow2.f32 %v2609_v24  ;;  %v2812_v29 = vsub.f32 %v2804_v59, %v2808_v28  ;;  %v2960_v24 = vld [vmem:[%s8588_s19] sm:$0xff]  ;;  %v2962_v28 = vld [vmem:[%s8588_s19 + $0x10] sm:$0xff] }
 0xe79   : > { %v2816_v30 = vmul.f32 1.442695, %v2813_v27  ;;  %v7065_v27 = vpack.c.bf16 %v2961_v25, %v2960_v24 }
 0xe7a   : > { %v2814_v31 = vmul.f32 1.442695, %v2812_v29  ;;  %v2419_v34 = vpop.permute.xlu1 %2418  ;;  %v2963_v29 = vld [vmem:[%s8588_s19 + $0x18] sm:$0xff]  ;;  %s8617_s19 = smov 24  }
 0xe7b   : > { %7418 = vpow2.f32 %v2816_v30  ;;  %v2214_v32 = vpop.permute.xlu0 %2213  ;;  %7066 = vmatprep.subr.bf16.mxu1 %v7065_v27  ;;  %v7069_v30 = vpack.c.bf16 %v2963_v29, %v2962_v28 }
 0xe7c   : > { %7420 = vpow2.f32 %v2814_v31  ;;  %6711 = vmatprep.subr.mxu0 %v2214_v32  ;;  %7068 = vmatpush3.bf16.msra.mxu1 %v7065_v27 }
 0xe7d   : > { %v7411_v33 = vpop.eup %7410  ;;  %6712 = vmatpush3.msra.mxu0 %v2214_v32  ;;  %7070 = vmatprep.subr.bf16.mxu1 %v7069_v30 }
 0xe7e   : > { %v7413_v35 = vpop.eup %7412  ;;  %6721 = vmatprep.subr.mxu0 %v2419_v34  ;;  %v2411_v36 = vsel %vm1222_vm4, %v7411_v33, 0.0 }
 0xe7f   : > { %2412 = vadd.xlane.f32.xlu1 %v2411_v36  ;;  %v2408_v37 = vsel %vm1222_vm4, %v7413_v35, 0.0 }
 0xe80   : > { %2409 = vadd.xlane.f32.xlu0 %v2408_v37  ;;  %7072 = vmatpush3.bf16.msra.mxu1 %v7069_v30 }
 0xe81   : > { %v7415_v38 = vpop.eup %7414  ;;  %7081 = vmatprep.subr.bf16.mxu1 %v7600_v1 }
 0xe82   : > { %v7417_v39 = vpop.eup %7416  ;;  %v2616_v40 = vsel %vm1222_vm4, %v7415_v38, 0.0 }
 0xe83   : > { %2617 = vadd.xlane.f32.xlu1 %v2616_v40  ;;  %v2613_v41 = vsel %vm1222_vm4, %v7417_v39, 0.0 }
 0xe84   : > { %2614 = vadd.xlane.f32.xlu0 %v2613_v41 }
 0xe85   : > { %v7419_v42 = vpop.eup %7418 }
 0xe86   : > { %v7421_v43 = vpop.eup %7420  ;;  %v2821_v44 = vsel %vm1222_vm4, %v7419_v42, 0.0 }
 0xe87   : > { %2822 = vadd.xlane.f32.xlu1 %v2821_v44  ;;  %v2818_v46 = vsel %vm1222_vm4, %v7421_v43, 0.0 }
 0xe88   : > { %2819 = vadd.xlane.f32.xlu0 %v2818_v46 }
 0xe98   : > { %2623 = vrot.lane.b32.xlu1 %v7994_v26, %s8606_s3 }
 0xe9e   : > { %2828 = vrot.lane.b32.xlu0 %v7994_v26, %s8607_s5 }
 0xeab   : > { %v2208_v47 = vpop.xlane.xlu1 %2207 }
 0xeac   : > { %7422 = vrcp.f32 %v2208_v47  ;;  %v2205_v48 = vpop.xlane.xlu0 %2204 }
 0xead   : > { %7424 = vrcp.f32 %v2205_v48 }
 0xeb6   : > { %v7423_v49 = vpop.eup %7422 }
 0xeb7   : > { %v7425_v19 = vpop.eup %7424  ;;  %v2212_v51 = vmul.f32 %v7423_v49, %v7407_v5 }
 0xeb8   : > { %v2210_v50 = vmul.f32 %v7425_v19, %v7409_v6 }
 0xeba   : > { %6713 = vmatprep.mubr.msk.f32.mxu0 %vm1222_vm4, %v2210_v50 }
 0xebb   : > { %6714 = vmatmul.mubr.msk.f32.vlgmr.msra.gmra.mrb[14].mxu0 %vm1222_vm4, %v2212_v51 }
 0xebc   : > { %6722 = vmatpush3.msra.mxu0 %v2419_v34 }
 0xf0c   : > { %v2413_v52 = vpop.xlane.xlu1 %2412 }
 0xf0d   : > { %7426 = vrcp.f32 %v2413_v52  ;;  %v2410_v53 = vpop.xlane.xlu0 %2409 }
 0xf0e   : > { %7428 = vrcp.f32 %v2410_v53 }
 0xf10   : > { %v2618_v54 = vpop.xlane.xlu1 %2617 }
 0xf11   : > { %7430 = vrcp.f32 %v2618_v54  ;;  %v2615_v26 = vpop.xlane.xlu0 %2614 }
 0xf12   : > { %7432 = vrcp.f32 %v2615_v26  ;;  %v3056_v26 = vld [vmem:[%s8587_s20] sm:$0xff] }
 0xf14   : > { %v2823_v55 = vpop.xlane.xlu1 %2822 }
 0xf15   : > { %7434 = vrcp.f32 %v2823_v55  ;;  %v2820_v56 = vpop.xlane.xlu0 %2819  ;;  %v3057_v55 = vld [vmem:[%s8587_s20 + $0x8] sm:$0xff] }
 0xf16   : > { %7436 = vrcp.f32 %v2820_v56  ;;  %v7073_v56 = vpack.c.bf16 %v3057_v55, %v3056_v26 }
 0xf17   : > { %v7427_v57 = vpop.eup %7426 }
 0xf18   : > { %v7429_v58 = vpop.eup %7428  ;;  %v2624_v59 = vpop.permute.xlu1 %2623  ;;  %v2417_v61 = vmul.f32 %v7427_v57, %v7411_v33  ;;  %v3058_v57 = vld [vmem:[%s8587_s20 + $0x10] sm:$0xff] }
 0xf19   : > { %6731 = vmatprep.subr.mxu0 %v2624_v59  ;;  %v2415_v60 = vmul.f32 %v7429_v58, %v7413_v35  ;;  %v2829_v0 = vpop.permute.xlu0 %2828  ;;  %v3059_v58 = vld [vmem:[%s8587_s20 + $0x18] sm:$0xff]  ;;  %s8618_s20 = sld [smem:[#allocation21_spill]] }
 0xf1b   : > { %v7431_v62 = vpop.eup %7430  ;;  %6723 = vmatprep.mubr.msk.f32.mxu0 %vm1222_vm4, %v2415_v60  ;;  %v3149_v60 = vld [vmem:[%s8589_s6] sm:$0xff] }
 0xf1c   : > { %v7433_v63 = vpop.eup %7432  ;;  %6724 = vmatmul.mubr.msk.f32.vlgmr.msra.gmra.mrb[16].mxu0 %vm1222_vm4, %v2417_v61  ;;  %v2622_v3 = vmul.f32 %v7431_v62, %v7415_v38  ;;  %v3150_v61 = vld [vmem:[%s8589_s6 + $0x8] sm:$0xff]  ;;  %v3151_v62 = vld [vmem:[%s8589_s6 + $0x10] sm:$0xff] }
 0xf1d   : > { %6732 = vmatpush3.msra.mxu0 %v2624_v59  ;;  %v2620_v2 = vmul.f32 %v7433_v63, %v7417_v39  ;;  %v7077_v59 = vpack.c.bf16 %v3059_v58, %v3058_v57  ;;  %v7082_v63 = vpack.c.bf16 %v3150_v61, %v3149_v60 }
 0xf1e   : > { %6741 = vmatprep.subr.mxu0 %v2829_v0 }
 0xf1f   : > { %v7435_v4 = vpop.eup %7434  ;;  %6733 = vmatprep.mubr.msk.f32.mxu0 %vm1222_vm4, %v2620_v2 }
 0xf20   : > { %v7437_v5 = vpop.eup %7436  ;;  %6734 = vmatmul.mubr.msk.f32.vlgmr.msra.gmra.mrb[18].mxu0 %vm1222_vm4, %v2622_v3  ;;  %v2827_v8 = vmul.f32 %v7435_v4, %v7419_v42  ;;  %v3148_v3 = vld [vmem:[%s7686_s30] sm:$0xff] }
 0xf21   : > { %6742 = vmatpush3.msra.mxu0 %v2829_v0  ;;  %v2825_v6 = vmul.f32 %v7437_v5, %v7421_v43  ;;  %v3152_v0 = vld [vmem:[%s8589_s6 + $0x18] sm:$0xff]  ;;  %v6337_v4 = vld [vmem:[%s8609_s9] ss:$0 sm:$0xff]  ;;  %s8612_s9 = smov 112   ;;  %s8615_s6 = sld [smem:[#allocation19_spill]] }
 0xf22   : > { %7074 = vmatprep.subr.bf16.mxu0 %v7073_v56  ;;  %v7085_v2 = vpack.c.bf16 %v3152_v0, %v3151_v62 }
 0xf23   : > { %6743 = vmatprep.mubr.msk.f32.mxu0 %vm1222_vm4, %v2825_v6 }
 0xf24   : > { %6744 = vmatmul.mubr.msk.f32.vlgmr.msra.gmra.mrb[20].mxu0 %vm1222_vm4, %v2827_v8 }
 0xf25   : > { %7076 = vmatpush3.bf16.msra.mxu0 %v7073_v56 }
 0xf26   : > { %7078 = vmatprep.subr.bf16.mxu0 %v7077_v59 }
 0xf29   : > { %7080 = vmatpush3.bf16.msra.mxu0 %v7077_v59 }
 0xf2a   : > { %7087 = vmatprep.subr.bf16.mxu0 %v7600_v1 }
 0xf8e   : > { %v6715_v45 = vpop.f32.mrb[14].mxu0 }
 0xf8f   : > { %2301 = vrot.lane.b32.xlu1 %v6715_v45, %s8608_s8  ;;  %v2288_v9 = vpop.f32.mrb[15].mxu0 }
 0xf93   : > { %2299 = vrot.lane.b32.xlu1 %v2288_v9, %s8608_s8 }
 0xfef   : > { %v6725_v10 = vpop.f32.mrb[16].mxu0 }
 0xff0   : > { %2506 = vrot.lane.b32.xlu0 %v6725_v10, %s8607_s5  ;;  %v2493_v11 = vpop.f32.mrb[17].mxu0 }
 0xff3   : > { %v6735_v12 = vpop.f32.mrb[18].mxu0 }
 0xff4   : > { %2504 = vrot.lane.b32.xlu0 %v2493_v11, %s8607_s5  ;;  %v2698_v13 = vpop.f32.mrb[19].mxu0 }
 0xff5   : > { %2709 = vrot.lane.b32.xlu1 %v2698_v13, %s8606_s3  ;;  %v6343_v13 = vld [vmem:[%s8610_s13] ss:$0 sm:$0xff]  ;;  %s8613_s13 = smov 16  }
 0xff7   : > { %v6745_v23 = vpop.f32.mrb[20].mxu0 }
 0xff8   : > { %2711 = vrot.lane.b32.xlu0 %v6735_v12, %s8606_s3  ;;  %v2903_v15 = vpop.f32.mrb[21].mxu0 }
 0xff9   : > { %2914 = vrot.lane.b32.xlu1 %v2903_v15, %s8604_s28 }
 0xffc   : > { %2916 = vrot.lane.b32.xlu0 %v6745_v23, %s8604_s28 }
0x1001   : > { %v2302_v18 = vpop.permute.xlu1 %2301 }
0x1002   : > { %v2306_v22 = vadd.f32 %v2302_v18, %v7867_v14 }
0x1005   : > { %v2300_v20 = vpop.permute.xlu1 %2299 }
0x1006   : > { %v2305_v21 = vadd.f32 %v2300_v20, %v7869_v16  ;;  %v6340_v20 = vld [vmem:[%s8611_s14] ss:$0 sm:$0xff]  ;;  %s8614_s14 = smov 56  }
0x1008   : > { %2924 = vrot.lane.b32.xlu1 %v2305_v21, %s8608_s8 }
0x100c   : > { %2926 = vrot.lane.b32.xlu1 %v2306_v22, %s8608_s8 }
0x1062   : > { %v2507_v31 = vpop.permute.xlu0 %2506 }
0x1063   : > { %v2511_v32 = vadd.f32 %v2507_v31, %v7867_v14 }
0x1065   : > { %2934 = vrot.lane.b32.xlu0 %v2511_v32, %s8608_s8 }
0x1066   : > { %v2505_v33 = vpop.permute.xlu0 %2504 }
0x1067   : > { %v2510_v34 = vadd.f32 %v2505_v33, %v7869_v16  ;;  %v2710_v35 = vpop.permute.xlu1 %2709 }
0x1068   : > { %v2715_v36 = vadd.f32 %v2710_v35, %v7869_v16 }
0x1069   : > { %2932 = vrot.lane.b32.xlu0 %v2510_v34, %s8608_s8 }
0x106a   : > { %v2712_v37 = vpop.permute.xlu0 %2711  ;;  %2940 = vrot.lane.b32.xlu1 %v2715_v36, %s8608_s8 }
0x106b   : > { %v2716_v38 = vadd.f32 %v2712_v37, %v7867_v14  ;;  %v2915_v39 = vpop.permute.xlu1 %2914 }
0x106c   : > { %v2920_v40 = vadd.f32 %v2915_v39, %v7869_v16 }
0x106d   : > { %2942 = vrot.lane.b32.xlu0 %v2716_v38, %s8608_s8 }
0x106e   : > { %v2917_v41 = vpop.permute.xlu0 %2916  ;;  %2948 = vrot.lane.b32.xlu1 %v2920_v40, %s8608_s8 }
0x106f   : > { %v2921_v42 = vadd.f32 %v2917_v41, %v7867_v14 }
0x1071   : > { %2950 = vrot.lane.b32.xlu0 %v2921_v42, %s8608_s8 }
0x107a   : > { %v2925_v43 = vpop.permute.xlu1 %2924 }
0x107e   : > { %v2927_v46 = vpop.permute.xlu1 %2926 }
0x10d7   : > { %v2935_v44 = vpop.permute.xlu0 %2934 }
0x10d8   : > { %v2955_v14 = vsel %vm1222_vm4, %v2927_v46, %v2935_v44 }
0x10db   : > { %v2933_v47 = vpop.permute.xlu0 %2932 }
0x10dc   : > { %v2941_v48 = vpop.permute.xlu1 %2940  ;;  %v2954_v49 = vsel %vm1222_vm4, %v2925_v43, %v2933_v47 }
0x10dd   : > { %v2956_v16 = vsel %vm1303_vm6, %v2954_v49, %v2941_v48 }
0x10df   : > { %v2943_v19 = vpop.permute.xlu0 %2942 }
0x10e0   : > { %v2949_v50 = vpop.permute.xlu1 %2948  ;;  %v2957_v52 = vsel %vm1303_vm6, %v2955_v14, %v2943_v19 }
0x10e1   : > { %v2958_v51 = vsel %vm1931_vm7, %v2956_v16, %v2949_v50 }
0x10e2   : > { %6754 = vmatprep.mubr.msk.f32.mxu1 %vm1148_vm3, %v2958_v51 }
0x10e3   : > { %v2951_v53 = vpop.permute.xlu0 %2950 }
0x10e4   : > { %v2959_v54 = vsel %vm1931_vm7, %v2957_v52, %v2951_v53 }
0x10e5   : > { %6755 = vmatmul.mubr.msk.f32.vlgmr.msra.gmra.mrb[18].mxu1 %vm1148_vm3, %v2959_v54 }
0x10e6   : > { %6776 = vmatprep.mubr.msk.f32.mxu1 %vm7601_vm1, %v7602_v7  ;;  %7083 = vmatpush3.bf16.msra.mxu1 %v7082_v63 }
0x10e7   : > { %7084 = vmatprep.subr.bf16.mxu1 %v7600_v1 }
0x10ea   : > { %7086 = vmatpush3.bf16.msra.mxu1 %v7085_v2 }
0x10eb   : > { %7091 = vmatprep.subr.bf16.mxu1 %v7600_v1 }
0x10ed   : > { %6777 = vmatmul.mubr.msk.f32.vlgmr.msra.gmra.mrb[20].mxu1 %vm1148_vm3, %v3148_v3 }
0x10ee   : > { %6790 = vmatprep.mubr.msk.f32.mxu1 %vm7601_vm1, %v7602_v7 }
0x11b8   : > { %v6756_v5 = vpop.f32.mrb[18].mxu1 }
0x11b9   : > { %v3049_v6 = vadd.f32 %v6756_v5, %v6337_v4  ;;  %v3043_v8 = vpop.f32.mrb[19].mxu1 }
0x11ba   : > { %v3044_v45 = vadd.f32 %v6337_v4, %v3043_v8 }
0x11bb   : > { %v3053_v9 = vmax.f32 %v3049_v6, 0.0 }
0x11bc   : > { %v3052_v10 = vmax.f32 %v3044_v45, 0.0 }
0x11bd   : > { %v3055_v12 = vadd.f32 %v3053_v9, %v2959_v54 }
0x11be   : > { %v3054_v11 = vadd.f32 %v3052_v10, %v2958_v51 }
0x11c0   : > { %6765 = vmatprep.mubr.msk.f32.mxu0 %vm1148_vm3, %v3054_v11  ;;  %v3229_v23 = vpop.f32.mrb[20].mxu1 }
0x11c1   : > { %6766 = vmatmul.mubr.msk.f32.vlgmr.msra.gmra.mrb[22].mxu0 %vm1148_vm3, %v3055_v12  ;;  %v8119_v15 = vadd.f32 %v6343_v13, %v3229_v23  ;;  %v6778_v18 = vpop.f32.mrb[21].mxu1 }
0x11c2   : > { %6783 = vmatprep.mubr.msk.f32.mxu0 %vm7601_vm1, %v7602_v7 }
0x11c3   : > { %3404 = vrot.lane.b32.xlu0 %v8119_v15, %s8602_s1 }
0x1235   : > { %v3405_v33 = vpop.permute.xlu0 %3404 }
0x1294   : > { %v6767_v21 = vpop.f32.mrb[22].mxu0 }
0x1295   : > { %v8124_v22 = vadd.f32 %v6767_v21, %v6340_v20  ;;  %v3139_v24 = vpop.f32.mrb[23].mxu0 }
0x1296   : > { %v8126_v25 = vadd.f32 %v6340_v20, %v3139_v24 }
0x1298   : > { %v8130_v27 = vpack.i.bf16 %v8124_v22, %v8126_v25  ;;  %v7088_v28 = vpack.c.bf16 %v8124_v22, %v8126_v25 }
0x129a   : > { %7321 = vrot.lane.b32.xlu1 %v8130_v27, %s8602_s1  ;;  %7090 = vmatpush3.bf16.xpose.msk.msra.mxu0 %vm7873_vm5, %v7088_v28 }
0x129b   : > { %7094 = vmatprep.subr.bf16.mxu0 %v7600_v1 }
0x12a1   : > { %6784 = vmatmul.mubr.msk.f32.vlgmr.msra.gmra.mrb[24].mxu0 %vm1222_vm4, %v8119_v15 }
0x12a2   : > { %6797 = vmatprep.mubr.msk.f32.mxu0 %vm7601_vm1, %v7602_v7 }
0x130c   : > { %v7322_v29 = vpop.permute.xlu1 %7321 }
0x130d   : > { %v7324_v30 = vunpack.i.h.bf16 %v7322_v29  ;;  %v7323_v31 = vunpack.i.l.bf16 %v7322_v29 }
0x130f   : > { %v7095_v32 = vpack.c.bf16 %v7324_v30, %v7323_v31 }
0x1311   : > { %7097 = vmatpush3.bf16.xpose.msk.msra.mxu0 %vm7873_vm5, %v7095_v32 }
0x1312   : > { %7105 = vmatprep.subr.bf16.mxu0 %v7600_v1 }
0x1318   : > { %6798 = vmatmul.mubr.msk.f32.vlgmr.msra.gmra.mrb[26].mxu0 %vm1222_vm4, %v3405_v33 }
0x1319   : > { %6818 = vmatprep.mubr.msk.f32.mxu0 %vm7601_vm1, %v7602_v7 }
0x1374   : > { %v3308_v34 = vpop.f32.mrb[24].mxu0 }
0x1375   : > { %v3312_v35 = vmul.f32 0.17677669, %v3308_v34  ;;  %v6785_v36 = vpop.f32.mrb[25].mxu0 }
0x1377   : > { %v3313_v37 = vsel %vm1303_vm6, %v3312_v35, -inf }
0x1378   : > { %3314 = vmax.xlane.f32.xlu1 %v3313_v37 }
0x1389   : > { %7331 = vrot.lane.b32.xlu1 %v8130_v27, %s8604_s28 }
0x13eb   : > { %v3482_v38 = vpop.f32.mrb[26].mxu0 }
0x13ec   : > { %v3486_v39 = vmul.f32 0.17677669, %v3482_v38  ;;  %v6799_v40 = vpop.f32.mrb[27].mxu0 }
0x13ee   : > { %v3487_v41 = vsel %vm1303_vm6, %v3486_v39, -inf }
0x13ef   : > { %3488 = vmax.xlane.f32.xlu0 %v3487_v41 }
0x1405   : > { %v3315_v42 = vpop.xlane.xlu1 %3314 }
0x1406   : > { %v3316_v43 = vsub.f32 %v3312_v35, %v3315_v42 }
0x1408   : > { %v3317_v44 = vmul.f32 1.442695, %v3316_v43 }
0x1409   : > { %v7332_v54 = vpop.permute.xlu1 %7331 }
0x140a   : > { %7438 = vpow2.f32 %v3317_v44  ;;  %v7334_v55 = vunpack.i.h.bf16 %v7332_v54  ;;  %v7333_v56 = vunpack.i.l.bf16 %v7332_v54  ;;  %v3941_v54 = vld [vmem:[%s8615_s6] sm:$0xff] }
0x140c   : > { %v7099_v59 = vpack.c.bf16 %v7334_v55, %v7333_v56  ;;  %v3943_v56 = vld [vmem:[%s8615_s6 + $0x10] sm:$0xff] }
0x1414   : > { %v7439_v46 = vpop.eup %7438 }
0x1415   : > { %v3319_v47 = vsel %vm1303_vm6, %v7439_v46, 0.0 }
0x1416   : > { %3320 = vadd.xlane.f32.xlu0 %v3319_v47 }
0x142c   : > { %7326 = vrot.lane.b32.xlu0 %v8130_v27, %s8605_s23 }
0x1430   : > { %3582 = vrot.lane.b32.xlu0 %v8119_v15, %s8612_s9 }
0x147c   : > { %v3489_v48 = vpop.xlane.xlu0 %3488 }
0x147d   : > { %v3490_v49 = vsub.f32 %v3486_v39, %v3489_v48 }
0x147f   : > { %v3491_v19 = vmul.f32 1.442695, %v3490_v49 }
0x1481   : > { %7440 = vpow2.f32 %v3491_v19 }
0x148b   : > { %v7441_v16 = vpop.eup %7440 }
0x148c   : > { %v3493_v50 = vsel %vm1303_vm6, %v7441_v16, 0.0 }
0x148d   : > { %3494 = vadd.xlane.f32.xlu1 %v3493_v50 }
0x149e   : > { %7336 = vrot.lane.b32.xlu1 %v8130_v27, %s8612_s9 }
0x14a3   : > { %v3321_v51 = vpop.xlane.xlu0 %3320 }
0x14a4   : > { %7442 = vrcp.f32 %v3321_v51 }
0x14a7   : > { %v7327_v14 = vpop.permute.xlu0 %7326 }
0x14a8   : > { %v7329_v52 = vunpack.i.h.bf16 %v7327_v14  ;;  %v7328_v53 = vunpack.i.l.bf16 %v7327_v14 }
0x14aa   : > { %v7092_v26 = vpack.c.bf16 %v7329_v52, %v7328_v53 }
0x14ab   : > { %v3583_v4 = vpop.permute.xlu0 %3582 }
0x14ac   : > { %7093 = vmatpush3.bf16.msra.mxu1 %v7092_v26  ;;  %v3942_v26 = vld [vmem:[%s8615_s6 + $0x8] sm:$0xff] }
0x14ad   : > { %7098 = vmatprep.subr.bf16.mxu1 %v7600_v1  ;;  %v7116_v55 = vpack.c.bf16 %v3942_v26, %v3941_v54 }
0x14ae   : > { %v7443_v57 = vpop.eup %7442 }
0x14af   : > { %v3323_v58 = vmul.f32 %v7443_v57, %v7439_v46  ;;  %v3944_v57 = vld [vmem:[%s8615_s6 + $0x18] sm:$0xff]  ;;  %s8619_s6 = sld [smem:[#allocation20_spill]] }
0x14b1   : > { %6791 = vmatmul.mubr.msk.f32.vlgmr.msra.gmra.mrb[22].mxu1 %vm1303_vm6, %v3323_v58  ;;  %v7119_v58 = vpack.c.bf16 %v3944_v57, %v3943_v56 }
0x14b2   : > { %7100 = vmatpush3.bf16.msra.mxu1 %v7099_v59  ;;  %6804 = vmatprep.mubr.msk.f32.mxu1 %vm7601_vm1, %v7602_v7 }
0x14b3   : > { %7101 = vmatprep.subr.bf16.mxu1 %v7600_v1 }
0x151a   : > { %v3495_v60 = vpop.xlane.xlu1 %3494 }
0x151b   : > { %7444 = vrcp.f32 %v3495_v60 }
0x151e   : > { %v7337_v61 = vpop.permute.xlu1 %7336 }
0x151f   : > { %v7339_v62 = vunpack.i.h.bf16 %v7337_v61  ;;  %v7338_v63 = vunpack.i.l.bf16 %v7337_v61 }
0x1521   : > { %v7102_v3 = vpack.c.bf16 %v7339_v62, %v7338_v63 }
0x1525   : > { %v7445_v0 = vpop.eup %7444 }
0x1526   : > { %v3497_v2 = vmul.f32 %v7445_v0, %v7441_v16 }
0x1528   : > { %6805 = vmatmul.mubr.msk.f32.vlgmr.msra.gmra.mrb[24].mxu1 %vm1303_vm6, %v3497_v2 }
0x1529   : > { %7104 = vmatpush3.bf16.xpose.msk.msra.mxu1 %vm7873_vm5, %v7102_v3  ;;  %6811 = vmatprep.mubr.msk.f32.mxu1 %vm7601_vm1, %v7602_v7 }
0x152a   : > { %7112 = vmatprep.subr.bf16.mxu1 %v7600_v1 }
0x1530   : > { %6812 = vmatmul.mubr.msk.f32.vlgmr.msra.gmra.mrb[26].mxu1 %vm1222_vm4, %v3583_v4 }
0x1531   : > { %6832 = vmatprep.mubr.msk.f32.mxu1 %vm7601_vm1, %v7602_v7 }
0x1584   : > { %v8175_v5 = vpop.f32.mrb[22].mxu1 }
0x1585   : > { %v6792_v6 = vpop.f32.mrb[23].mxu1  ;;  %v3403_v63 = vadd.f32 %v8175_v5, %v8119_v15  ;;  %v4027_v5 = vld [vmem:[%s8618_s20] sm:$0xff] }
0x15fb   : > { %v3573_v8 = vpop.f32.mrb[24].mxu1 }
0x15fc   : > { %v6806_v45 = vpop.f32.mrb[25].mxu1 }
0x1603   : > { %v3660_v9 = vpop.f32.mrb[26].mxu1 }
0x1604   : > { %v3664_v10 = vmul.f32 0.17677669, %v3660_v9  ;;  %v6813_v11 = vpop.f32.mrb[27].mxu1 }
0x1606   : > { %v3665_v12 = vsel %vm1303_vm6, %v3664_v10, -inf }
0x1607   : > { %3666 = vmax.xlane.f32.xlu1 %v3665_v12  ;;  %v4029_v12 = vld [vmem:[%s8618_s20 + $0x10] sm:$0xff] }
0x1618   : > { %7346 = vrot.lane.b32.xlu1 %v8130_v27, %s8603_s11 }
0x161c   : > { %3760 = vrot.lane.b32.xlu1 %v8119_v15, %s8603_s11 }
0x1694   : > { %v3667_v13 = vpop.xlane.xlu1 %3666 }
0x1695   : > { %v3668_v23 = vsub.f32 %v3664_v10, %v3667_v13  ;;  %v4028_v10 = vld [vmem:[%s8618_s20 + $0x8] sm:$0xff]  ;;  %v4030_v13 = vld [vmem:[%s8618_s20 + $0x18] sm:$0xff]  ;;  %s8627_s20 = sld [smem:[#allocation24_spill]] }
0x1696   : > { %v7122_v11 = vpack.c.bf16 %v4028_v10, %v4027_v5 }
0x1697   : > { %v3669_v18 = vmul.f32 1.442695, %v3668_v23  ;;  %v7125_v23 = vpack.c.bf16 %v4030_v13, %v4029_v12 }
0x1698   : > { %v7347_v32 = vpop.permute.xlu1 %7346 }
0x1699   : > { %7446 = vpow2.f32 %v3669_v18  ;;  %v7349_v34 = vunpack.i.h.bf16 %v7347_v32  ;;  %v7348_v35 = vunpack.i.l.bf16 %v7347_v32 }
0x169b   : > { %v7109_v37 = vpack.c.bf16 %v7349_v34, %v7348_v35 }
0x169c   : > { %v3761_v38 = vpop.permute.xlu1 %3760 }
0x16a3   : > { %v7447_v20 = vpop.eup %7446 }
0x16a4   : > { %v3671_v21 = vsel %vm1303_vm6, %v7447_v20, 0.0 }
0x16a5   : > { %3672 = vadd.xlane.f32.xlu0 %v3671_v21 }
0x16bb   : > { %7341 = vrot.lane.b32.xlu0 %v8130_v27, %s8606_s3 }
0x1732   : > { %v3673_v24 = vpop.xlane.xlu0 %3672 }
0x1733   : > { %7448 = vrcp.f32 %v3673_v24 }
0x1736   : > { %v7342_v28 = vpop.permute.xlu0 %7341 }
0x1737   : > { %v7344_v29 = vunpack.i.h.bf16 %v7342_v28  ;;  %v7343_v30 = vunpack.i.l.bf16 %v7342_v28 }
0x1739   : > { %v7106_v31 = vpack.c.bf16 %v7344_v29, %v7343_v30 }
0x173b   : > { %7107 = vmatpush3.bf16.msra.mxu0 %v7106_v31 }
0x173c   : > { %7108 = vmatprep.subr.bf16.mxu0 %v7600_v1 }
0x173d   : > { %v7449_v33 = vpop.eup %7448 }
0x173e   : > { %v3675_v36 = vmul.f32 %v7449_v33, %v7447_v20 }
0x1740   : > { %6819 = vmatmul.mubr.msk.f32.vlgmr.msra.gmra.mrb[28].mxu0 %vm1303_vm6, %v3675_v36 }
0x1741   : > { %6825 = vmatprep.mubr.msk.f32.mxu0 %vm7601_vm1, %v7602_v7 }
0x1744   : > { %7111 = vmatpush3.bf16.xpose.msk.msra.mxu0 %vm7873_vm5, %v7109_v37 }
0x1745   : > { %7121 = vmatprep.subr.bf16.mxu0 %v7600_v1 }
0x174b   : > { %6826 = vmatmul.mubr.msk.f32.vlgmr.msra.gmra.mrb[30].mxu0 %vm1222_vm4, %v3761_v38 }
0x174c   : > { %6854 = vmatprep.mubr.msk.f32.mxu0 %vm7601_vm1, %v7602_v7  ;;  %7123 = vmatpush3.bf16.msra.mxu0 %v7122_v11 }
0x174d   : > { %7124 = vmatprep.subr.bf16.mxu0 %v7600_v1 }
0x1750   : > { %7126 = vmatpush3.bf16.msra.mxu0 %v7125_v23 }
0x1813   : > { %v3751_v39 = vpop.f32.mrb[28].mxu0 }
0x1814   : > { %v6820_v40 = vpop.f32.mrb[29].mxu0 }
0x181e   : > { %v3838_v41 = vpop.f32.mrb[30].mxu0 }
0x181f   : > { %v3842_v42 = vmul.f32 0.17677669, %v3838_v41  ;;  %v6827_v43 = vpop.f32.mrb[31].mxu0 }
0x1821   : > { %v3843_v44 = vsel %vm1303_vm6, %v3842_v42, -inf }
0x1822   : > { %3844 = vmax.xlane.f32.xlu0 %v3843_v44 }
0x1838   : > { %7351 = vrot.lane.b32.xlu0 %v8130_v27, %s8607_s5 }
0x183c   : > { %3756 = vrot.lane.b32.xlu0 %v3751_v39, %s8613_s13 }
0x1840   : > { %4111 = vrot.lane.b32.xlu0 %v8126_v25, %s8608_s8 }
0x1844   : > { %4317 = vrot.lane.b32.xlu0 %v8124_v22, %s8614_s14 }
0x18af   : > { %v3845_v46 = vpop.xlane.xlu0 %3844 }
0x18b0   : > { %v3846_v47 = vsub.f32 %v3842_v42, %v3845_v46 }
0x18b2   : > { %v3847_v48 = vmul.f32 1.442695, %v3846_v47 }
0x18b3   : > { %v7352_v49 = vpop.permute.xlu0 %7351 }
0x18b4   : > { %7450 = vpow2.f32 %v3847_v48  ;;  %v7354_v19 = vunpack.i.h.bf16 %v7352_v49  ;;  %v7353_v16 = vunpack.i.l.bf16 %v7352_v49 }
0x18b6   : > { %v7113_v50 = vpack.c.bf16 %v7354_v19, %v7353_v16 }
0x18b7   : > { %v3757_v0 = vpop.permute.xlu0 %3756 }
0x18b8   : > { %7114 = vmatpush3.bf16.msra.mxu1 %v7113_v50  ;;  %v3759_v3 = vadd.f32 %v3757_v0, %v8119_v15 }
0x18b9   : > { %7115 = vmatprep.subr.bf16.mxu1 %v7600_v1 }
0x18bb   : > { %v4112_v9 = vpop.permute.xlu0 %4111 }
0x18be   : > { %v7451_v27 = vpop.eup %7450 }
0x18bf   : > { %v3849_v51 = vsel %vm1303_vm6, %v7451_v27, 0.0  ;;  %v4318_v35 = vpop.permute.xlu0 %4317 }
0x18c0   : > { %3850 = vadd.xlane.f32.xlu1 %v3849_v51 }
0x18d1   : > { %3578 = vrot.lane.b32.xlu1 %v3573_v8, %s8616_s17 }
0x194d   : > { %v3851_v14 = vpop.xlane.xlu1 %3850 }
0x194e   : > { %7452 = vrcp.f32 %v3851_v14 }
0x1951   : > { %v3579_v61 = vpop.permute.xlu1 %3578 }
0x1952   : > { %v3581_v62 = vadd.f32 %v3579_v61, %v8119_v15 }
0x1954   : > { %v3938_v2 = vsel %vm1222_vm4, %v3403_v63, %v3581_v62 }
0x1955   : > { %v3939_v8 = vsel %vm1303_vm6, %v3938_v2, %v3759_v3 }
0x1958   : > { %v7453_v52 = vpop.eup %7452 }
0x1959   : > { %v3853_v53 = vmul.f32 %v7453_v52, %v7451_v27 }
0x195b   : > { %6833 = vmatmul.mubr.msk.f32.vlgmr.msra.gmra.mrb[28].mxu1 %vm1303_vm6, %v3853_v53 }
0x195c   : > { %6843 = vmatprep.mubr.msk.f32.mxu1 %vm7601_vm1, %v7602_v7  ;;  %7117 = vmatpush3.bf16.msra.mxu1 %v7116_v55 }
0x195d   : > { %7118 = vmatprep.subr.bf16.mxu1 %v7600_v1 }
0x1960   : > { %7120 = vmatpush3.bf16.msra.mxu1 %v7119_v58 }
0x1a2e   : > { %v3929_v59 = vpop.f32.mrb[28].mxu1 }
0x1a2f   : > { %3934 = vrot.lane.b32.xlu1 %v3929_v59, %s8617_s19  ;;  %v6834_v60 = vpop.f32.mrb[29].mxu1 }
0x1a33   : > { %4113 = vrot.lane.b32.xlu1 %v8124_v22, %s8608_s8 }
0x1a37   : > { %4315 = vrot.lane.b32.xlu1 %v8126_v25, %s8614_s14  ;;  %s8620_s14 = sld [smem:[#allocation22_spill]] }
0x1a3d   : > { %v6363_v29 = vld [vmem:[%s8620_s14] ss:$0 sm:$0xff]  ;;  %s8622_s14 = smov 40  }
0x1aa1   : > { %v3935_v4 = vpop.permute.xlu1 %3934 }
0x1aa2   : > { %v3937_v6 = vadd.f32 %v3935_v4, %v8119_v15  ;;  %v6361_v15 = vld [vmem:[%s8619_s6] ss:$0 sm:$0xff]  ;;  %s8621_s6 = smov 48  }
0x1aa4   : > { %v3940_v45 = vsel %vm1931_vm7, %v3939_v8, %v3937_v6 }
0x1aa5   : > { %6844 = vmatmul.mubr.msk.f32.vlgmr.msra.gmra.mrb[30].mxu1 %vm1148_vm3, %v3940_v45  ;;  %v4114_v33 = vpop.permute.xlu1 %4113 }
0x1aa6   : > { %6859 = vmatprep.mubr.msk.f32.mxu1 %vm1222_vm4, %v4112_v9 }
0x1aa9   : > { %v4316_v34 = vpop.permute.xlu1 %4315 }
0x1b78   : > { %v4021_v18 = vpop.f32.mrb[30].mxu1 }
0x1b79   : > { %v4022_v20 = vadd.f32 %v6361_v15, %v4021_v18  ;;  %v6845_v21 = vpop.f32.mrb[31].mxu1 }
0x1b7b   : > { %v4025_v24 = vmax.f32 %v4022_v20, 0.0 }
0x1b7d   : > { %v4026_v28 = vadd.f32 %v4025_v24, %v3940_v45 }
0x1b7f   : > { %6855 = vmatmul.mubr.msk.f32.vlgmr.msra.gmra.mrb[32].mxu0 %vm1148_vm3, %v4026_v28 }
0x1c52   : > { %v4107_v30 = vpop.f32.mrb[32].mxu0 }
0x1c53   : > { %v8237_v31 = vadd.f32 %v6363_v29, %v4107_v30  ;;  %v6856_v32 = vpop.f32.mrb[33].mxu0 }
0x1c55   : > { %4524 = vrot.lane.b32.xlu1 %v8237_v31, %s8612_s9  ;;  %4319 = vrot.lane.b32.xlu0 %v8237_v31, %s8602_s1 }
0x1c56   : > { %6857 = vmatprep.subr.msk.mxu1 %vm1222_vm4, %v8237_v31 }
0x1c57   : > { %6858 = vmatpush3.xpose.msk.msra.mxu1 %vm1222_vm4, %v8237_v31 }
0x1c59   : > { %4522 = vrot.lane.b32.xlu1 %v8124_v22, %s8621_s6  ;;  %4520 = vrot.lane.b32.xlu0 %v8126_v25, %s8621_s6  ;;  %s8623_s6 = sld [smem:[#allocation23_spill]] }
0x1c5a   : > { %6860 = vmatmul.mubr.msk.f32.vlgmr.msra.gmra.mrb[32].mxu1 %vm1222_vm4, %v4114_v33 }
0x1c5b   : > { %6869 = vmatprep.mubr.msk.f32.mxu1 %vm1222_vm4, %v4316_v34 }
0x1c5d   : > { %4725 = vrot.lane.b32.xlu1 %v8126_v25, %s8622_s14  ;;  %4729 = vrot.lane.b32.xlu0 %v8237_v31, %s8603_s11 }
0x1c61   : > { %4727 = vrot.lane.b32.xlu0 %v8124_v22, %s8622_s14  ;;  %s8624_s14 = sld [smem:[#allocation28_spill]] }
0x1cc7   : > { %v4525_v36 = vpop.permute.xlu1 %4524  ;;  %v4320_v37 = vpop.permute.xlu0 %4319 }
0x1cc8   : > { %6867 = vmatprep.subr.msk.mxu1 %vm1222_vm4, %v4320_v37 }
0x1cc9   : > { %6868 = vmatpush3.xpose.msk.msra.mxu1 %vm1222_vm4, %v4320_v37 }
0x1cca   : > { %6877 = vmatprep.subr.msk.mxu1 %vm1222_vm4, %v4525_v36 }
0x1ccb   : > { %v4523_v38 = vpop.permute.xlu1 %4522  ;;  %v4521_v39 = vpop.permute.xlu0 %4520 }
0x1ccc   : > { %6870 = vmatmul.mubr.msk.f32.vlgmr.msra.gmra.mrb[34].mxu1 %vm1222_vm4, %v4318_v35 }
0x1ccd   : > { %6878 = vmatpush3.xpose.msk.msra.mxu1 %vm1222_vm4, %v4525_v36  ;;  %6879 = vmatprep.mubr.msk.f32.mxu1 %vm1222_vm4, %v4521_v39 }
0x1ccf   : > { %v4726_v40 = vpop.permute.xlu1 %4725  ;;  %v4730_v41 = vpop.permute.xlu0 %4729 }
0x1cd0   : > { %6880 = vmatmul.mubr.msk.f32.vlgmr.msra.gmra.mrb[36].mxu1 %vm1222_vm4, %v4523_v38  ;;  %6887 = vmatprep.subr.msk.mxu1 %vm1222_vm4, %v4730_v41 }
0x1cd1   : > { %6888 = vmatpush3.xpose.msk.msra.mxu1 %vm1222_vm4, %v4730_v41  ;;  %6889 = vmatprep.mubr.msk.f32.mxu1 %vm1222_vm4, %v4726_v40 }
0x1cd3   : > { %v4728_v42 = vpop.permute.xlu0 %4727 }
0x1cd4   : > { %6890 = vmatmul.mubr.msk.f32.vlgmr.msra.gmra.mrb[38].mxu1 %vm1222_vm4, %v4728_v42 }
0x1d2d   : > { %v6861_v43 = vpop.f32.mrb[32].mxu1 }
0x1d2e   : > { %v4198_v44 = vmul.f32 0.17677669, %v6861_v43  ;;  %v4188_v46 = vpop.f32.mrb[33].mxu1 }
0x1d2f   : > { %v4197_v47 = vmul.f32 0.17677669, %v4188_v46 }
0x1d30   : > { %v4202_v48 = vsel %vm1222_vm4, %v4198_v44, -inf }
0x1d31   : > { %4203 = vmax.xlane.f32.xlu0 %v4202_v48  ;;  %v4199_v49 = vsel %vm1222_vm4, %v4197_v47, -inf }
0x1d32   : > { %4200 = vmax.xlane.f32.xlu1 %v4199_v49 }
0x1d9f   : > { %v6871_v19 = vpop.f32.mrb[34].mxu1 }
0x1da0   : > { %v4403_v16 = vmul.f32 0.17677669, %v6871_v19  ;;  %v4393_v50 = vpop.f32.mrb[35].mxu1 }
0x1da1   : > { %v4402_v27 = vmul.f32 0.17677669, %v4393_v50 }
0x1da2   : > { %v4407_v51 = vsel %vm1222_vm4, %v4403_v16, -inf }
0x1da3   : > { %v6881_v14 = vpop.f32.mrb[36].mxu1  ;;  %4408 = vmax.xlane.f32.xlu1 %v4407_v51  ;;  %v4404_v52 = vsel %vm1222_vm4, %v4402_v27, -inf }
0x1da4   : > { %v4608_v53 = vmul.f32 0.17677669, %v6881_v14  ;;  %v4598_v54 = vpop.f32.mrb[37].mxu1  ;;  %4405 = vmax.xlane.f32.xlu0 %v4404_v52 }
0x1da5   : > { %v4607_v26 = vmul.f32 0.17677669, %v4598_v54 }
0x1da6   : > { %v4612_v55 = vsel %vm1222_vm4, %v4608_v53, -inf }
0x1da7   : > { %v6891_v56 = vpop.f32.mrb[38].mxu1  ;;  %4613 = vmax.xlane.f32.xlu1 %v4612_v55  ;;  %v4609_v57 = vsel %vm1222_vm4, %v4607_v26, -inf }
0x1da8   : > { %v4813_v58 = vmul.f32 0.17677669, %v6891_v56  ;;  %v4803_v59 = vpop.f32.mrb[39].mxu1  ;;  %4610 = vmax.xlane.f32.xlu0 %v4609_v57 }
0x1da9   : > { %v4812_v60 = vmul.f32 0.17677669, %v4803_v59 }
0x1daa   : > { %v4817_v61 = vsel %vm1222_vm4, %v4813_v58, -inf }
0x1dab   : > { %4818 = vmax.xlane.f32.xlu1 %v4817_v61  ;;  %v4814_v62 = vsel %vm1222_vm4, %v4812_v60, -inf }
0x1dac   : > { %4815 = vmax.xlane.f32.xlu0 %v4814_v62 }
0x1dbc   : > { %4426 = vrot.lane.b32.xlu1 %v8237_v31, %s8604_s28 }
0x1dbe   : > { %v4204_v63 = vpop.xlane.xlu0 %4203 }
0x1dbf   : > { %v4201_v0 = vpop.xlane.xlu1 %4200  ;;  %v4206_v2 = vsub.f32 %v4198_v44, %v4204_v63 }
0x1dc0   : > { %v4205_v3 = vsub.f32 %v4197_v47, %v4201_v0 }
0x1dc1   : > { %v4209_v4 = vmul.f32 1.442695, %v4206_v2 }
0x1dc2   : > { %4221 = vrot.lane.b32.xlu0 %v8237_v31, %s8605_s23  ;;  %v4207_v6 = vmul.f32 1.442695, %v4205_v3 }
0x1dc3   : > { %7454 = vpow2.f32 %v4209_v4 }
0x1dc4   : > { %7456 = vpow2.f32 %v4207_v6 }
0x1dcd   : > { %v7455_v8 = vpop.eup %7454 }
0x1dce   : > { %v7457_v45 = vpop.eup %7456  ;;  %v4214_v9 = vsel %vm1222_vm4, %v7455_v8, 0.0 }
0x1dcf   : > { %v4211_v5 = vsel %vm1222_vm4, %v7457_v45, 0.0 }
0x1de0   : > { %4215 = vadd.xlane.f32.xlu1 %v4214_v9 }
0x1de1   : > { %4212 = vadd.xlane.f32.xlu0 %v4211_v5 }
0x1e30   : > { %v4409_v10 = vpop.xlane.xlu1 %4408 }
0x1e31   : > { %v4411_v11 = vsub.f32 %v4403_v16, %v4409_v10  ;;  %v4406_v12 = vpop.xlane.xlu0 %4405 }
0x1e32   : > { %v4410_v13 = vsub.f32 %v4402_v27, %v4406_v12 }
0x1e33   : > { %v4414_v23 = vmul.f32 1.442695, %v4411_v11 }
0x1e34   : > { %v4412_v15 = vmul.f32 1.442695, %v4410_v13  ;;  %v4614_v18 = vpop.xlane.xlu1 %4613 }
0x1e35   : > { %7458 = vpow2.f32 %v4414_v23  ;;  %v4616_v20 = vsub.f32 %v4608_v53, %v4614_v18  ;;  %v4611_v21 = vpop.xlane.xlu0 %4610 }
0x1e36   : > { %7460 = vpow2.f32 %v4412_v15  ;;  %v4615_v24 = vsub.f32 %v4607_v26, %v4611_v21 }
0x1e37   : > { %v4619_v28 = vmul.f32 1.442695, %v4616_v20 }
0x1e38   : > { %v4617_v29 = vmul.f32 1.442695, %v4615_v24  ;;  %v4819_v30 = vpop.xlane.xlu1 %4818 }
0x1e39   : > { %7462 = vpow2.f32 %v4619_v28  ;;  %v4821_v32 = vsub.f32 %v4813_v58, %v4819_v30  ;;  %v4816_v33 = vpop.xlane.xlu0 %4815  ;;  %v4969_v30 = vld [vmem:[%s8623_s6 + $0x8] sm:$0xff] }
0x1e3a   : > { %7464 = vpow2.f32 %v4617_v29  ;;  %v4820_v34 = vsub.f32 %v4812_v60, %v4816_v33  ;;  %v4968_v29 = vld [vmem:[%s8623_s6] sm:$0xff]  ;;  %v4970_v33 = vld [vmem:[%s8623_s6 + $0x10] sm:$0xff] }
0x1e3b   : > { %v4824_v35 = vmul.f32 1.442695, %v4821_v32  ;;  %v7127_v32 = vpack.c.bf16 %v4969_v30, %v4968_v29 }
0x1e3c   : > { %v4822_v36 = vmul.f32 1.442695, %v4820_v34  ;;  %v4427_v39 = vpop.permute.xlu1 %4426  ;;  %v4971_v34 = vld [vmem:[%s8623_s6 + $0x18] sm:$0xff]  ;;  %s8626_s6 = sld [smem:[#allocation25_spill]] }
0x1e3d   : > { %7466 = vpow2.f32 %v4824_v35  ;;  %v4222_v37 = vpop.permute.xlu0 %4221  ;;  %7128 = vmatprep.subr.bf16.mxu1 %v7127_v32  ;;  %v7131_v35 = vpack.c.bf16 %v4971_v34, %v4970_v33 }
0x1e3e   : > { %7468 = vpow2.f32 %v4822_v36  ;;  %6862 = vmatprep.subr.mxu0 %v4222_v37  ;;  %7130 = vmatpush3.bf16.msra.mxu1 %v7127_v32 }
0x1e3f   : > { %v7459_v38 = vpop.eup %7458  ;;  %6863 = vmatpush3.msra.mxu0 %v4222_v37  ;;  %7132 = vmatprep.subr.bf16.mxu1 %v7131_v35 }
0x1e40   : > { %v7461_v40 = vpop.eup %7460  ;;  %6872 = vmatprep.subr.mxu0 %v4427_v39  ;;  %v4419_v41 = vsel %vm1222_vm4, %v7459_v38, 0.0 }
0x1e41   : > { %4420 = vadd.xlane.f32.xlu1 %v4419_v41  ;;  %v4416_v42 = vsel %vm1222_vm4, %v7461_v40, 0.0 }
0x1e42   : > { %4417 = vadd.xlane.f32.xlu0 %v4416_v42  ;;  %7134 = vmatpush3.bf16.msra.mxu1 %v7131_v35 }
0x1e43   : > { %v7463_v43 = vpop.eup %7462  ;;  %7143 = vmatprep.subr.bf16.mxu1 %v7600_v1 }
0x1e44   : > { %v7465_v44 = vpop.eup %7464  ;;  %v4624_v46 = vsel %vm1222_vm4, %v7463_v43, 0.0 }
0x1e45   : > { %4625 = vadd.xlane.f32.xlu1 %v4624_v46  ;;  %v4621_v47 = vsel %vm1222_vm4, %v7465_v44, 0.0 }
0x1e46   : > { %4622 = vadd.xlane.f32.xlu0 %v4621_v47 }
0x1e47   : > { %v7467_v48 = vpop.eup %7466 }
0x1e48   : > { %v7469_v49 = vpop.eup %7468  ;;  %v4829_v19 = vsel %vm1222_vm4, %v7467_v48, 0.0 }
0x1e49   : > { %4830 = vadd.xlane.f32.xlu1 %v4829_v19  ;;  %v4826_v16 = vsel %vm1222_vm4, %v7469_v49, 0.0 }
0x1e4a   : > { %4827 = vadd.xlane.f32.xlu0 %v4826_v16 }
0x1e5a   : > { %4631 = vrot.lane.b32.xlu1 %v8237_v31, %s8606_s3 }
0x1e60   : > { %4836 = vrot.lane.b32.xlu0 %v8237_v31, %s8607_s5 }
0x1e6d   : > { %v4216_v50 = vpop.xlane.xlu1 %4215 }
0x1e6e   : > { %7470 = vrcp.f32 %v4216_v50  ;;  %v4213_v27 = vpop.xlane.xlu0 %4212 }
0x1e6f   : > { %7472 = vrcp.f32 %v4213_v27 }
0x1e78   : > { %v7471_v51 = vpop.eup %7470 }
0x1e79   : > { %v7473_v14 = vpop.eup %7472  ;;  %v4220_v53 = vmul.f32 %v7471_v51, %v7455_v8 }
0x1e7a   : > { %v4218_v52 = vmul.f32 %v7473_v14, %v7457_v45 }
0x1e7c   : > { %6864 = vmatprep.mubr.msk.f32.mxu0 %vm1222_vm4, %v4218_v52 }
0x1e7d   : > { %6865 = vmatmul.mubr.msk.f32.vlgmr.msra.gmra.mrb[34].mxu0 %vm1222_vm4, %v4220_v53 }
0x1e7e   : > { %6873 = vmatpush3.msra.mxu0 %v4427_v39 }
0x1ece   : > { %v4421_v54 = vpop.xlane.xlu1 %4420 }
0x1ecf   : > { %7474 = vrcp.f32 %v4421_v54  ;;  %v4418_v26 = vpop.xlane.xlu0 %4417 }
0x1ed0   : > { %7476 = vrcp.f32 %v4418_v26 }
0x1ed2   : > { %v4626_v55 = vpop.xlane.xlu1 %4625 }
0x1ed3   : > { %7478 = vrcp.f32 %v4626_v55  ;;  %v4623_v31 = vpop.xlane.xlu0 %4622 }
0x1ed4   : > { %7480 = vrcp.f32 %v4623_v31  ;;  %v5064_v31 = vld [vmem:[%s8624_s14] sm:$0xff] }
0x1ed6   : > { %v4831_v56 = vpop.xlane.xlu1 %4830 }
0x1ed7   : > { %7482 = vrcp.f32 %v4831_v56  ;;  %v4828_v57 = vpop.xlane.xlu0 %4827  ;;  %v5065_v56 = vld [vmem:[%s8624_s14 + $0x8] sm:$0xff] }
0x1ed8   : > { %7484 = vrcp.f32 %v4828_v57  ;;  %v7135_v57 = vpack.c.bf16 %v5065_v56, %v5064_v31 }
0x1ed9   : > { %v7475_v58 = vpop.eup %7474 }
0x1eda   : > { %v7477_v59 = vpop.eup %7476  ;;  %v4632_v60 = vpop.permute.xlu1 %4631  ;;  %v4425_v62 = vmul.f32 %v7475_v58, %v7459_v38  ;;  %v5066_v58 = vld [vmem:[%s8624_s14 + $0x10] sm:$0xff] }
0x1edb   : > { %6882 = vmatprep.subr.mxu0 %v4632_v60  ;;  %v4423_v61 = vmul.f32 %v7477_v59, %v7461_v40  ;;  %v4837_v2 = vpop.permute.xlu0 %4836  ;;  %v5067_v59 = vld [vmem:[%s8624_s14 + $0x18] sm:$0xff]  ;;  %s8629_s14 = sld [smem:[#allocation29_spill]] }
0x1edd   : > { %v7479_v63 = vpop.eup %7478  ;;  %6874 = vmatprep.mubr.msk.f32.mxu0 %vm1222_vm4, %v4423_v61 }
0x1ede   : > { %v7481_v0 = vpop.eup %7480  ;;  %6875 = vmatmul.mubr.msk.f32.vlgmr.msra.gmra.mrb[36].mxu0 %vm1222_vm4, %v4425_v62  ;;  %v4630_v4 = vmul.f32 %v7479_v63, %v7463_v43 }
0x1edf   : > { %6883 = vmatpush3.msra.mxu0 %v4632_v60  ;;  %v4628_v3 = vmul.f32 %v7481_v0, %v7465_v44  ;;  %v7139_v60 = vpack.c.bf16 %v5067_v59, %v5066_v58 }
0x1ee0   : > { %6892 = vmatprep.subr.mxu0 %v4837_v2 }
0x1ee1   : > { %v7483_v6 = vpop.eup %7482  ;;  %6884 = vmatprep.mubr.msk.f32.mxu0 %vm1222_vm4, %v4628_v3 }
0x1ee2   : > { %v7485_v8 = vpop.eup %7484  ;;  %6885 = vmatmul.mubr.msk.f32.vlgmr.msra.gmra.mrb[38].mxu0 %vm1222_vm4, %v4630_v4  ;;  %v4835_v9 = vmul.f32 %v7483_v6, %v7467_v48  ;;  %v5156_v4 = vld [vmem:[%s8626_s6] sm:$0x1] }
0x1ee3   : > { %6893 = vmatpush3.msra.mxu0 %v4837_v2  ;;  %v4833_v45 = vmul.f32 %v7485_v8, %v7469_v49  ;;  %v6385_v6 = vld [vmem:[%s8627_s20] ss:$0 sm:$0xff] }
0x1ee4   : > { %7136 = vmatprep.subr.bf16.mxu0 %v7135_v57 }
0x1ee5   : > { %6894 = vmatprep.mubr.msk.f32.mxu0 %vm1222_vm4, %v4833_v45 }
0x1ee6   : > { %6895 = vmatmul.mubr.msk.f32.vlgmr.msra.gmra.mrb[40].mxu0 %vm1222_vm4, %v4835_v9 }
0x1ee7   : > { %7138 = vmatpush3.bf16.msra.mxu0 %v7135_v57 }
0x1ee8   : > { %7140 = vmatprep.subr.bf16.mxu0 %v7139_v60 }
0x1eeb   : > { %7142 = vmatpush3.bf16.msra.mxu0 %v7139_v60 }
0x1eec   : > { %7149 = vmatprep.subr.bf16.mxu0 %v7600_v1 }
0x1f50   : > { %v6866_v5 = vpop.f32.mrb[34].mxu0 }
0x1f51   : > { %4309 = vrot.lane.b32.xlu1 %v6866_v5, %s8608_s8  ;;  %v4296_v10 = vpop.f32.mrb[35].mxu0 }
0x1f55   : > { %4307 = vrot.lane.b32.xlu1 %v4296_v10, %s8608_s8 }
0x1fb1   : > { %v6876_v11 = vpop.f32.mrb[36].mxu0 }
0x1fb2   : > { %4514 = vrot.lane.b32.xlu0 %v6876_v11, %s8607_s5  ;;  %v4501_v12 = vpop.f32.mrb[37].mxu0 }
0x1fb5   : > { %v6886_v13 = vpop.f32.mrb[38].mxu0 }
0x1fb6   : > { %4512 = vrot.lane.b32.xlu0 %v4501_v12, %s8607_s5  ;;  %v4706_v23 = vpop.f32.mrb[39].mxu0 }
0x1fb7   : > { %4717 = vrot.lane.b32.xlu1 %v4706_v23, %s8606_s3  ;;  %v5161_v23 = vld [vmem:[%s8628_s21] sm:$0x1]  ;;  %s8630_s21 = sld [smem:[#allocation30_spill]] }
0x1fb9   : > { %v6896_v15 = vpop.f32.mrb[40].mxu0 }
0x1fba   : > { %4719 = vrot.lane.b32.xlu0 %v6886_v13, %s8606_s3  ;;  %v4911_v18 = vpop.f32.mrb[41].mxu0 }
0x1fbb   : > { %4922 = vrot.lane.b32.xlu1 %v4911_v18, %s8604_s28 }
0x1fbe   : > { %4924 = vrot.lane.b32.xlu0 %v6896_v15, %s8604_s28 }
0x1fc3   : > { %v4310_v20 = vpop.permute.xlu1 %4309 }
0x1fc4   : > { %v4314_v28 = vadd.f32 %v4310_v20, %v8124_v22 }
0x1fc7   : > { %v4308_v21 = vpop.permute.xlu1 %4307 }
0x1fc8   : > { %v4313_v24 = vadd.f32 %v4308_v21, %v8126_v25  ;;  %v6388_v21 = vld [vmem:[%s8629_s14] ss:$0 sm:$0xff] }
0x1fca   : > { %4932 = vrot.lane.b32.xlu1 %v4313_v24, %s8608_s8 }
0x1fce   : > { %4934 = vrot.lane.b32.xlu1 %v4314_v28, %s8608_s8 }
0x2024   : > { %v4515_v36 = vpop.permute.xlu0 %4514 }
0x2025   : > { %v4519_v37 = vadd.f32 %v4515_v36, %v8124_v22 }
0x2027   : > { %4942 = vrot.lane.b32.xlu0 %v4519_v37, %s8608_s8 }
0x2028   : > { %v4513_v38 = vpop.permute.xlu0 %4512 }
0x2029   : > { %v4518_v39 = vadd.f32 %v4513_v38, %v8126_v25  ;;  %v4718_v40 = vpop.permute.xlu1 %4717 }
0x202a   : > { %v4723_v41 = vadd.f32 %v4718_v40, %v8126_v25 }
0x202b   : > { %4940 = vrot.lane.b32.xlu0 %v4518_v39, %s8608_s8 }
0x202c   : > { %v4720_v42 = vpop.permute.xlu0 %4719  ;;  %4948 = vrot.lane.b32.xlu1 %v4723_v41, %s8608_s8 }
0x202d   : > { %v4724_v43 = vadd.f32 %v4720_v42, %v8124_v22  ;;  %v4923_v44 = vpop.permute.xlu1 %4922 }
0x202e   : > { %v4928_v46 = vadd.f32 %v4923_v44, %v8126_v25 }
0x202f   : > { %4950 = vrot.lane.b32.xlu0 %v4724_v43, %s8608_s8 }
0x2030   : > { %v4925_v47 = vpop.permute.xlu0 %4924  ;;  %4956 = vrot.lane.b32.xlu1 %v4928_v46, %s8608_s8 }
0x2031   : > { %v4929_v48 = vadd.f32 %v4925_v47, %v8124_v22 }
0x2033   : > { %4958 = vrot.lane.b32.xlu0 %v4929_v48, %s8608_s8  ;;  %s8625_s8 = sld [smem:[#allocation26_spill]] }
0x2039   : > { %v5157_v61 = vld [vmem:[%s8625_s8] sm:$0xff]  ;;  %v5158_v62 = vld [vmem:[%s8625_s8 + $0x8] sm:$0xff]  ;;  %v5159_v63 = vld [vmem:[%s8625_s8 + $0x10] sm:$0xff] }
0x203a   : > { %v7144_v0 = vpack.c.bf16 %v5158_v62, %v5157_v61  ;;  %v5160_v2 = vld [vmem:[%s8625_s8 + $0x18] sm:$0xff] }
0x203b   : > { %v7147_v3 = vpack.c.bf16 %v5160_v2, %v5159_v63 }
0x203c   : > { %v4933_v49 = vpop.permute.xlu1 %4932 }
0x2040   : > { %v4935_v16 = vpop.permute.xlu1 %4934 }
0x2099   : > { %v4943_v19 = vpop.permute.xlu0 %4942 }
0x209a   : > { %v4963_v22 = vsel %vm1222_vm4, %v4935_v16, %v4943_v19 }
0x209d   : > { %v4941_v50 = vpop.permute.xlu0 %4940 }
0x209e   : > { %v4949_v27 = vpop.permute.xlu1 %4948  ;;  %v4962_v51 = vsel %vm1222_vm4, %v4933_v49, %v4941_v50 }
0x209f   : > { %v4964_v25 = vsel %vm1303_vm6, %v4962_v51, %v4949_v27 }
0x20a1   : > { %v4951_v14 = vpop.permute.xlu0 %4950 }
0x20a2   : > { %v4957_v52 = vpop.permute.xlu1 %4956  ;;  %v4965_v54 = vsel %vm1303_vm6, %v4963_v22, %v4951_v14 }
0x20a3   : > { %v4966_v53 = vsel %vm1931_vm7, %v4964_v25, %v4957_v52 }
0x20a4   : > { %6905 = vmatprep.mubr.msk.f32.mxu1 %vm1148_vm3, %v4966_v53 }
0x20a5   : > { %v4959_v26 = vpop.permute.xlu0 %4958 }
0x20a6   : > { %v4967_v55 = vsel %vm1931_vm7, %v4965_v54, %v4959_v26 }
0x20a7   : > { %6906 = vmatmul.mubr.msk.f32.vlgmr.msra.gmra.mrb[40].mxu1 %vm1148_vm3, %v4967_v55 }
0x20a8   : > { %6927 = vmatprep.mubr.msk.f32.mxu1 %vm7601_vm1, %v7602_v7  ;;  %7145 = vmatpush3.bf16.msra.mxu1 %v7144_v0 }
0x20a9   : > { %7146 = vmatprep.subr.bf16.mxu1 %v7600_v1 }
0x20ac   : > { %7148 = vmatpush3.bf16.msra.mxu1 %v7147_v3 }
0x20ad   : > { %7153 = vmatprep.subr.bf16.mxu1 %v7600_v1 }
0x20af   : > { %6928 = vmatmul.mubr.msk.f32.vlgmr.msra.gmra.mrb[42].mxu1 %vm1148_vm3, %v5156_v4 }
0x20b0   : > { %6941 = vmatprep.mubr.msk.f32.mxu1 %vm7601_vm1, %v7602_v7 }
0x217a   : > { %v6907_v8 = vpop.f32.mrb[40].mxu1 }
0x217b   : > { %v5057_v45 = vadd.f32 %v6907_v8, %v6385_v6  ;;  %v5051_v9 = vpop.f32.mrb[41].mxu1 }
0x217c   : > { %v5052_v5 = vadd.f32 %v6385_v6, %v5051_v9 }
0x217d   : > { %v5061_v10 = vmax.f32 %v5057_v45, 0.0 }
0x217e   : > { %v5060_v11 = vmax.f32 %v5052_v5, 0.0 }
0x217f   : > { %v5063_v13 = vadd.f32 %v5061_v10, %v4967_v55 }
0x2180   : > { %v5062_v12 = vadd.f32 %v5060_v11, %v4966_v53 }
0x2182   : > { %6916 = vmatprep.mubr.msk.f32.mxu0 %vm1148_vm3, %v5062_v12  ;;  %v5231_v15 = vpop.f32.mrb[42].mxu1 }
0x2183   : > { %6917 = vmatmul.mubr.msk.f32.vlgmr.msra.gmra.mrb[42].mxu0 %vm1148_vm3, %v5063_v13  ;;  %v8362_v18 = vadd.f32 %v5231_v15, %v5161_v23  ;;  %v6929_v20 = vpop.f32.mrb[43].mxu1 }
0x2184   : > { %6934 = vmatprep.mubr.msk.f32.mxu0 %vm7601_vm1, %v7602_v7 }
0x2185   : > { %5407 = vrot.lane.b32.xlu0 %v8362_v18, %s8602_s1 }
0x21f7   : > { %v5408_v38 = vpop.permute.xlu0 %5407 }
0x2256   : > { %v6918_v24 = vpop.f32.mrb[42].mxu0 }
0x2257   : > { %v5153_v28 = vadd.f32 %v6918_v24, %v6388_v21  ;;  %v5147_v29 = vpop.f32.mrb[43].mxu0 }
0x2258   : > { %v5148_v30 = vadd.f32 %v6388_v21, %v5147_v29 }
0x225a   : > { %v8367_v32 = vpack.i.bf16 %v5153_v28, %v5148_v30  ;;  %v7150_v33 = vpack.c.bf16 %v5153_v28, %v5148_v30 }
0x225c   : > { %7356 = vrot.lane.b32.xlu1 %v8367_v32, %s8602_s1  ;;  %7152 = vmatpush3.bf16.xpose.msk.msra.mxu0 %vm7873_vm5, %v7150_v33 }
0x225d   : > { %7156 = vmatprep.subr.bf16.mxu0 %v7600_v1 }
0x2263   : > { %6935 = vmatmul.mubr.msk.f32.vlgmr.msra.gmra.mrb[44].mxu0 %vm1222_vm4, %v8362_v18 }
0x2264   : > { %6948 = vmatprep.mubr.msk.f32.mxu0 %vm7601_vm1, %v7602_v7 }
0x22ce   : > { %v7357_v34 = vpop.permute.xlu1 %7356 }
0x22cf   : > { %v7359_v35 = vunpack.i.h.bf16 %v7357_v34  ;;  %v7358_v36 = vunpack.i.l.bf16 %v7357_v34 }
0x22d1   : > { %v7157_v37 = vpack.c.bf16 %v7359_v35, %v7358_v36 }
0x22d3   : > { %7159 = vmatpush3.bf16.xpose.msk.msra.mxu0 %vm7873_vm5, %v7157_v37 }
0x22d4   : > { %7167 = vmatprep.subr.bf16.mxu0 %v7600_v1 }
0x22da   : > { %6949 = vmatmul.mubr.msk.f32.vlgmr.msra.gmra.mrb[46].mxu0 %vm1222_vm4, %v5408_v38 }
0x22db   : > { %6969 = vmatprep.mubr.msk.f32.mxu0 %vm7601_vm1, %v7602_v7 }
0x2336   : > { %v5310_v39 = vpop.f32.mrb[44].mxu0 }
0x2337   : > { %v5314_v40 = vmul.f32 0.17677669, %v5310_v39  ;;  %v6936_v41 = vpop.f32.mrb[45].mxu0 }
0x2339   : > { %v5316_v42 = vsel %vm5315_vm8, %v5314_v40, -inf }
0x233a   : > { %5317 = vmax.xlane.f32.xlu1 %v5316_v42 }
0x234b   : > { %7366 = vrot.lane.b32.xlu1 %v8367_v32, %s8604_s28 }
0x23ad   : > { %v5485_v43 = vpop.f32.mrb[46].mxu0 }
0x23ae   : > { %v5489_v44 = vmul.f32 0.17677669, %v5485_v43  ;;  %v6950_v46 = vpop.f32.mrb[47].mxu0 }
0x23b0   : > { %v5490_v47 = vsel %vm5315_vm8, %v5489_v44, -inf }
0x23b1   : > { %5491 = vmax.xlane.f32.xlu0 %v5490_v47 }
0x23c7   : > { %v5318_v48 = vpop.xlane.xlu1 %5317 }
0x23c8   : > { %v5319_v49 = vsub.f32 %v5314_v40, %v5318_v48 }
0x23ca   : > { %v5320_v19 = vmul.f32 1.442695, %v5319_v49 }
0x23cb   : > { %v7367_v55 = vpop.permute.xlu1 %7366 }
0x23cc   : > { %7486 = vpow2.f32 %v5320_v19  ;;  %v7369_v56 = vunpack.i.h.bf16 %v7367_v55  ;;  %v7368_v57 = vunpack.i.l.bf16 %v7367_v55  ;;  %v5947_v55 = vld [vmem:[%s8630_s21 + $0x10] sm:$0xff] }
0x23ce   : > { %v7161_v60 = vpack.c.bf16 %v7369_v56, %v7368_v57 }
0x23d6   : > { %v7487_v16 = vpop.eup %7486 }
0x23d7   : > { %v5322_v50 = vsel %vm5315_vm8, %v7487_v16, 0.0 }
0x23d8   : > { %5323 = vadd.xlane.f32.xlu0 %v5322_v50 }
0x23ee   : > { %7361 = vrot.lane.b32.xlu0 %v8367_v32, %s8605_s23 }
0x23f2   : > { %5585 = vrot.lane.b32.xlu0 %v8362_v18, %s8612_s9 }
0x243e   : > { %v5492_v27 = vpop.xlane.xlu0 %5491 }
0x243f   : > { %v5493_v51 = vsub.f32 %v5489_v44, %v5492_v27 }
0x2441   : > { %v5494_v14 = vmul.f32 1.442695, %v5493_v51 }
0x2443   : > { %7488 = vpow2.f32 %v5494_v14 }
0x244d   : > { %v7489_v25 = vpop.eup %7488 }
0x244e   : > { %v5496_v52 = vsel %vm5315_vm8, %v7489_v25, 0.0 }
0x244f   : > { %5497 = vadd.xlane.f32.xlu1 %v5496_v52 }
0x2460   : > { %7371 = vrot.lane.b32.xlu1 %v8367_v32, %s8612_s9 }
0x2465   : > { %v5324_v53 = vpop.xlane.xlu0 %5323 }
0x2466   : > { %7490 = vrcp.f32 %v5324_v53 }
0x2469   : > { %v7362_v22 = vpop.permute.xlu0 %7361 }
0x246a   : > { %v7364_v54 = vunpack.i.h.bf16 %v7362_v22  ;;  %v7363_v26 = vunpack.i.l.bf16 %v7362_v22  ;;  %v5945_v22 = vld [vmem:[%s8630_s21] sm:$0xff] }
0x246c   : > { %v7154_v31 = vpack.c.bf16 %v7364_v54, %v7363_v26  ;;  %v5946_v54 = vld [vmem:[%s8630_s21 + $0x8] sm:$0xff] }
0x246d   : > { %v5586_v6 = vpop.permute.xlu0 %5585  ;;  %v7178_v26 = vpack.c.bf16 %v5946_v54, %v5945_v22 }
0x246e   : > { %7155 = vmatpush3.bf16.msra.mxu1 %v7154_v31  ;;  %v5948_v31 = vld [vmem:[%s8630_s21 + $0x18] sm:$0xff] }
0x246f   : > { %7160 = vmatprep.subr.bf16.mxu1 %v7600_v1  ;;  %v7181_v56 = vpack.c.bf16 %v5948_v31, %v5947_v55 }
0x2470   : > { %v7491_v58 = vpop.eup %7490 }
0x2471   : > { %v5326_v59 = vmul.f32 %v7491_v58, %v7487_v16 }
0x2473   : > { %6942 = vmatmul.mubr.msk.f32.vlgmr.msra.gmra.mrb[44].mxu1 %vm1303_vm6, %v5326_v59 }
0x2474   : > { %7162 = vmatpush3.bf16.msra.mxu1 %v7161_v60  ;;  %6955 = vmatprep.mubr.msk.f32.mxu1 %vm7601_vm1, %v7602_v7 }
0x2475   : > { %7163 = vmatprep.subr.bf16.mxu1 %v7600_v1 }
0x24dc   : > { %v5498_v61 = vpop.xlane.xlu1 %5497 }
0x24dd   : > { %7492 = vrcp.f32 %v5498_v61 }
0x24e0   : > { %v7372_v62 = vpop.permute.xlu1 %7371 }
0x24e1   : > { %v7374_v63 = vunpack.i.h.bf16 %v7372_v62  ;;  %v7373_v0 = vunpack.i.l.bf16 %v7372_v62 }
0x24e3   : > { %v7164_v4 = vpack.c.bf16 %v7374_v63, %v7373_v0 }
0x24e7   : > { %v7493_v2 = vpop.eup %7492 }
0x24e8   : > { %v5500_v3 = vmul.f32 %v7493_v2, %v7489_v25 }
0x24ea   : > { %6956 = vmatmul.mubr.msk.f32.vlgmr.msra.gmra.mrb[46].mxu1 %vm1303_vm6, %v5500_v3 }
0x24eb   : > { %7166 = vmatpush3.bf16.xpose.msk.msra.mxu1 %vm7873_vm5, %v7164_v4  ;;  %6962 = vmatprep.mubr.msk.f32.mxu1 %vm7601_vm1, %v7602_v7 }
0x24ec   : > { %7174 = vmatprep.subr.bf16.mxu1 %v7600_v1 }
0x24f2   : > { %6963 = vmatmul.mubr.msk.f32.vlgmr.msra.gmra.mrb[48].mxu1 %vm1222_vm4, %v5586_v6 }
0x24f3   : > { %6983 = vmatprep.mubr.msk.f32.mxu1 %vm7601_vm1, %v7602_v7 }
0x2546   : > { %v8410_v8 = vpop.f32.mrb[44].mxu1 }
0x2547   : > { %v6943_v45 = vpop.f32.mrb[45].mxu1  ;;  %v5406_v61 = vadd.f32 %v8410_v8, %v8362_v18 }
0x25bd   : > { %v5576_v9 = vpop.f32.mrb[46].mxu1 }
0x25be   : > { %v6957_v5 = vpop.f32.mrb[47].mxu1 }
0x25c5   : > { %v5663_v10 = vpop.f32.mrb[48].mxu1 }
0x25c6   : > { %v5667_v11 = vmul.f32 0.17677669, %v5663_v10  ;;  %v6964_v12 = vpop.f32.mrb[49].mxu1 }
0x25c7   : > { %v6105_v12 = vld [vmem:[%s7786_s27 + $0x8] sm:$0xff] }
0x25c8   : > { %v5668_v13 = vsel %vm5315_vm8, %v5667_v11, -inf }
0x25c9   : > { %5669 = vmax.xlane.f32.xlu1 %v5668_v13 }
0x25da   : > { %7381 = vrot.lane.b32.xlu1 %v8367_v32, %s8603_s11 }
0x25de   : > { %5763 = vrot.lane.b32.xlu1 %v8362_v18, %s8603_s11 }
0x2656   : > { %v5670_v23 = vpop.xlane.xlu1 %5669 }
0x2657   : > { %v5671_v15 = vsub.f32 %v5667_v11, %v5670_v23  ;;  %v6104_v11 = vld [vmem:[%s7786_s27] sm:$0xff] }
0x2658   : > { %v7190_v13 = vpack.c.bf16 %v6105_v12, %v6104_v11 }
0x2659   : > { %v5672_v20 = vmul.f32 1.442695, %v5671_v15 }
0x265a   : > { %v7382_v35 = vpop.permute.xlu1 %7381 }
0x265b   : > { %7494 = vpow2.f32 %v5672_v20  ;;  %v7384_v37 = vunpack.i.h.bf16 %v7382_v35  ;;  %v7383_v38 = vunpack.i.l.bf16 %v7382_v35 }
0x265d   : > { %v7171_v40 = vpack.c.bf16 %v7384_v37, %v7383_v38  ;;  %v6108_v37 = vld [vmem:[%s7791_s4] sm:$0x1] }
0x265e   : > { %v5764_v41 = vpop.permute.xlu1 %5763 }
0x2665   : > { %v7495_v21 = vpop.eup %7494 }
0x2666   : > { %v5674_v24 = vsel %vm5315_vm8, %v7495_v21, 0.0 }
0x2667   : > { %5675 = vadd.xlane.f32.xlu0 %v5674_v24 }
0x267d   : > { %7376 = vrot.lane.b32.xlu0 %v8367_v32, %s8606_s3  ;;  %s1033_s3 = sand.u32 1, %s7556_s16  }
0x267e   : > { %s1034_s20 = scalar_lea.vmem [#allocation2], %s1033_s3  ;;  %s6184_s23 = scalar_lea.sflag [#allocation3], %s1033_s3 }
0x267f   : > { %s6196_s1 = sshll.u32 %s1034_s20, 4  ;;  %s8478_s1 = int_to_ptr.vmem [resolvable:$true] %s6196_s1 }
0x2680   : > { %s7502_s28 = scalar_lea.vmem %s8478_s1, 16 }
0x2681   : > { %p7503_p11 = scmp.ne.s32.totalorder %s8478_s1, %s7502_s28 }
0x2683   : > { %p7504_p12 = pnand %p7503_p11, %p7836_p5 }
0x2685   : > { %p7505_p13 = pneg %p7504_p12 }
0x26f4   : > { %v5676_v28 = vpop.xlane.xlu0 %5675 }
0x26f5   : > { %7496 = vrcp.f32 %v5676_v28  ;;  %v6106_v28 = vld [vmem:[%s7786_s27 + $0x10] sm:$0xff] }
0x26f8   : > { %v7377_v29 = vpop.permute.xlu0 %7376 }
0x26f9   : > { %v7379_v30 = vunpack.i.h.bf16 %v7377_v29  ;;  %v7378_v33 = vunpack.i.l.bf16 %v7377_v29  ;;  %v6107_v29 = vld [vmem:[%s7786_s27 + $0x18] sm:$0xff] }
0x26fb   : > { %v7168_v34 = vpack.c.bf16 %v7379_v30, %v7378_v33  ;;  %v7193_v30 = vpack.c.bf16 %v6107_v29, %v6106_v28  ;;  %v6029_v33 = vld [vmem:[%s7781_s24] sm:$0x1] }
0x26fd   : > { %7169 = vmatpush3.bf16.msra.mxu0 %v7168_v34 }
0x26fe   : > { %7170 = vmatprep.subr.bf16.mxu0 %v7600_v1 }
0x26ff   : > { %v7497_v36 = vpop.eup %7496 }
0x2700   : > { %v5678_v39 = vmul.f32 %v7497_v36, %v7495_v21 }
0x2702   : > { %6970 = vmatmul.mubr.msk.f32.vlgmr.msra.gmra.mrb[48].mxu0 %vm1303_vm6, %v5678_v39 }
0x2703   : > { %6976 = vmatprep.mubr.msk.f32.mxu0 %vm7601_vm1, %v7602_v7 }
0x2706   : > { %7173 = vmatpush3.bf16.xpose.msk.msra.mxu0 %vm7873_vm5, %v7171_v40 }
0x2707   : > { %7183 = vmatprep.subr.bf16.mxu0 %v7600_v1 }
0x270d   : > { %6977 = vmatmul.mubr.msk.f32.vlgmr.msra.gmra.mrb[50].mxu0 %vm1222_vm4, %v5764_v41 }
0x270e   : > { %7005 = vmatprep.mubr.msk.f32.mxu0 %vm7601_vm1, %v7602_v7 }
0x27d5   : > { %v5754_v42 = vpop.f32.mrb[48].mxu0 }
0x27d6   : > { %v6971_v43 = vpop.f32.mrb[49].mxu0 }
0x27e0   : > { %v5841_v44 = vpop.f32.mrb[50].mxu0 }
0x27e1   : > { %v5845_v46 = vmul.f32 0.17677669, %v5841_v44  ;;  %v6978_v47 = vpop.f32.mrb[51].mxu0 }
0x27e3   : > { %v5846_v48 = vsel %vm5315_vm8, %v5845_v46, -inf }
0x27e4   : > { %5847 = vmax.xlane.f32.xlu0 %v5846_v48 }
0x27fa   : > { %7386 = vrot.lane.b32.xlu0 %v8367_v32, %s8607_s5  ;;  %s8631_s5 = sld [smem:[#allocation32_spill]] }
0x27fe   : > { %5759 = vrot.lane.b32.xlu0 %v5754_v42, %s8613_s13 }
0x2800   : > { %v6025_v8 = vld [vmem:[%s8631_s5] sm:$0xff]  ;;  %v6026_v45 = vld [vmem:[%s8631_s5 + $0x8] sm:$0xff]  ;;  %v6027_v5 = vld [vmem:[%s8631_s5 + $0x10] sm:$0xff] }
0x2801   : > { %v6028_v10 = vld [vmem:[%s8631_s5 + $0x18] sm:$0xff] }
0x2871   : > { %v5848_v17 = vpop.xlane.xlu0 %5847 }
0x2872   : > { %v5849_v49 = vsub.f32 %v5845_v46, %v5848_v17 }
0x2874   : > { %v5850_v19 = vmul.f32 1.442695, %v5849_v49 }
0x2875   : > { %v7387_v16 = vpop.permute.xlu0 %7386 }
0x2876   : > { %7498 = vpow2.f32 %v5850_v19  ;;  %v7389_v50 = vunpack.i.h.bf16 %v7387_v16  ;;  %v7388_v27 = vunpack.i.l.bf16 %v7387_v16 }
0x2878   : > { %v7175_v51 = vpack.c.bf16 %v7389_v50, %v7388_v27 }
0x2879   : > { %v5760_v62 = vpop.permute.xlu0 %5759 }
0x287a   : > { %7176 = vmatpush3.bf16.msra.mxu1 %v7175_v51  ;;  %v5762_v0 = vadd.f32 %v5760_v62, %v8362_v18 }
0x287b   : > { %7177 = vmatprep.subr.bf16.mxu1 %v7600_v1 }
0x2880   : > { %v7499_v14 = vpop.eup %7498 }
0x2881   : > { %v5852_v32 = vsel %vm5315_vm8, %v7499_v14, 0.0 }
0x2882   : > { %5853 = vadd.xlane.f32.xlu1 %v5852_v32 }
0x2893   : > { %5581 = vrot.lane.b32.xlu1 %v5576_v9, %s8616_s17  ;;  %s8632_s17 = sld [smem:[#allocation31_spill]]  ;;  %v7184_v9 = vpack.c.bf16 %v6026_v45, %v6025_v8 }
0x2895   : > { %7185 = vmatpush3.bf16.msra.mxu0 %v7184_v9 }
0x2896   : > { %7186 = vmatprep.subr.bf16.mxu0 %v7600_v1 }
0x290f   : > { %v5854_v25 = vpop.xlane.xlu1 %5853 }
0x2910   : > { %7500 = vrcp.f32 %v5854_v25 }
0x2913   : > { %v5582_v59 = vpop.permute.xlu1 %5581 }
0x2914   : > { %v5584_v60 = vadd.f32 %v5582_v59, %v8362_v18 }
0x2916   : > { %v5941_v63 = vsel %vm1222_vm4, %v5406_v61, %v5584_v60 }
0x2917   : > { %v5942_v4 = vsel %vm1303_vm6, %v5941_v63, %v5762_v0 }
0x291a   : > { %v7501_v52 = vpop.eup %7500 }
0x291b   : > { %v5856_v53 = vmul.f32 %v7501_v52, %v7499_v14 }
0x291d   : > { %6984 = vmatmul.mubr.msk.f32.vlgmr.msra.gmra.mrb[50].mxu1 %vm1303_vm6, %v5856_v53 }
0x291e   : > { %6994 = vmatprep.mubr.msk.f32.mxu1 %vm7601_vm1, %v7602_v7  ;;  %7179 = vmatpush3.bf16.msra.mxu1 %v7178_v26 }
0x291f   : > { %7180 = vmatprep.subr.bf16.mxu1 %v7600_v1 }
0x2922   : > { %7182 = vmatpush3.bf16.msra.mxu1 %v7181_v56 }
0x2923   : > { %7189 = vmatprep.subr.bf16.mxu1 %v7600_v1 }
0x29f0   : > { %v5932_v57 = vpop.f32.mrb[50].mxu1 }
0x29f1   : > { %5937 = vrot.lane.b32.xlu1 %v5932_v57, %s8617_s19  ;;  %v6985_v58 = vpop.f32.mrb[51].mxu1  ;;  %s6411_s19 = sshll.u32 %s7819_s0, 4  ;;  %s7617_s0 = smov [#allocation2]  }
0x29f2   : > { %s8476_s11 = scalar_lea.hbm %s7796_s12, %s6411_s19  ;;  %s7506_s9 = sshll.u32 %s7617_s0, 4  ;;  %s7507_s9 = int_to_ptr.vmem [resolvable:$false] %s7506_s9 }
0x29f3   : > { %s7508_s13 = scalar_lea.vmem %s7507_s9, 32  ;;  %p7509_p0 = scmp.lt.s32.totalorder %s8478_s1, %s7507_s9 }
0x29f4   : > { %p7510_p1 = scmp.lt.s32.totalorder %s7508_s13, %s7502_s28 }
0x29f6   : > { %p7511_p2 = por %p7510_p1, %p7509_p0 }
0x29f8   : > { %p7512_p3 = pnand %p7511_p2, %p7505_p13 }
0x2a63   : > { %v5938_v2 = vpop.permute.xlu1 %5937 }
0x2a64   : > { %v5940_v3 = vadd.f32 %v5938_v2, %v8362_v18  ;;  %v7187_v18 = vpack.c.bf16 %v6028_v10, %v6027_v5 }
0x2a66   : > { %v5943_v6 = vsel %vm1931_vm7, %v5942_v4, %v5940_v3  ;;  %7188 = vmatpush3.bf16.msra.mxu0 %v7187_v18 }
0x2a67   : > { %6995 = vmatmul.mubr.msk.f32.vlgmr.msra.gmra.mrb[52].mxu1 %vm1148_vm3, %v5943_v6 }
0x2a68   : > { %7016 = vmatprep.mubr.msk.f32.mxu1 %vm7601_vm1, %v7602_v7  ;;  %7191 = vmatpush3.bf16.msra.mxu1 %v7190_v13  ;;  %v5949_v7 = vld [vmem:[%s8632_s17] sm:$0x1] }
0x2a69   : > { %7192 = vmatprep.subr.bf16.mxu1 %v7600_v1 }
0x2a6c   : > { %7194 = vmatpush3.bf16.msra.mxu1 %v7193_v30 }
0x2b3a   : > { %v6019_v23 = vpop.f32.mrb[52].mxu1 }
0x2b3b   : > { %v6020_v15 = vadd.f32 %v6019_v23, %v5949_v7  ;;  %v6996_v20 = vpop.f32.mrb[53].mxu1 }
0x2b3d   : > { %v6023_v21 = vmax.f32 %v6020_v15, 0.0 }
0x2b3f   : > { %v6024_v24 = vadd.f32 %v6023_v21, %v5943_v6 }
0x2b41   : > { %7006 = vmatmul.mubr.msk.f32.vlgmr.msra.gmra.mrb[52].mxu0 %vm1148_vm3, %v6024_v24 }
0x2c14   : > { %v6099_v34 = vpop.f32.mrb[52].mxu0 }
0x2c15   : > { %v6100_v35 = vadd.f32 %v6099_v34, %v6029_v33  ;;  %v7007_v1 = vpop.f32.mrb[53].mxu0 }
0x2c17   : > { %v6103_v36 = vmax.f32 %v6100_v35, 0.0 }
0x2c19   : > { %7017 = vmatmul.mubr.msk.f32.vlgmr.msra.gmra.mrb[54].mxu1 %vm1148_vm3, %v6103_v36 }
0x2cec   : > { %v6178_v38 = vpop.f32.mrb[54].mxu1 }
0x2ced   : > { %v6179_v39 = vadd.f32 %v6178_v38, %v6108_v37  ;;  %v7018_v40 = vpop.f32.mrb[55].mxu1 }
0x2cef   : > { %6182 = vst [vmem:[%s1034_s20] sm:$0x1] %v6179_v39 }
0x2cf0   : > { %7515 = shalt.err (!%p7512_p3)
}
0x2cf1   : > { %s7516_s6 = scalar_lea.hbm %s8476_s11, 16  ;;  %s7520_s14 = scalar_lea.hbm %s7796_s12, 32 }
0x2cf2   : > { %p7517_p4 = scmp.ne.s32.totalorder %s8476_s11, %s7516_s6  ;;  %p7521_p9 = scmp.lt.u32.totalorder %s8476_s11, %s7796_s12 }
0x2cf3   : > { %p7522_p10 = scmp.lt.u32.totalorder %s7520_s14, %s7516_s6  ;;  %p7524_p12 = scmp.lt.u32.totalorder %s7516_s6, %s8476_s11 }
0x2cf4   : > { %p7518_p7 = pnand %p7517_p4, %p7836_p5 }
0x2cf5   : > { %p7523_p11 = por %p7522_p10, %p7521_p9 }
0x2cf6   : > { %p7519_p8 = pneg %p7518_p7 }
0x2cf7   : > { %p7525_p0 = por %p7524_p12, %p7523_p11 }
0x2cf9   : > { %p7526_p13 = pnand %p7525_p0, %p7519_p8 }
0x2cfb   : > { %7529 = shalt.err (!%p7526_p13)
}
0x2cfc   : > { %7195 = dma.vmem_to_hbm [thread:$0]  (%p7836_p5), %s8478_s1, 16, %s8476_s11, %s6184_s23  }
0x2cfd PF: > { %p7201_p1 = scmp.ge.s32.totalorder %s7564_s22, 2  ;;  %s6208_s17 = sand.u32 1, %s7552_s15  }
0x2cfe   : > { %s6209_s3 = scalar_lea.sflag [#allocation3], %s6208_s17 }
0x2cff   : > { %p7198_p2 = pnand %p7201_p1, %p7840_p6 }
0x2d01   : > { %7547 = dma.done.wait (!%p7198_p2), %s6209_s3, 16  }
0x2d02   : > { %7549 = vsyncadd (!%p7198_p2), %s6209_s3, 4294967280  ;;  %p79_p3 = scmp.ge.s32.totalorder %s7823_s26, 4   ;;  %s8633_s15 = smov %s7556_s16 }
0x2d03   : > { %s8634_s16 = smov %s7560_s18  ;;  %s8635_s18 = smov %s7834_s2 }
0x2d04   : > { %s8636_s22 = smov %s7823_s26  ;;  %81 = sbr.rel (!%p79_p3) target bundleno = 70 (0x46), region = 225 }
0x2d0b   :  { %6213 = vsyncpa [#allocation3], 1 }
0x2d0c   :  { %6215 = vsyncpa [#allocation3 + $0x1], 1 }

</bundles_post_ra>
